<compile_context>
chip_gen: v7x
topology: tpu7x:2x2x1
jax: 0.10.0
libtpu: 0.0.40
codegen_flags: <defaults>
</compile_context>

<pallas_src>
import functools

import jax
import jax.numpy as jnp
from jax.experimental import pallas as pl
from jax.experimental.pallas import tpu as pltpu

BN_EPS = 1e-5
_VMEM = pl.BlockSpec(memory_space=pltpu.MemorySpace.VMEM)


# ---------------------------------------------------------------------------
# Fused Pallas kernel: whole forward pass, everything resident in VMEM.
# ---------------------------------------------------------------------------
def cnn_fused_kernel(p1_ref, w1_ref, g1_ref, b1_ref,
                     w2_ref, g2_ref, b2_ref,
                     fcw_ref, fcb_ref, o_ref, *, oh, ow):
    B = o_ref.shape[0]
    sp = oh * ow                      # spatial positions per image (8*8 = 64)
    M = B * sp                        # rows of the activation matrices (128)
    C1 = w1_ref.shape[1]              # conv1 out channels (32)

    # ---- conv1 as a single im2col matmul (K pre-padded 25 -> 32) ----
    z1 = jnp.dot(p1_ref[...], w1_ref[...],
                 preferred_element_type=jnp.float32)             # (M, C1)

    # ---- BN1 (training-mode batch stats) + ReLU ----
    # Single-pass stats (clamped), conv bias omitted (cancelled by the mean
    # subtraction), gamma folded into one per-channel scale; rsqrt -> EUP.
    m1 = jnp.mean(z1, axis=0, keepdims=True)
    v1 = jnp.maximum(jnp.mean(z1 * z1, axis=0, keepdims=True) - m1 * m1, 0.0)
    s1 = g1_ref[...] * jax.lax.rsqrt(v1 + BN_EPS)
    y1 = jnp.maximum(z1 * s1 + (b1_ref[...] - m1 * s1), 0.0)     # (M, C1)

    # ---- conv2 (3x3, stride 1, pad 1) as ONE packed matmul ----
    # Row r = b*sp + i*ow + j. The (di, dj) tap reads row r + (di-1)*ow+(dj-1),
    # zeroed where the target pixel falls outside the image.  The 9 shifted,
    # masked taps are concatenated along lanes -> (M, 9*C1), one K=288 dot.
    pad = 16                           # >= max |shift| (ow + 1 = 9)
    zrows = jnp.zeros((pad, C1), jnp.float32)
    y1z = jnp.concatenate([zrows, y1, zrows], axis=0)            # (M+2*pad, C1)

    rows = jax.lax.broadcasted_iota(jnp.int32, (M, 1), 0)        # in-kernel iota
    if (ow & (ow - 1)) == 0 and (sp & (sp - 1)) == 0:            # power-of-two fast path
        jj = jnp.bitwise_and(rows, ow - 1)
        ii = jnp.right_shift(jnp.bitwise_and(rows, sp - 1), (ow - 1).bit_length())
    else:
        jj = rows % ow
        ii = (rows % sp) // ow

    patches = []
    for di in range(3):
        for dj in range(3):
            s = (di - 1) * ow + (dj - 1)
            if s == 0:
                shifted = y1                                     # center tap
            else:
                shifted = y1z[pad + s: pad + s + M, :]           # row r -> r+s
            oi = ii + (di - 1)
            oj = jj + (dj - 1)
            valid = (oi >= 0) & (oi < oh) & (oj >= 0) & (oj < ow)
            patches.append(jnp.where(valid, shifted, 0.0))
    lhs = jnp.concatenate(patches, axis=-1)                      # (M, 9*C1)
    z2 = jnp.dot(lhs, w2_ref[...],
                 preferred_element_type=jnp.float32)             # (M, C2)

    # ---- BN2 (training-mode batch stats) + ReLU ----
    m2 = jnp.mean(z2, axis=0, keepdims=True)
    v2 = jnp.maximum(jnp.mean(z2 * z2, axis=0, keepdims=True) - m2 * m2, 0.0)
    s2 = g2_ref[...] * jax.lax.rsqrt(v2 + BN_EPS)
    y2 = jnp.maximum(z2 * s2 + (b2_ref[...] - m2 * s2), 0.0)     # (M, C2)

    # ---- global max over spatial, then Linear(C2 -> 10) ----
    C2 = y2.shape[-1]
    pooled = jnp.max(y2.reshape(B, sp, C2), axis=1)              # (B, C2)
    o_ref[...] = (jnp.dot(pooled, fcw_ref[...],
                          preferred_element_type=jnp.float32)
                  + fcb_ref[...])


# ---------------------------------------------------------------------------
# Plain-JAX glue: im2col for conv1 only (tiny; strided slices / stack / pad,
# all fused by XLA into one small producer fusion feeding the kernel).
# ---------------------------------------------------------------------------
def conv1_im2col(x_nhwc, kh, kw, stride, pad, k_pad):
    x_p = jnp.pad(x_nhwc, ((0, 0), (pad, pad), (pad, pad), (0, 0)))
    B, H, W, C = x_p.shape
    oh = (H - kh) // stride + 1
    ow = (W - kw) // stride + 1
    taps = [x_p[:, i: i + (oh - 1) * stride + 1: stride,
                   j: j + (ow - 1) * stride + 1: stride, :]
            for i in range(kh) for j in range(kw)]
    p = jnp.stack(taps, axis=3).reshape(B * oh * ow, kh * kw * C)
    p = jnp.pad(p, ((0, 0), (0, k_pad - kh * kw * C)))           # K 25 -> 32
    return p, oh, ow


# ---------------------------------------------------------------------------
# Deterministic parameter init (shapes from the PyTorch module's __init__).
# Weight re-layouts (K-pad, packed-tap reshape) are done ONCE here, not in the
# per-forward wrapper.  Conv biases are omitted: they are mathematical no-ops
# before training-mode BatchNorm.
# ---------------------------------------------------------------------------
def init_params(key):
    k1, k2, k3, k4 = jax.random.split(key, 4)
    # conv1: in=1, out=32, 5x5 -> im2col layout (kh*kw*cin, cout), K-padded to 32
    w1 = jax.random.normal(k1, (5 * 5 * 1, 32), jnp.float32) * 0.1
    w1 = jnp.pad(w1, ((0, 32 - 25), (0, 0)))
    # conv2: in=32, out=64, 3x3 -> packed-tap layout (kh*kw*cin, cout) = (288, 64)
    w2 = (jax.random.normal(k2, (9, 32, 64), jnp.float32) * 0.05).reshape(288, 64)
    return {
        "w1": w1,
        "gamma1": jnp.ones((1, 32), jnp.float32),
        "beta1": jnp.zeros((1, 32), jnp.float32),
        "w2": w2,
        "gamma2": jnp.ones((1, 64), jnp.float32),
        "beta2": jnp.zeros((1, 64), jnp.float32),
        # fc: 64 -> 10 (stored as (in, out))
        "fc_w": jax.random.normal(k3, (64, 10), jnp.float32) * 0.1,
        "fc_b": jax.random.normal(k4, (1, 10), jnp.float32) * 0.1,
    }


# ---------------------------------------------------------------------------
# Full forward pass (matches PyTorch CNN.forward, training-mode BN),
# single pallas_call.
# ---------------------------------------------------------------------------
@jax.jit
def cnn_forward(params, x_nchw):
    B = x_nchw.shape[0]
    x = jnp.transpose(x_nchw, (0, 2, 3, 1))                      # NCHW -> NHWC

    # conv1 im2col (5x5, stride 2, pad 2) -> (B*8*8, 32)
    p1, oh, ow = conv1_im2col(x, 5, 5, stride=2, pad=2,
                              k_pad=params["w1"].shape[0])

    kernel = functools.partial(cnn_fused_kernel, oh=oh, ow=ow)
    return pl.pallas_call(
        kernel,
        out_shape=jax.ShapeDtypeStruct((B, 10), jnp.float32),
        in_specs=[_VMEM] * 9,
        out_specs=_VMEM,
    )(p1, params["w1"], params["gamma1"], params["beta1"],
      params["w2"], params["gamma2"], params["beta2"],
      params["fc_w"], params["fc_b"])


if __name__ == "__main__":
    key = jax.random.PRNGKey(0)
    pkey, xkey = jax.random.split(key)
    params = init_params(pkey)

    # Input consistent with Conv2d(in_channels=1, ...): NCHW = (2, 1, 16, 16)
    x = jax.random.normal(xkey, (2, 1, 16, 16), jnp.float32)

    out = cnn_forward(params, x)
    out = jax.block_until_ready(out)
    assert out.shape == (2, 10), out.shape
    print("KERNEL_OK")
</pallas_src>

<mosaic_0001>
module attributes {stable_mosaic.version = 11 : i64} {
  func.func @cnn_fused_kernel(%arg0: memref<128x32xf32, #tpu.memory_space<vmem>>, %arg1: memref<32x32xf32, #tpu.memory_space<vmem>>, %arg2: memref<1x32xf32, #tpu.memory_space<vmem>>, %arg3: memref<1x32xf32, #tpu.memory_space<vmem>>, %arg4: memref<288x64xf32, #tpu.memory_space<vmem>>, %arg5: memref<1x64xf32, #tpu.memory_space<vmem>>, %arg6: memref<1x64xf32, #tpu.memory_space<vmem>>, %arg7: memref<64x10xf32, #tpu.memory_space<vmem>>, %arg8: memref<1x10xf32, #tpu.memory_space<vmem>>, %arg9: memref<2x10xf32, #tpu.memory_space<vmem>>) attributes {dimension_semantics = [], scalar_prefetch = 0 : i64, scratch_operands = 0 : i64, tpu.core_type = #tpu.core_type<tc>} {
    %c0 = arith.constant 0 : index
    %c0_0 = arith.constant 0 : index
    %0 = vector.load %arg0[%c0, %c0_0] : memref<128x32xf32, #tpu.memory_space<vmem>>, vector<128x32xf32>
    %c0_1 = arith.constant 0 : index
    %c0_2 = arith.constant 0 : index
    %1 = vector.load %arg1[%c0_1, %c0_2] : memref<32x32xf32, #tpu.memory_space<vmem>>, vector<32x32xf32>
    %cst = arith.constant dense<0.000000e+00> : vector<128x32xf32>
    %2 = tpu.matmul %0, %1, %cst {dimension_numbers = #tpu.dot_dimension_numbers<[1], [0], [0], [1], [0, 0, 1, 1], [], []>} : vector<128x32xf32>, vector<32x32xf32>, vector<128x32xf32> -> vector<128x32xf32>
    %cst_3 = arith.constant dense<0.000000e+00> : vector<32xf32>
    %3 = vector.multi_reduction <add>, %2, %cst_3 [0] : vector<128x32xf32> to vector<32xf32>
    %4 = vector.shape_cast %3 : vector<32xf32> to vector<1x32xf32>
    %cst_4 = arith.constant 1.280000e+02 : f32
    %5 = vector.broadcast %cst_4 : f32 to vector<1x32xf32>
    %6 = arith.divf %4, %5 : vector<1x32xf32>
    %7 = arith.mulf %2, %2 : vector<128x32xf32>
    %cst_5 = arith.constant dense<0.000000e+00> : vector<32xf32>
    %8 = vector.multi_reduction <add>, %7, %cst_5 [0] : vector<128x32xf32> to vector<32xf32>
    %9 = vector.shape_cast %8 : vector<32xf32> to vector<1x32xf32>
    %cst_6 = arith.constant 1.280000e+02 : f32
    %10 = vector.broadcast %cst_6 : f32 to vector<1x32xf32>
    %11 = arith.divf %9, %10 : vector<1x32xf32>
    %12 = arith.mulf %6, %6 : vector<1x32xf32>
    %13 = arith.subf %11, %12 : vector<1x32xf32>
    %cst_7 = arith.constant 0.000000e+00 : f32
    %14 = vector.broadcast %cst_7 : f32 to vector<1x32xf32>
    %15 = arith.maximumf %13, %14 : vector<1x32xf32>
    %c0_8 = arith.constant 0 : index
    %c0_9 = arith.constant 0 : index
    %16 = vector.load %arg2[%c0_8, %c0_9] : memref<1x32xf32, #tpu.memory_space<vmem>>, vector<1x32xf32>
    %cst_10 = arith.constant 9.99999974E-6 : f32
    %17 = vector.broadcast %cst_10 : f32 to vector<1x32xf32>
    %18 = arith.addf %15, %17 : vector<1x32xf32>
    %19 = math.rsqrt %18 : vector<1x32xf32>
    %20 = arith.mulf %16, %19 : vector<1x32xf32>
    %21 = vector.broadcast %20 : vector<1x32xf32> to vector<128x32xf32>
    %22 = arith.mulf %2, %21 : vector<128x32xf32>
    %c0_11 = arith.constant 0 : index
    %c0_12 = arith.constant 0 : index
    %23 = vector.load %arg3[%c0_11, %c0_12] : memref<1x32xf32, #tpu.memory_space<vmem>>, vector<1x32xf32>
    %24 = arith.mulf %6, %20 : vector<1x32xf32>
    %25 = arith.subf %23, %24 : vector<1x32xf32>
    %26 = vector.broadcast %25 : vector<1x32xf32> to vector<128x32xf32>
    %27 = arith.addf %22, %26 : vector<128x32xf32>
    %cst_13 = arith.constant 0.000000e+00 : f32
    %28 = vector.broadcast %cst_13 : f32 to vector<128x32xf32>
    %29 = arith.maximumf %27, %28 : vector<128x32xf32>
    %cst_14 = arith.constant 0.000000e+00 : f32
    %30 = vector.broadcast %cst_14 : f32 to vector<16x32xf32>
    %31 = tpu.concatenate %30, %29, %30 in 0 : vector<16x32xf32>, vector<128x32xf32>, vector<16x32xf32> -> vector<160x32xf32>
    %32 = tpu.iota {dimensions = array<i32: 0>} : vector<128x1xi32>
    %c7_i32 = arith.constant 7 : i32
    %33 = vector.broadcast %c7_i32 : i32 to vector<128x1xi32>
    %34 = arith.andi %32, %33 : vector<128x1xi32>
    %c63_i32 = arith.constant 63 : i32
    %35 = vector.broadcast %c63_i32 : i32 to vector<128x1xi32>
    %36 = arith.andi %32, %35 : vector<128x1xi32>
    %c3_i32 = arith.constant 3 : i32
    %37 = vector.broadcast %c3_i32 : i32 to vector<128x1xi32>
    %38 = arith.shrsi %36, %37 : vector<128x1xi32>
    %39 = vector.extract_strided_slice %31 {offsets = [7, 0], sizes = [128, 32], strides = [1, 1]} : vector<160x32xf32> to vector<128x32xf32>
    %c-1_i32 = arith.constant -1 : i32
    %40 = vector.broadcast %c-1_i32 : i32 to vector<128x1xi32>
    %41 = arith.addi %38, %40 : vector<128x1xi32>
    %c-1_i32_15 = arith.constant -1 : i32
    %42 = vector.broadcast %c-1_i32_15 : i32 to vector<128x1xi32>
    %43 = arith.addi %34, %42 : vector<128x1xi32>
    %c0_i32 = arith.constant 0 : i32
    %44 = vector.broadcast %c0_i32 : i32 to vector<128x1xi32>
    %45 = arith.cmpi sge, %41, %44 : vector<128x1xi32>
    %c8_i32 = arith.constant 8 : i32
    %46 = vector.broadcast %c8_i32 : i32 to vector<128x1xi32>
    %47 = arith.cmpi slt, %41, %46 : vector<128x1xi32>
    %48 = arith.andi %45, %47 : vector<128x1xi1>
    %c0_i32_16 = arith.constant 0 : i32
    %49 = vector.broadcast %c0_i32_16 : i32 to vector<128x1xi32>
    %50 = arith.cmpi sge, %43, %49 : vector<128x1xi32>
    %51 = arith.andi %48, %50 : vector<128x1xi1>
    %c8_i32_17 = arith.constant 8 : i32
    %52 = vector.broadcast %c8_i32_17 : i32 to vector<128x1xi32>
    %53 = arith.cmpi slt, %43, %52 : vector<128x1xi32>
    %54 = arith.andi %51, %53 : vector<128x1xi1>
    %cst_18 = arith.constant 0.000000e+00 : f32
    %55 = vector.shape_cast %54 : vector<128x1xi1> to vector<128x1xi1>
    %56 = vector.broadcast %55 : vector<128x1xi1> to vector<128x32xi1>
    %57 = vector.broadcast %cst_18 : f32 to vector<128x32xf32>
    %58 = arith.select %56, %39, %57 : vector<128x32xi1>, vector<128x32xf32>
    %59 = vector.extract_strided_slice %31 {offsets = [8, 0], sizes = [128, 32], strides = [1, 1]} : vector<160x32xf32> to vector<128x32xf32>
    %c-1_i32_19 = arith.constant -1 : i32
    %60 = vector.broadcast %c-1_i32_19 : i32 to vector<128x1xi32>
    %61 = arith.addi %38, %60 : vector<128x1xi32>
    %c0_i32_20 = arith.constant 0 : i32
    %62 = vector.broadcast %c0_i32_20 : i32 to vector<128x1xi32>
    %63 = arith.addi %34, %62 : vector<128x1xi32>
    %c0_i32_21 = arith.constant 0 : i32
    %64 = vector.broadcast %c0_i32_21 : i32 to vector<128x1xi32>
    %65 = arith.cmpi sge, %61, %64 : vector<128x1xi32>
    %c8_i32_22 = arith.constant 8 : i32
    %66 = vector.broadcast %c8_i32_22 : i32 to vector<128x1xi32>
    %67 = arith.cmpi slt, %61, %66 : vector<128x1xi32>
    %68 = arith.andi %65, %67 : vector<128x1xi1>
    %c0_i32_23 = arith.constant 0 : i32
    %69 = vector.broadcast %c0_i32_23 : i32 to vector<128x1xi32>
    %70 = arith.cmpi sge, %63, %69 : vector<128x1xi32>
    %71 = arith.andi %68, %70 : vector<128x1xi1>
    %c8_i32_24 = arith.constant 8 : i32
    %72 = vector.broadcast %c8_i32_24 : i32 to vector<128x1xi32>
    %73 = arith.cmpi slt, %63, %72 : vector<128x1xi32>
    %74 = arith.andi %71, %73 : vector<128x1xi1>
    %cst_25 = arith.constant 0.000000e+00 : f32
    %75 = vector.shape_cast %74 : vector<128x1xi1> to vector<128x1xi1>
    %76 = vector.broadcast %75 : vector<128x1xi1> to vector<128x32xi1>
    %77 = vector.broadcast %cst_25 : f32 to vector<128x32xf32>
    %78 = arith.select %76, %59, %77 : vector<128x32xi1>, vector<128x32xf32>
    %79 = vector.extract_strided_slice %31 {offsets = [9, 0], sizes = [128, 32], strides = [1, 1]} : vector<160x32xf32> to vector<128x32xf32>
    %c-1_i32_26 = arith.constant -1 : i32
    %80 = vector.broadcast %c-1_i32_26 : i32 to vector<128x1xi32>
    %81 = arith.addi %38, %80 : vector<128x1xi32>
    %c1_i32 = arith.constant 1 : i32
    %82 = vector.broadcast %c1_i32 : i32 to vector<128x1xi32>
    %83 = arith.addi %34, %82 : vector<128x1xi32>
    %c0_i32_27 = arith.constant 0 : i32
    %84 = vector.broadcast %c0_i32_27 : i32 to vector<128x1xi32>
    %85 = arith.cmpi sge, %81, %84 : vector<128x1xi32>
    %c8_i32_28 = arith.constant 8 : i32
    %86 = vector.broadcast %c8_i32_28 : i32 to vector<128x1xi32>
    %87 = arith.cmpi slt, %81, %86 : vector<128x1xi32>
    %88 = arith.andi %85, %87 : vector<128x1xi1>
    %c0_i32_29 = arith.constant 0 : i32
    %89 = vector.broadcast %c0_i32_29 : i32 to vector<128x1xi32>
    %90 = arith.cmpi sge, %83, %89 : vector<128x1xi32>
    %91 = arith.andi %88, %90 : vector<128x1xi1>
    %c8_i32_30 = arith.constant 8 : i32
    %92 = vector.broadcast %c8_i32_30 : i32 to vector<128x1xi32>
    %93 = arith.cmpi slt, %83, %92 : vector<128x1xi32>
    %94 = arith.andi %91, %93 : vector<128x1xi1>
    %cst_31 = arith.constant 0.000000e+00 : f32
    %95 = vector.shape_cast %94 : vector<128x1xi1> to vector<128x1xi1>
    %96 = vector.broadcast %95 : vector<128x1xi1> to vector<128x32xi1>
    %97 = vector.broadcast %cst_31 : f32 to vector<128x32xf32>
    %98 = arith.select %96, %79, %97 : vector<128x32xi1>, vector<128x32xf32>
    %99 = vector.extract_strided_slice %31 {offsets = [15, 0], sizes = [128, 32], strides = [1, 1]} : vector<160x32xf32> to vector<128x32xf32>
    %c0_i32_32 = arith.constant 0 : i32
    %100 = vector.broadcast %c0_i32_32 : i32 to vector<128x1xi32>
    %101 = arith.addi %38, %100 : vector<128x1xi32>
    %c-1_i32_33 = arith.constant -1 : i32
    %102 = vector.broadcast %c-1_i32_33 : i32 to vector<128x1xi32>
    %103 = arith.addi %34, %102 : vector<128x1xi32>
    %c0_i32_34 = arith.constant 0 : i32
    %104 = vector.broadcast %c0_i32_34 : i32 to vector<128x1xi32>
    %105 = arith.cmpi sge, %101, %104 : vector<128x1xi32>
    %c8_i32_35 = arith.constant 8 : i32
    %106 = vector.broadcast %c8_i32_35 : i32 to vector<128x1xi32>
    %107 = arith.cmpi slt, %101, %106 : vector<128x1xi32>
    %108 = arith.andi %105, %107 : vector<128x1xi1>
    %c0_i32_36 = arith.constant 0 : i32
    %109 = vector.broadcast %c0_i32_36 : i32 to vector<128x1xi32>
    %110 = arith.cmpi sge, %103, %109 : vector<128x1xi32>
    %111 = arith.andi %108, %110 : vector<128x1xi1>
    %c8_i32_37 = arith.constant 8 : i32
    %112 = vector.broadcast %c8_i32_37 : i32 to vector<128x1xi32>
    %113 = arith.cmpi slt, %103, %112 : vector<128x1xi32>
    %114 = arith.andi %111, %113 : vector<128x1xi1>
    %cst_38 = arith.constant 0.000000e+00 : f32
    %115 = vector.shape_cast %114 : vector<128x1xi1> to vector<128x1xi1>
    %116 = vector.broadcast %115 : vector<128x1xi1> to vector<128x32xi1>
    %117 = vector.broadcast %cst_38 : f32 to vector<128x32xf32>
    %118 = arith.select %116, %99, %117 : vector<128x32xi1>, vector<128x32xf32>
    %c0_i32_39 = arith.constant 0 : i32
    %119 = vector.broadcast %c0_i32_39 : i32 to vector<128x1xi32>
    %120 = arith.addi %38, %119 : vector<128x1xi32>
    %c0_i32_40 = arith.constant 0 : i32
    %121 = vector.broadcast %c0_i32_40 : i32 to vector<128x1xi32>
    %122 = arith.addi %34, %121 : vector<128x1xi32>
    %c0_i32_41 = arith.constant 0 : i32
    %123 = vector.broadcast %c0_i32_41 : i32 to vector<128x1xi32>
    %124 = arith.cmpi sge, %120, %123 : vector<128x1xi32>
    %c8_i32_42 = arith.constant 8 : i32
    %125 = vector.broadcast %c8_i32_42 : i32 to vector<128x1xi32>
    %126 = arith.cmpi slt, %120, %125 : vector<128x1xi32>
    %127 = arith.andi %124, %126 : vector<128x1xi1>
    %c0_i32_43 = arith.constant 0 : i32
    %128 = vector.broadcast %c0_i32_43 : i32 to vector<128x1xi32>
    %129 = arith.cmpi sge, %122, %128 : vector<128x1xi32>
    %130 = arith.andi %127, %129 : vector<128x1xi1>
    %c8_i32_44 = arith.constant 8 : i32
    %131 = vector.broadcast %c8_i32_44 : i32 to vector<128x1xi32>
    %132 = arith.cmpi slt, %122, %131 : vector<128x1xi32>
    %133 = arith.andi %130, %132 : vector<128x1xi1>
    %cst_45 = arith.constant 0.000000e+00 : f32
    %134 = vector.shape_cast %133 : vector<128x1xi1> to vector<128x1xi1>
    %135 = vector.broadcast %134 : vector<128x1xi1> to vector<128x32xi1>
    %136 = vector.broadcast %cst_45 : f32 to vector<128x32xf32>
    %137 = arith.select %135, %29, %136 : vector<128x32xi1>, vector<128x32xf32>
    %138 = vector.extract_strided_slice %31 {offsets = [17, 0], sizes = [128, 32], strides = [1, 1]} : vector<160x32xf32> to vector<128x32xf32>
    %c0_i32_46 = arith.constant 0 : i32
    %139 = vector.broadcast %c0_i32_46 : i32 to vector<128x1xi32>
    %140 = arith.addi %38, %139 : vector<128x1xi32>
    %c1_i32_47 = arith.constant 1 : i32
    %141 = vector.broadcast %c1_i32_47 : i32 to vector<128x1xi32>
    %142 = arith.addi %34, %141 : vector<128x1xi32>
    %c0_i32_48 = arith.constant 0 : i32
    %143 = vector.broadcast %c0_i32_48 : i32 to vector<128x1xi32>
    %144 = arith.cmpi sge, %140, %143 : vector<128x1xi32>
    %c8_i32_49 = arith.constant 8 : i32
    %145 = vector.broadcast %c8_i32_49 : i32 to vector<128x1xi32>
    %146 = arith.cmpi slt, %140, %145 : vector<128x1xi32>
    %147 = arith.andi %144, %146 : vector<128x1xi1>
    %c0_i32_50 = arith.constant 0 : i32
    %148 = vector.broadcast %c0_i32_50 : i32 to vector<128x1xi32>
    %149 = arith.cmpi sge, %142, %148 : vector<128x1xi32>
    %150 = arith.andi %147, %149 : vector<128x1xi1>
    %c8_i32_51 = arith.constant 8 : i32
    %151 = vector.broadcast %c8_i32_51 : i32 to vector<128x1xi32>
    %152 = arith.cmpi slt, %142, %151 : vector<128x1xi32>
    %153 = arith.andi %150, %152 : vector<128x1xi1>
    %cst_52 = arith.constant 0.000000e+00 : f32
    %154 = vector.shape_cast %153 : vector<128x1xi1> to vector<128x1xi1>
    %155 = vector.broadcast %154 : vector<128x1xi1> to vector<128x32xi1>
    %156 = vector.broadcast %cst_52 : f32 to vector<128x32xf32>
    %157 = arith.select %155, %138, %156 : vector<128x32xi1>, vector<128x32xf32>
    %158 = vector.extract_strided_slice %31 {offsets = [23, 0], sizes = [128, 32], strides = [1, 1]} : vector<160x32xf32> to vector<128x32xf32>
    %c1_i32_53 = arith.constant 1 : i32
    %159 = vector.broadcast %c1_i32_53 : i32 to vector<128x1xi32>
    %160 = arith.addi %38, %159 : vector<128x1xi32>
    %c-1_i32_54 = arith.constant -1 : i32
    %161 = vector.broadcast %c-1_i32_54 : i32 to vector<128x1xi32>
    %162 = arith.addi %34, %161 : vector<128x1xi32>
    %c0_i32_55 = arith.constant 0 : i32
    %163 = vector.broadcast %c0_i32_55 : i32 to vector<128x1xi32>
    %164 = arith.cmpi sge, %160, %163 : vector<128x1xi32>
    %c8_i32_56 = arith.constant 8 : i32
    %165 = vector.broadcast %c8_i32_56 : i32 to vector<128x1xi32>
    %166 = arith.cmpi slt, %160, %165 : vector<128x1xi32>
    %167 = arith.andi %164, %166 : vector<128x1xi1>
    %c0_i32_57 = arith.constant 0 : i32
    %168 = vector.broadcast %c0_i32_57 : i32 to vector<128x1xi32>
    %169 = arith.cmpi sge, %162, %168 : vector<128x1xi32>
    %170 = arith.andi %167, %169 : vector<128x1xi1>
    %c8_i32_58 = arith.constant 8 : i32
    %171 = vector.broadcast %c8_i32_58 : i32 to vector<128x1xi32>
    %172 = arith.cmpi slt, %162, %171 : vector<128x1xi32>
    %173 = arith.andi %170, %172 : vector<128x1xi1>
    %cst_59 = arith.constant 0.000000e+00 : f32
    %174 = vector.shape_cast %173 : vector<128x1xi1> to vector<128x1xi1>
    %175 = vector.broadcast %174 : vector<128x1xi1> to vector<128x32xi1>
    %176 = vector.broadcast %cst_59 : f32 to vector<128x32xf32>
    %177 = arith.select %175, %158, %176 : vector<128x32xi1>, vector<128x32xf32>
    %178 = vector.extract_strided_slice %31 {offsets = [24, 0], sizes = [128, 32], strides = [1, 1]} : vector<160x32xf32> to vector<128x32xf32>
    %c1_i32_60 = arith.constant 1 : i32
    %179 = vector.broadcast %c1_i32_60 : i32 to vector<128x1xi32>
    %180 = arith.addi %38, %179 : vector<128x1xi32>
    %c0_i32_61 = arith.constant 0 : i32
    %181 = vector.broadcast %c0_i32_61 : i32 to vector<128x1xi32>
    %182 = arith.addi %34, %181 : vector<128x1xi32>
    %c0_i32_62 = arith.constant 0 : i32
    %183 = vector.broadcast %c0_i32_62 : i32 to vector<128x1xi32>
    %184 = arith.cmpi sge, %180, %183 : vector<128x1xi32>
    %c8_i32_63 = arith.constant 8 : i32
    %185 = vector.broadcast %c8_i32_63 : i32 to vector<128x1xi32>
    %186 = arith.cmpi slt, %180, %185 : vector<128x1xi32>
    %187 = arith.andi %184, %186 : vector<128x1xi1>
    %c0_i32_64 = arith.constant 0 : i32
    %188 = vector.broadcast %c0_i32_64 : i32 to vector<128x1xi32>
    %189 = arith.cmpi sge, %182, %188 : vector<128x1xi32>
    %190 = arith.andi %187, %189 : vector<128x1xi1>
    %c8_i32_65 = arith.constant 8 : i32
    %191 = vector.broadcast %c8_i32_65 : i32 to vector<128x1xi32>
    %192 = arith.cmpi slt, %182, %191 : vector<128x1xi32>
    %193 = arith.andi %190, %192 : vector<128x1xi1>
    %cst_66 = arith.constant 0.000000e+00 : f32
    %194 = vector.shape_cast %193 : vector<128x1xi1> to vector<128x1xi1>
    %195 = vector.broadcast %194 : vector<128x1xi1> to vector<128x32xi1>
    %196 = vector.broadcast %cst_66 : f32 to vector<128x32xf32>
    %197 = arith.select %195, %178, %196 : vector<128x32xi1>, vector<128x32xf32>
    %198 = vector.extract_strided_slice %31 {offsets = [25, 0], sizes = [128, 32], strides = [1, 1]} : vector<160x32xf32> to vector<128x32xf32>
    %c1_i32_67 = arith.constant 1 : i32
    %199 = vector.broadcast %c1_i32_67 : i32 to vector<128x1xi32>
    %200 = arith.addi %38, %199 : vector<128x1xi32>
    %c1_i32_68 = arith.constant 1 : i32
    %201 = vector.broadcast %c1_i32_68 : i32 to vector<128x1xi32>
    %202 = arith.addi %34, %201 : vector<128x1xi32>
    %c0_i32_69 = arith.constant 0 : i32
    %203 = vector.broadcast %c0_i32_69 : i32 to vector<128x1xi32>
    %204 = arith.cmpi sge, %200, %203 : vector<128x1xi32>
    %c8_i32_70 = arith.constant 8 : i32
    %205 = vector.broadcast %c8_i32_70 : i32 to vector<128x1xi32>
    %206 = arith.cmpi slt, %200, %205 : vector<128x1xi32>
    %207 = arith.andi %204, %206 : vector<128x1xi1>
    %c0_i32_71 = arith.constant 0 : i32
    %208 = vector.broadcast %c0_i32_71 : i32 to vector<128x1xi32>
    %209 = arith.cmpi sge, %202, %208 : vector<128x1xi32>
    %210 = arith.andi %207, %209 : vector<128x1xi1>
    %c8_i32_72 = arith.constant 8 : i32
    %211 = vector.broadcast %c8_i32_72 : i32 to vector<128x1xi32>
    %212 = arith.cmpi slt, %202, %211 : vector<128x1xi32>
    %213 = arith.andi %210, %212 : vector<128x1xi1>
    %cst_73 = arith.constant 0.000000e+00 : f32
    %214 = vector.shape_cast %213 : vector<128x1xi1> to vector<128x1xi1>
    %215 = vector.broadcast %214 : vector<128x1xi1> to vector<128x32xi1>
    %216 = vector.broadcast %cst_73 : f32 to vector<128x32xf32>
    %217 = arith.select %215, %198, %216 : vector<128x32xi1>, vector<128x32xf32>
    %218 = tpu.concatenate %58, %78, %98, %118, %137, %157, %177, %197, %217 in 1 : vector<128x32xf32>, vector<128x32xf32>, vector<128x32xf32>, vector<128x32xf32>, vector<128x32xf32>, vector<128x32xf32>, vector<128x32xf32>, vector<128x32xf32>, vector<128x32xf32> -> vector<128x288xf32>
    %c0_74 = arith.constant 0 : index
    %c0_75 = arith.constant 0 : index
    %219 = vector.load %arg4[%c0_74, %c0_75] : memref<288x64xf32, #tpu.memory_space<vmem>>, vector<288x64xf32>
    %cst_76 = arith.constant dense<0.000000e+00> : vector<128x64xf32>
    %220 = tpu.matmul %218, %219, %cst_76 {dimension_numbers = #tpu.dot_dimension_numbers<[1], [0], [0], [1], [0, 0, 1, 1], [], []>} : vector<128x288xf32>, vector<288x64xf32>, vector<128x64xf32> -> vector<128x64xf32>
    %cst_77 = arith.constant dense<0.000000e+00> : vector<64xf32>
    %221 = vector.multi_reduction <add>, %220, %cst_77 [0] : vector<128x64xf32> to vector<64xf32>
    %222 = vector.shape_cast %221 : vector<64xf32> to vector<1x64xf32>
    %cst_78 = arith.constant 1.280000e+02 : f32
    %223 = vector.broadcast %cst_78 : f32 to vector<1x64xf32>
    %224 = arith.divf %222, %223 : vector<1x64xf32>
    %225 = arith.mulf %220, %220 : vector<128x64xf32>
    %cst_79 = arith.constant dense<0.000000e+00> : vector<64xf32>
    %226 = vector.multi_reduction <add>, %225, %cst_79 [0] : vector<128x64xf32> to vector<64xf32>
    %227 = vector.shape_cast %226 : vector<64xf32> to vector<1x64xf32>
    %cst_80 = arith.constant 1.280000e+02 : f32
    %228 = vector.broadcast %cst_80 : f32 to vector<1x64xf32>
    %229 = arith.divf %227, %228 : vector<1x64xf32>
    %230 = arith.mulf %224, %224 : vector<1x64xf32>
    %231 = arith.subf %229, %230 : vector<1x64xf32>
    %cst_81 = arith.constant 0.000000e+00 : f32
    %232 = vector.broadcast %cst_81 : f32 to vector<1x64xf32>
    %233 = arith.maximumf %231, %232 : vector<1x64xf32>
    %c0_82 = arith.constant 0 : index
    %c0_83 = arith.constant 0 : index
    %234 = vector.load %arg5[%c0_82, %c0_83] : memref<1x64xf32, #tpu.memory_space<vmem>>, vector<1x64xf32>
    %cst_84 = arith.constant 9.99999974E-6 : f32
    %235 = vector.broadcast %cst_84 : f32 to vector<1x64xf32>
    %236 = arith.addf %233, %235 : vector<1x64xf32>
    %237 = math.rsqrt %236 : vector<1x64xf32>
    %238 = arith.mulf %234, %237 : vector<1x64xf32>
    %239 = vector.broadcast %238 : vector<1x64xf32> to vector<128x64xf32>
    %240 = arith.mulf %220, %239 : vector<128x64xf32>
    %c0_85 = arith.constant 0 : index
    %c0_86 = arith.constant 0 : index
    %241 = vector.load %arg6[%c0_85, %c0_86] : memref<1x64xf32, #tpu.memory_space<vmem>>, vector<1x64xf32>
    %242 = arith.mulf %224, %238 : vector<1x64xf32>
    %243 = arith.subf %241, %242 : vector<1x64xf32>
    %244 = vector.broadcast %243 : vector<1x64xf32> to vector<128x64xf32>
    %245 = arith.addf %240, %244 : vector<128x64xf32>
    %cst_87 = arith.constant 0.000000e+00 : f32
    %246 = vector.broadcast %cst_87 : f32 to vector<128x64xf32>
    %247 = arith.maximumf %245, %246 : vector<128x64xf32>
    %248 = vector.shape_cast %247 : vector<128x64xf32> to vector<2x64x64xf32>
    %cst_88 = arith.constant dense<0xFF800000> : vector<2x64xf32>
    %249 = vector.multi_reduction <maximumf>, %248, %cst_88 [1] : vector<2x64x64xf32> to vector<2x64xf32>
    %c0_89 = arith.constant 0 : index
    %c0_90 = arith.constant 0 : index
    %250 = vector.load %arg7[%c0_89, %c0_90] : memref<64x10xf32, #tpu.memory_space<vmem>>, vector<64x10xf32>
    %cst_91 = arith.constant dense<0.000000e+00> : vector<2x10xf32>
    %251 = tpu.matmul %249, %250, %cst_91 {dimension_numbers = #tpu.dot_dimension_numbers<[1], [0], [0], [1], [0, 0, 1, 1], [], []>} : vector<2x64xf32>, vector<64x10xf32>, vector<2x10xf32> -> vector<2x10xf32>
    %c0_92 = arith.constant 0 : index
    %c0_93 = arith.constant 0 : index
    %252 = vector.load %arg8[%c0_92, %c0_93] : memref<1x10xf32, #tpu.memory_space<vmem>>, vector<1x10xf32>
    %253 = vector.broadcast %252 : vector<1x10xf32> to vector<2x10xf32>
    %254 = arith.addf %251, %253 : vector<2x10xf32>
    %c0_94 = arith.constant 0 : index
    %c0_95 = arith.constant 0 : index
    %255 = vector.load %arg9[%c0_94, %c0_95] : memref<2x10xf32, #tpu.memory_space<vmem>>, vector<2x10xf32>
    tpu.vector_store %arg9[%c0_94, %c0_95], %254 {strides = array<i32>} : memref<2x10xf32, #tpu.memory_space<vmem>>, vector<2x10xf32>,
    return
  }
}

</mosaic_0001>

<bundles_post_ra>
// kernel: cnn_forward.1
= control target key start
LH: loop header
LB: loop body
LE: loop exit
PB: predicated region body
PF: predicated region fallthrough
CT: control target
= control target key end

     0   :  { %vm6533_vm0 = vcmask 261120   ;;  %s6497_s0 = inlined_call_operand.vmem [shape: f32[128,32], index: 0, kind: input, shape index: {}]   ;;  %s6498_s1 = inlined_call_operand.vmem [shape: f32[32,32], index: 1, kind: input, shape index: {}]   ;;  %s6499_s2 = inlined_call_operand.vmem [shape: f32[1,32], index: 2, kind: input, shape index: {}]   ;;  %s6500_s3 = inlined_call_operand.vmem [shape: f32[1,32], index: 3, kind: input, shape index: {}]   ;;  %s6501_s4 = inlined_call_operand.vmem [shape: f32[288,64], index: 4, kind: input, shape index: {}]   ;;  %s6502_s5 = inlined_call_operand.vmem [shape: f32[1,64], index: 5, kind: input, shape index: {}]   ;;  %s6503_s6 = inlined_call_operand.vmem [shape: f32[1,64], index: 6, kind: input, shape index: {}]   ;;  %s6504_s7 = inlined_call_operand.vmem [shape: f32[64,10], index: 7, kind: input, shape index: {}]   ;;  %s6505_s8 = inlined_call_operand.vmem [shape: f32[1,10], index: 8, kind: input, shape index: {}]   ;;  %s6506_s9 = inlined_call_operand.hbm [shape: f32[2,10], index: 9, kind: output, shape index: {}]  }
   0x1   :  { %v49_v0 = vld [vmem:[%s6498_s1] sm:$0xff]  ;;  %v50_v1 = vld [vmem:[%s6498_s1 + $0x8] sm:$0xff]  ;;  %v51_v2 = vld [vmem:[%s6498_s1 + $0x10] sm:$0xff] }
   0x2   :  { %v3025_v3 = vpack.c.bf16 %v50_v1, %v49_v0  ;;  %v52_v4 = vld [vmem:[%s6498_s1 + $0x18] sm:$0xff]  ;;  %v33_v5 = vld [vmem:[%s6497_s0] sm:$0xff] }
   0x3   :  { %v3029_v6 = vpack.c.bf16 %v52_v4, %v51_v2  ;;  %2950 = vmatprep.mubr.msk.f32.mxu0 %vm6533_vm0, %v33_v5 }
   0x4   :  { %3026 = vmatprep.subr.bf16.mxu0 %v3025_v3 }
   0x5   :  { %3028 = vmatpush3.bf16.msra.mxu0 %v3025_v3 }
   0x6   :  { %3030 = vmatprep.subr.bf16.mxu0 %v3029_v6 }
   0x7   :  { %14 = vsyncpa [#allocation3], 0  ;;  %v34_v7 = vld [vmem:[%s6497_s0 + $0x8] sm:$0xff]  ;;  %v35_v8 = vld [vmem:[%s6497_s0 + $0x10] sm:$0xff]  ;;  %v348_v22 = vlaneseq  ;;  %v6756_v29 = vmov 0  ;;  %v6759_v30 = vmov 0 }
   0x8   :  { %v36_v9 = vld [vmem:[%s6497_s0 + $0x18] sm:$0xff]  ;;  %v37_v10 = vld [vmem:[%s6497_s0 + $0x20] sm:$0xff]  ;;  %v38_v11 = vld [vmem:[%s6497_s0 + $0x28] sm:$0xff]  ;;  %s3378_s16 = smov 96   ;;  %s3379_s17 = smov 64  }
   0x9   :  { %3032 = vmatpush3.bf16.msra.mxu0 %v3029_v6  ;;  %v39_v12 = vld [vmem:[%s6497_s0 + $0x30] sm:$0xff]  ;;  %v40_v13 = vld [vmem:[%s6497_s0 + $0x38] sm:$0xff]  ;;  %v41_v14 = vld [vmem:[%s6497_s0 + $0x40] sm:$0xff]  ;;  %v3509_v23 = vshrl.u32 %v348_v22, 7  ;;  %s3382_s27 = smov [#allocation2]  }
   0xa   :  { %v42_v15 = vld [vmem:[%s6497_s0 + $0x48] sm:$0xff]  ;;  %v43_v16 = vld [vmem:[%s6497_s0 + $0x50] sm:$0xff]  ;;  %v44_v17 = vld [vmem:[%s6497_s0 + $0x58] sm:$0xff]  ;;  %s2771_s28 = sshll.u32 %s3382_s27, 4  ;;  %s2772_s28 = int_to_ptr.vmem [resolvable:$true] %s2771_s28 }
   0xb   :  { %v45_v18 = vld [vmem:[%s6497_s0 + $0x60] sm:$0xff]  ;;  %v46_v19 = vld [vmem:[%s6497_s0 + $0x68] sm:$0xff]  ;;  %v47_v20 = vld [vmem:[%s6497_s0 + $0x70] sm:$0xff]  ;;  %v443_v24 = vand.u32 63, %v3509_v23  ;;  %v427_v26 = vand.u32 7, %v3509_v23  ;;  %s3352_s29 = scalar_lea.vmem %s2772_s28, 32  ;;  %p3357_p1 = scmp.lt.s32.totalorder %s2772_s28, %s2772_s28 }
   0xc   :  { %2951 = vmatmul.mubr.msk.f32.vlgmr.msra.gmra.mrb[0].mxu0 %vm6533_vm0, %v34_v7  ;;  %v48_v21 = vld [vmem:[%s6497_s0 + $0x78] sm:$0xff]  ;;  %p3353_p0 = scmp.ne.s32.totalorder %s2772_s28, %s3352_s29  ;;  %p3358_p2 = scmp.lt.s32.totalorder %s3352_s29, %s3352_s29 }
   0xd   :  { %2953 = vmatprep.mubr.msk.f32.mxu0 %vm6533_vm0, %v35_v8  ;;  %v3512_v25 = vshra.s32 %v443_v24, 3  ;;  %v3518_v28 = vadd.s32 4294967295, %v427_v26 }
   0xe   :  { %p3359_p3 = por %p3358_p2, %p3357_p1 }
   0xf   :  { %v475_v27 = vadd.s32 4294967295, %v3512_v25  ;;  %6755 = vst [vmem:[#allocation5_spill] sm:$0xff] %v3518_v28  ;;  %vm6534_vm4 = vcmp.ge.s32.totalorder %v3518_v28, 0 }
  0x10   :  { %2954 = vmatmul.mubr.msk.f32.gmra.mrb[2].mxu0 %vm6533_vm0, %v36_v9  ;;  %p3360_p4 = pnand %p3359_p3, %p3353_p0 }
  0x11   :  { %2956 = vmatprep.mubr.msk.f32.mxu0 %vm6533_vm0, %v37_v10  ;;  %vm507_vm1 = vcmp.ge.s32.totalorder %v475_v27, 0  ;;  %vm523_vm2 = vcmp.lt.s32.totalorder %v475_v27, 8 }
  0x12   :  { %vm3520_vm3 = vmand %vm507_vm1, %vm523_vm2 }
  0x13   :  { %v6757_v29 = vsel %vm3520_vm3, 4294967295, %v6756_v29  ;;  %vm3529_vm5 = vmand %vm3520_vm3, %vm6534_vm4 }
  0x14   :  { %2957 = vmatmul.mubr.msk.f32.gmra.mrb[4].mxu0 %vm6533_vm0, %v38_v11  ;;  %6758 = vst [vmem:[#allocation6_spill] sm:$0xff] %v6757_v29  ;;  %v6760_v30 = vsel %vm3529_vm5, 4294967295, %v6759_v30 }
  0x15   :  { %2959 = vmatprep.mubr.msk.f32.mxu0 %vm6533_vm0, %v39_v12  ;;  %6761 = vst [vmem:[#allocation7_spill] sm:$0xff] %v6760_v30  ;;  %v2095_v30 = vld [vmem:[%s6501_s4 + $0x8] sm:$0xff] }
  0x18   :  { %2960 = vmatmul.mubr.msk.f32.gmra.mrb[6].mxu0 %vm6533_vm0, %v40_v13 }
  0x19   :  { %2962 = vmatprep.mubr.msk.f32.mxu0 %vm6533_vm0, %v41_v14 }
  0x1c   :  { %2963 = vmatmul.mubr.msk.f32.gmra.mrb[8].mxu0 %vm6533_vm0, %v42_v15 }
  0x1d   :  { %2965 = vmatprep.mubr.msk.f32.mxu0 %vm6533_vm0, %v43_v16 }
  0x20   :  { %2966 = vmatmul.mubr.msk.f32.gmra.mrb[10].mxu0 %vm6533_vm0, %v44_v17 }
  0x21   :  { %2968 = vmatprep.mubr.msk.f32.mxu0 %vm6533_vm0, %v45_v18 }
  0x24   :  { %2969 = vmatmul.mubr.msk.f32.gmra.mrb[12].mxu0 %vm6533_vm0, %v46_v19 }
  0x25   :  { %2971 = vmatprep.mubr.msk.f32.mxu0 %vm6533_vm0, %v47_v20 }
  0x28   :  { %2972 = vmatmul.mubr.msk.f32.gmra.mrb[14].mxu0 %vm6533_vm0, %v48_v21 }
  0xdf   :  { %v3533_v31 = vpop.f32.mrb[0].mxu0 }
  0xe0   :  { %v248_v32 = vsel %vm6533_vm0, %v3533_v31, 0.0  ;;  %v287_v33 = vmul.f32 %v3533_v31, %v3533_v31  ;;  %v3539_v34 = vpop.f32.mrb[1].mxu0 }
  0xe1   :  { %v247_v35 = vsel %vm6533_vm0, %v3539_v34, 0.0  ;;  %v286_v36 = vmul.f32 %v3539_v34, %v3539_v34 }
  0xe2   :  { %v303_v37 = vsel %vm6533_vm0, %v287_v33, 0.0  ;;  %v249_v38 = vadd.f32 %v248_v32, %v247_v35 }
  0xe3   :  { %v302_v39 = vsel %vm6533_vm0, %v286_v36, 0.0  ;;  %v3547_v40 = vpop.f32.mrb[2].mxu0 }
  0xe4   :  { %v304_v41 = vadd.f32 %v303_v37, %v302_v39  ;;  %v3549_v42 = vpop.f32.mrb[3].mxu0  ;;  %v289_v43 = vmul.f32 %v3547_v40, %v3547_v40  ;;  %v252_v47 = vsel %vm6533_vm0, %v3547_v40, 0.0 }
  0xe5   :  { %v250_v44 = vsel %vm6533_vm0, %v3549_v42, 0.0  ;;  %v288_v45 = vmul.f32 %v3549_v42, %v3549_v42 }
  0xe6   :  { %v251_v46 = vadd.f32 %v250_v44, %v249_v38  ;;  %v307_v53 = vsel %vm6533_vm0, %v289_v43, 0.0 }
  0xe7   :  { %v305_v48 = vsel %vm6533_vm0, %v288_v45, 0.0  ;;  %v3560_v49 = vpop.f32.mrb[4].mxu0 }
  0xe8   :  { %v306_v50 = vadd.f32 %v305_v48, %v304_v41  ;;  %v3562_v51 = vpop.f32.mrb[5].mxu0  ;;  %v253_v52 = vadd.f32 %v252_v47, %v251_v46  ;;  %v291_v54 = vmul.f32 %v3560_v49, %v3560_v49  ;;  %v256_v59 = vsel %vm6533_vm0, %v3560_v49, 0.0 }
  0xe9   :  { %v254_v55 = vsel %vm6533_vm0, %v3562_v51, 0.0  ;;  %v290_v56 = vmul.f32 %v3562_v51, %v3562_v51  ;;  %v3621_v47 = vadd.s32 48, %v3509_v23  ;;  %v3624_v48 = vadd.s32 8, %v3509_v23 }
  0xea   :  { %v255_v57 = vadd.f32 %v254_v55, %v253_v52  ;;  %v308_v58 = vadd.f32 %v307_v53, %v306_v50  ;;  %v311_v1 = vsel %vm6533_vm0, %v291_v54, 0.0 }
  0xeb   :  { %v309_v60 = vsel %vm6533_vm0, %v290_v56, 0.0  ;;  %v3574_v61 = vpop.f32.mrb[6].mxu0 }
  0xec   :  { %v310_v62 = vadd.f32 %v309_v60, %v308_v58  ;;  %v3576_v63 = vpop.f32.mrb[7].mxu0  ;;  %v257_v0 = vadd.f32 %v256_v59, %v255_v57  ;;  %v293_v2 = vmul.f32 %v3574_v61, %v3574_v61  ;;  %v260_v7 = vsel %vm6533_vm0, %v3574_v61, 0.0 }
  0xed   :  { %v258_v3 = vsel %vm6533_vm0, %v3576_v63, 0.0  ;;  %v292_v4 = vmul.f32 %v3576_v63, %v3576_v63  ;;  %v3639_v60 = vadd.s32 56, %v3509_v23 }
  0xee   :  { %v259_v5 = vadd.f32 %v258_v3, %v257_v0  ;;  %v312_v6 = vadd.f32 %v311_v1, %v310_v62  ;;  %v315_v13 = vsel %vm6533_vm0, %v293_v2, 0.0  ;;  %v449_v2 = vand.u32 63, %v3621_v47 }
  0xef   :  { %v313_v8 = vsel %vm6533_vm0, %v292_v4, 0.0  ;;  %v3588_v9 = vpop.f32.mrb[8].mxu0  ;;  %v444_v3 = vand.u32 63, %v3624_v48 }
  0xf0   :  { %6762 = vst [vmem:[#allocation8_spill] sm:$0xff] %v3588_v9  ;;  %v314_v10 = vadd.f32 %v313_v8, %v312_v6  ;;  %v3590_v11 = vpop.f32.mrb[9].mxu0  ;;  %v261_v12 = vadd.f32 %v260_v7, %v259_v5  ;;  %v295_v14 = vmul.f32 %v3588_v9, %v3588_v9  ;;  %v264_v19 = vsel %vm6533_vm0, %v3588_v9, 0.0  ;;  %v2101_v9 = vld [vmem:[%s6501_s4 + $0x38] sm:$0xff] }
  0xf1   :  { %v262_v15 = vsel %vm6533_vm0, %v3590_v11, 0.0  ;;  %v294_v16 = vmul.f32 %v3590_v11, %v3590_v11 }
  0xf2   :  { %v263_v17 = vadd.f32 %v262_v15, %v261_v12  ;;  %v316_v18 = vadd.f32 %v315_v13, %v314_v10  ;;  %v319_v32 = vsel %vm6533_vm0, %v295_v14, 0.0  ;;  %v413_v12 = vadd.s32 16, %v3509_v23 }
  0xf3   :  { %v317_v20 = vsel %vm6533_vm0, %v294_v16, 0.0  ;;  %v3602_v21 = vpop.f32.mrb[10].mxu0  ;;  %v450_v15 = vand.u32 63, %v3639_v60 }
  0xf4   :  { %6763 = vst [vmem:[#allocation9_spill] sm:$0xff] %v3602_v21  ;;  %v318_v22 = vadd.f32 %v317_v20, %v316_v18  ;;  %v3604_v24 = vpop.f32.mrb[11].mxu0  ;;  %v265_v27 = vadd.f32 %v264_v19, %v263_v17  ;;  %v297_v33 = vmul.f32 %v3602_v21, %v3602_v21  ;;  %v268_v39 = vsel %vm6533_vm0, %v3602_v21, 0.0 }
  0xf5   :  { %6764 = vst [vmem:[#allocation10_spill] sm:$0xff] %v3604_v24  ;;  %v266_v35 = vsel %vm6533_vm0, %v3604_v24, 0.0  ;;  %v296_v36 = vmul.f32 %v3604_v24, %v3604_v24  ;;  %v3657_v18 = vshra.s32 %v449_v2, 3  ;;  %v3660_v20 = vshra.s32 %v444_v3, 3 }
  0xf6   :  { %v267_v37 = vadd.f32 %v266_v35, %v265_v27  ;;  %v320_v38 = vadd.f32 %v319_v32, %v318_v22  ;;  %v323_v50 = vsel %vm6533_vm0, %v297_v33, 0.0  ;;  %v414_v22 = vadd.s32 24, %v3509_v23 }
  0xf7   :  { %v321_v41 = vsel %vm6533_vm0, %v296_v36, 0.0  ;;  %v3616_v43 = vpop.f32.mrb[12].mxu0  ;;  %6768 = vst [vmem:[#allocation14_spill] sm:$0xff] %v3657_v18  ;;  %6769 = vst [vmem:[#allocation15_spill] sm:$0xff] %v3660_v20  ;;  %v415_v27 = vadd.s32 32, %v3509_v23  ;;  %v445_v35 = vand.u32 63, %v413_v12 }
  0xf8   :  { %6765 = vst [vmem:[#allocation11_spill] sm:$0xff] %v3616_v43  ;;  %v322_v44 = vadd.f32 %v321_v41, %v320_v38  ;;  %v3618_v45 = vpop.f32.mrb[13].mxu0  ;;  %v269_v46 = vadd.f32 %v268_v39, %v267_v37  ;;  %v299_v52 = vmul.f32 %v3616_v43, %v3616_v43  ;;  %v272_v57 = vsel %vm6533_vm0, %v3616_v43, 0.0 }
  0xf9   :  { %6766 = vst [vmem:[#allocation12_spill] sm:$0xff] %v3618_v45  ;;  %v270_v53 = vsel %vm6533_vm0, %v3618_v45, 0.0  ;;  %v298_v54 = vmul.f32 %v3618_v45, %v3618_v45  ;;  %v3665_v36 = vsub.s32 0, %v3509_v23  ;;  %v433_v37 = vand.u32 7, %v3621_v47 }
  0xfa   :  { %v271_v55 = vadd.f32 %v270_v53, %v269_v46  ;;  %v324_v56 = vadd.f32 %v323_v50, %v322_v44  ;;  %v327_v4 = vsel %vm6533_vm0, %v299_v52, 0.0  ;;  %v3668_v38 = vshra.s32 %v450_v15, 3 }
  0xfb   :  { %v325_v58 = vsel %vm6533_vm0, %v298_v54, 0.0  ;;  %v3636_v59 = vpop.f32.mrb[14].mxu0  ;;  %6770 = vst [vmem:[#allocation16_spill] sm:$0xff] %v3665_v36  ;;  %v3671_v44 = vadd.s32 4294967295, %v3657_v18  ;;  %v3674_v46 = vadd.s32 1, %v3512_v25  ;;  %v3677_v50 = vadd.s32 1, %v3657_v18 }
  0xfc   :  { %6767 = vst [vmem:[#allocation13_spill] sm:$0xff] %v3636_v59  ;;  %v326_v62 = vadd.f32 %v325_v58, %v324_v56  ;;  %v3641_v0 = vpop.f32.mrb[15].mxu0  ;;  %v273_v1 = vadd.f32 %v272_v57, %v271_v55  ;;  %v301_v5 = vmul.f32 %v3636_v59, %v3636_v59  ;;  %v276_v13 = vsel %vm6533_vm0, %v3636_v59, 0.0  ;;  %6771 = vst [vmem:[#allocation17_spill] sm:$0xff] %v3668_v38 }
  0xfd   :  { %v274_v6 = vsel %vm6533_vm0, %v3641_v0, 0.0  ;;  %v300_v7 = vmul.f32 %v3641_v0, %v3641_v0  ;;  %v3680_v52 = vadd.s32 1, %v3660_v20  ;;  %v446_v53 = vand.u32 63, %v414_v22 }
  0xfe   :  { %v275_v8 = vadd.f32 %v274_v6, %v273_v1  ;;  %v328_v10 = vadd.f32 %v327_v4, %v326_v62  ;;  %v331_v19 = vsel %vm6533_vm0, %v301_v5, 0.0  ;;  %v447_v54 = vand.u32 63, %v415_v27 }
  0xff   :  { %v329_v14 = vsel %vm6533_vm0, %v300_v7, 0.0  ;;  %v3682_v56 = vshra.s32 %v445_v35, 3  ;;  %v416_v57 = vadd.s32 40, %v3509_v23  ;;  %v3685_v58 = vadd.s32 4294967295, %v433_v37 }
 0x100   :  { %v277_v16 = vadd.f32 %v276_v13, %v275_v8  ;;  %v330_v17 = vadd.f32 %v329_v14, %v328_v10  ;;  %v3688_v62 = vadd.s32 1, %v3668_v38  ;;  %v429_v1 = vand.u32 7, %v413_v12 }
 0x101   :  { %6772 = vst [vmem:[#allocation18_spill] sm:$0xff] %v3685_v58  ;;  %v3691_v4 = vadd.s32 4294967295, %v3660_v20  ;;  %v430_v5 = vand.u32 7, %v414_v22  ;;  %v3694_v6 = vadd.s32 4294967295, %v3668_v38  ;;  %v3696_v7 = vshra.s32 %v446_v53, 3  ;;  %v2115_v58 = vld [vmem:[%s6501_s4 + $0xa8] sm:$0xff] }
 0x102   :  { %v278_v32 = vrot.slane %v277_v16, 4  ;;  %v332_v33 = vadd.f32 %v331_v19, %v330_v17  ;;  %v431_v8 = vand.u32 7, %v415_v27  ;;  %v3698_v10 = vshra.s32 %v447_v54, 3 }
 0x103   :  { %v3701_v15 = vadd.s32 4294967295, %v3682_v56  ;;  %v448_v12 = vand.u32 63, %v416_v57  ;;  %v3705_v17 = vadd.s32 4294967295, %v429_v1  ;;  %v3708_v19 = vadd.s32 1, %v3682_v56 }
 0x104   :  { %v279_v39 = vadd.f32 %v278_v32, %v277_v16  ;;  %v333_v41 = vrot.slane %v332_v33, 4  ;;  %v3703_v16 = vadd.s32 1, %v429_v1  ;;  %v432_v22 = vand.u32 7, %v416_v57 }
 0x105   :  { %6774 = vst [vmem:[#allocation20_spill] sm:$0xff] %v3705_v17  ;;  %v3710_v35 = vadd.s32 1, %v430_v5  ;;  %v3712_v27 = vadd.s32 4294967295, %v430_v5  ;;  %v3721_v53 = vadd.s32 4294967295, %v3698_v10  ;;  %v3723_v54 = vadd.s32 1, %v431_v8 }
 0x106   :  { %v280_v55 = vrot.slane %v279_v39, 2  ;;  %v334_v47 = vadd.f32 %v333_v41, %v332_v33  ;;  %6773 = vst [vmem:[#allocation19_spill] sm:$0xff] %v3703_v16  ;;  %v3718_v41 = vadd.s32 1, %v3696_v7  ;;  %v3727_v57 = vadd.s32 4294967295, %v431_v8  ;;  %v2111_v8 = vld [vmem:[%s6501_s4 + $0x88] sm:$0xff] }
 0x107   :  { %6775 = vst [vmem:[#allocation21_spill] sm:$0xff] %v3710_v35  ;;  %6776 = vst [vmem:[#allocation22_spill] sm:$0xff] %v3712_v27  ;;  %v3729_v1 = vshra.s32 %v448_v12, 3  ;;  %v3736_v5 = vadd.s32 4294967295, %v432_v22  ;;  %v3759_v59 = vadd.s32 1, %v433_v37  ;;  %v428_v43 = vand.u32 7, %v3624_v48 }
 0x108   :  { %v281_v2 = vadd.f32 %v280_v55, %v279_v39  ;;  %v335_v3 = vrot.slane %v334_v47, 2  ;;  %v3715_v39 = vadd.s32 4294967295, %v3696_v7  ;;  %6777 = vst [vmem:[#allocation23_spill] sm:$0xff] %v3723_v54  ;;  %6778 = vst [vmem:[#allocation24_spill] sm:$0xff] %v3727_v57  ;;  %v3775_v37 = vadd.s32 80, %v3509_v23 }
 0x109   :  { %6780 = vst [vmem:[#allocation26_spill] sm:$0xff] %v3736_v5  ;;  %6782 = vst [vmem:[#allocation28_spill] sm:$0xff] %v3759_v59  ;;  %v3772_v38 = vadd.s32 4294967295, %v3729_v1  ;;  %v3784_v20 = vadd.s32 1, %v3729_v1  ;;  %vm513_vm6 = vcmp.ge.s32.totalorder %v3671_v44, 0  ;;  %vm529_vm7 = vcmp.lt.s32.totalorder %v3671_v44, 8 }
 0x10a   :  { %v282_v13 = vrot.slane %v281_v2, 1  ;;  %v336_v14 = vadd.f32 %v335_v3, %v334_v47  ;;  %v3734_v3 = vadd.s32 1, %v432_v22  ;;  %vm1327_vm8 = vcmp.ge.s32.totalorder %v3674_v46, 0  ;;  %vm3969_vm1 = vmand %vm513_vm6, %vm529_vm7 }
 0x10b   :  { %vm1333_vm9 = vcmp.ge.s32.totalorder %v3677_v50, 0  ;;  %vm1343_vm10 = vcmp.lt.s32.totalorder %v3674_v46, 8  ;;  %vm1349_vm11 = vcmp.lt.s32.totalorder %v3677_v50, 8  ;;  %vm1328_vm12 = vcmp.ge.s32.totalorder %v3680_v52, 0 }
 0x10c   :  { %v283_v32 = vadd.f32 %v282_v13, %v281_v2  ;;  %v337_v33 = vrot.slane %v336_v14, 1  ;;  %v3732_v2 = vadd.s32 1, %v3698_v10  ;;  %6779 = vst [vmem:[#allocation25_spill] sm:$0xff] %v3734_v3  ;;  %v3740_v13 = vadd.s32 1, %v427_v26  ;;  %v2094_v26 = vld [vmem:[%s6501_s4] sm:$0xff]  ;;  %vm3977_vm0 = vmand %vm1327_vm8, %vm1343_vm10 }
 0x10d   :  { %v3035_v28 = vpack.c.bf16 %v2095_v30, %v2094_v26  ;;  %v2096_v30 = vld [vmem:[%s6501_s4 + $0x10] sm:$0xff]  ;;  %v2097_v26 = vld [vmem:[%s6501_s4 + $0x18] sm:$0xff]  ;;  %vm1344_vm14 = vcmp.lt.s32.totalorder %v3680_v52, 8  ;;  %vm3985_vm15 = vmand %vm1333_vm9, %vm1349_vm11  ;;  %vm6831_vm9 = vcmp.lt.s32.totalorder %v3688_v62, 8  ;;  %vm6832_vm10 = vcmp.ge.s32.totalorder %v3688_v62, 0 }
 0x10e   :  { %v3725_v55 = vmul.f32 0.0078125, %v283_v32  ;;  %v338_v47 = vadd.f32 %v337_v33, %v336_v14  ;;  %6781 = vst [vmem:[#allocation27_spill] sm:$0xff] %v3740_v13  ;;  %v2110_v32 = vld [vmem:[%s6501_s4 + $0x80] sm:$0xff]  ;;  %v3751_v33 = vadd.s32 64, %v3509_v23  ;;  %v434_v13 = vand.u32 7, %v3639_v60  ;;  %vm4008_vm8 = vmand %vm1328_vm12, %vm1344_vm14 }
 0x10f   :  { %v3033_v22 = vpack.c.bf16 %v2111_v8, %v2110_v32  ;;  %v2112_v32 = vld [vmem:[%s6501_s4 + $0x90] sm:$0xff]  ;;  %v2113_v8 = vld [vmem:[%s6501_s4 + $0x98] sm:$0xff]  ;;  %v2098_v60 = vld [vmem:[%s6501_s4 + $0x20] sm:$0xff]  ;;  %vm6838_vm12 = vcmp.lt.s32.totalorder %v3691_v4, 8  ;;  %vm6839_vm14 = vcmp.ge.s32.totalorder %v3691_v4, 0  ;;  %v6840_v62 = vmov 0 }
 0x110   :  { %v339_v14 = vmul.f32 0.0078125, %v338_v47  ;;  %v340_v12 = vmul.f32 %v3725_v55, %v3725_v55  ;;  %v3763_v47 = vadd.s32 72, %v3509_v23  ;;  %v3037_v48 = vpack.c.bf16 %v2113_v8, %v2112_v32  ;;  %v2114_v8 = vld [vmem:[%s6501_s4 + $0xa0] sm:$0xff]  ;;  %vm4016_vm11 = vmand %vm6832_vm10, %vm6831_vm9 }
 0x111   :  { %3085 = vmatprep.subr.bf16.mxu1 %v3033_v22  ;;  %3034 = vmatprep.subr.bf16.mxu0 %v3033_v22  ;;  %v3039_v32 = vpack.c.bf16 %v2097_v26, %v2096_v30  ;;  %v451_v18 = vand.u32 63, %v3751_v33  ;;  %v2099_v30 = vld [vmem:[%s6501_s4 + $0x28] sm:$0xff]  ;;  %v3806_v26 = vadd.s32 4294967295, %v428_v43  ;;  %vm4032_vm4 = vmand %vm6839_vm14, %vm6838_vm12  ;;  %vm6842_vm9 = vcmp.lt.s32.totalorder %v3694_v6, 8 }
 0x112   :  { %v341_v29 = vsub.f32 %v339_v14, %v340_v12  ;;  %v6523_v14 = vmov 0.0   ;;  %3093 = vmatpush3.bf16.msra.mxu1 %v3035_v28  ;;  %3036 = vmatpush3.bf16.msra.mxu0 %v3035_v28  ;;  %v3808_v28 = vadd.s32 1, %v428_v43  ;;  %v436_v45 = vand.u32 7, %v3763_v47 }
 0x113   :  { %v3787_v12 = vrot.slane %v6523_v14, 1  ;;  %v3797_v59 = vrot.slane %v6523_v14, 7  ;;  %3086 = vmatprep.subr.bf16.mxu1 %v3037_v48  ;;  %3038 = vmatprep.subr.bf16.mxu0 %v3037_v48  ;;  %6785 = vst [vmem:[#allocation31_spill] sm:$0xff] %v3806_v26  ;;  %v452_v14 = vand.u32 63, %v3763_v47  ;;  %v453_v48 = vand.u32 63, %v3775_v37 }
 0x114   :  { %v342_v22 = vmax.f32 %v341_v29, 0.0  ;;  %6786 = vst [vmem:[#allocation32_spill] sm:$0xff] %v3808_v28  ;;  %v435_v29 = vand.u32 7, %v3751_v33  ;;  %v3821_v43 = vadd.s32 88, %v3509_v23  ;;  %v3823_v26 = vadd.s32 1, %v434_v13 }
 0x115   :  { %6783 = vst [vmem:[#allocation29_spill] sm:$0xff] %v3787_v12  ;;  %6784 = vst [vmem:[#allocation30_spill] sm:$0xff] %v3797_v59  ;;  %v3041_v12 = vpack.c.bf16 %v2115_v58, %v2114_v8  ;;  %v2116_v58 = vld [vmem:[%s6501_s4 + $0xb0] sm:$0xff]  ;;  %v2117_v8 = vld [vmem:[%s6501_s4 + $0xb8] sm:$0xff]  ;;  %v3826_v33 = vadd.s32 96, %v3509_v23  ;;  %v3829_v28 = vadd.s32 104, %v3509_v23  ;;  %v3043_v21 = vpack.c.bf16 %v2099_v30, %v2098_v60 }
 0x116   :  { %v344_v59 = vadd.f32 1e-05, %v342_v22  ;;  %6787 = vst [vmem:[#allocation33_spill] sm:$0xff] %v3823_v26  ;;  %3094 = vmatpush3.bf16.msra.mxu1 %v3039_v32  ;;  %3040 = vmatpush3.bf16.msra.mxu0 %v3039_v32  ;;  %v3831_v22 = vadd.s32 4294967295, %v434_v13  ;;  %v3833_v47 = vshra.s32 %v451_v18, 3  ;;  %v3045_v24 = vpack.c.bf16 %v2117_v8, %v2116_v58  ;;  %v2100_v26 = vld [vmem:[%s6501_s4 + $0x30] sm:$0xff] }
 0x117   :  { %3087 = vmatprep.subr.bf16.mxu1 %v3041_v12  ;;  %3042 = vmatprep.subr.bf16.mxu0 %v3041_v12  ;;  %v3849_v18 = vadd.s32 4294967295, %v435_v29  ;;  %v3851_v13 = vshra.s32 %v452_v14, 3  ;;  %v3854_v12 = vadd.s32 112, %v3509_v23  ;;  %v3860_v32 = vadd.s32 1, %v436_v45 }
 0x118   :  { %3348 = vrsqrt.f32 %v344_v59  ;;  %6788 = vst [vmem:[#allocation34_spill] sm:$0xff] %v3831_v22  ;;  %v3847_v59 = vadd.s32 1, %v435_v29  ;;  %v3862_v60 = vshra.s32 %v453_v48, 3  ;;  %v454_v30 = vand.u32 63, %v3821_v43 }
 0x119   :  { %6790 = vst [vmem:[#allocation36_spill] sm:$0xff] %v3849_v18  ;;  %6791 = vst [vmem:[#allocation37_spill] sm:$0xff] %v3860_v32  ;;  %v3866_v14 = vadd.s32 120, %v3509_v23  ;;  %v437_v29 = vand.u32 7, %v3775_v37  ;;  %v455_v58 = vand.u32 63, %v3826_v33  ;;  %v456_v8 = vand.u32 63, %v3829_v28 }
 0x11a   :  { %6789 = vst [vmem:[#allocation35_spill] sm:$0xff] %v3847_v59  ;;  %6792 = vst [vmem:[#allocation38_spill] sm:$0xff] %v3862_v60  ;;  %3095 = vmatpush3.bf16.msra.mxu1 %v3043_v21  ;;  %v3047_v48 = vpack.c.bf16 %v2101_v9, %v2100_v26  ;;  %3044 = vmatpush3.bf16.msra.mxu0 %v3043_v21  ;;  %v3878_v23 = vadd.s32 4294967295, %v3833_v47  ;;  %v3881_v32 = vadd.s32 1, %v3833_v47  ;;  %v3883_v18 = vadd.s32 4294967295, %v436_v45 }
 0x11b   :  { %v438_v37 = vand.u32 7, %v3821_v43  ;;  %3088 = vmatprep.subr.bf16.mxu1 %v3045_v24  ;;  %3046 = vmatprep.subr.bf16.mxu0 %v3045_v24  ;;  %v3889_v9 = vadd.s32 4294967295, %v3851_v13  ;;  %v439_v21 = vand.u32 7, %v3826_v33  ;;  %v440_v26 = vand.u32 7, %v3829_v28 }
 0x11c   :  { %6793 = vst [vmem:[#allocation39_spill] sm:$0xff] %v3881_v32  ;;  %6794 = vst [vmem:[#allocation40_spill] sm:$0xff] %v3883_v18  ;;  %v457_v59 = vand.u32 63, %v3854_v12  ;;  %v3897_v45 = vadd.s32 1, %v3851_v13  ;;  %v3900_v24 = vadd.s32 4294967295, %v3862_v60  ;;  %v3902_v43 = vshra.s32 %v454_v30, 3 }
 0x11d   :  { %6795 = vst [vmem:[#allocation41_spill] sm:$0xff] %v3889_v9  ;;  %v458_v18 = vand.u32 63, %v3866_v14  ;;  %v3907_v28 = vadd.s32 1, %v437_v29  ;;  %v3909_v33 = vadd.s32 4294967295, %v437_v29  ;;  %v3911_v9 = vshra.s32 %v455_v58, 3 }
 0x11e   :  { %6796 = vst [vmem:[#allocation42_spill] sm:$0xff] %v3897_v45  ;;  %6797 = vst [vmem:[#allocation43_spill] sm:$0xff] %v3900_v24  ;;  %v3913_v32 = vshra.s32 %v456_v8, 3  ;;  %3096 = vmatpush3.bf16.msra.mxu1 %v3047_v48  ;;  %3048 = vmatpush3.bf16.msra.mxu0 %v3047_v48  ;;  %v343_v30 = vld [vmem:[%s6499_s2] sm:$0x1]  ;;  %v3923_v29 = vadd.s32 1, %v3862_v60 }
 0x11f   :  { %6798 = vst [vmem:[#allocation44_spill] sm:$0xff] %v3902_v43  ;;  %6799 = vst [vmem:[#allocation45_spill] sm:$0xff] %v3907_v28  ;;  %v3925_v58 = vadd.s32 1, %v438_v37  ;;  %v3927_v8 = vadd.s32 4294967295, %v438_v37  ;;  %v441_v48 = vand.u32 7, %v3854_v12  ;;  %v3934_v28 = vadd.s32 4294967295, %v439_v21 }
 0x120   :  { %6800 = vst [vmem:[#allocation46_spill] sm:$0xff] %v3909_v33  ;;  %6801 = vst [vmem:[#allocation47_spill] sm:$0xff] %v3911_v9  ;;  %v3932_v33 = vadd.s32 1, %v439_v21  ;;  %v3936_v24 = vadd.s32 1, %v440_v26  ;;  %v3938_v45 = vshra.s32 %v457_v59, 3  ;;  %v3943_v37 = vadd.s32 4294967295, %v3902_v43 }
 0x121   :  { %6802 = vst [vmem:[#allocation48_spill] sm:$0xff] %v3913_v32  ;;  %6803 = vst [vmem:[#allocation49_spill] sm:$0xff] %v3925_v58  ;;  %v3946_v12 = vadd.s32 1, %v3902_v43  ;;  %v3954_v59 = vadd.s32 4294967295, %v3911_v9  ;;  %v3991_v44 = vadd.s32 4294967295, %v440_v26  ;;  %v3994_v46 = vadd.s32 1, %v3913_v32 }
 0x122   :  { %6804 = vst [vmem:[#allocation50_spill] sm:$0xff] %v3927_v8  ;;  %6805 = vst [vmem:[#allocation51_spill] sm:$0xff] %v3932_v33  ;;  %v3349_v60 = vpop.eup %3348  ;;  %v442_v8 = vand.u32 7, %v3866_v14  ;;  %v3949_v33 = vshra.s32 %v458_v18, 3  ;;  %v369_v14 = vld [vmem:[%s6500_s3] sm:$0x1] }
 0x123   :  { %6806 = vst [vmem:[#allocation52_spill] sm:$0xff] %v3934_v28  ;;  %6807 = vst [vmem:[#allocation53_spill] sm:$0xff] %v3936_v24  ;;  %v346_v21 = vmul.f32 %v3349_v60, %v343_v30  ;;  %v3957_v24 = vadd.s32 1, %v3911_v9  ;;  %v3960_v28 = vadd.s32 4294967295, %v3913_v32  ;;  %v6814_v18 = vmov 0  ;;  %v6939_v58 = vld [vmem:[#allocation32_spill] sm:$0xff] }
 0x124   :  { %6808 = vst [vmem:[#allocation54_spill] sm:$0xff] %v3938_v45  ;;  %6809 = vst [vmem:[#allocation55_spill] sm:$0xff] %v3946_v12  ;;  %v6815_v18 = vsel %vm3969_vm1, 4294967295, %v6814_v18  ;;  %v6817_v60 = vmov 0  ;;  %v6820_v30 = vmov 0  ;;  %v6833_v26 = vmov 0 }
 0x125   :  { %6810 = vst [vmem:[#allocation56_spill] sm:$0xff] %v3949_v33  ;;  %6811 = vst [vmem:[#allocation57_spill] sm:$0xff] %v3954_v59  ;;  %v6818_v60 = vsel %vm3977_vm0, 4294967295, %v6817_v60  ;;  %v6821_v30 = vsel %vm3985_vm15, 4294967295, %v6820_v30  ;;  %v4001_v9 = vrot.slane %v346_v21, %v3665_v36  ;;  %v370_v50 = vmul.f32 %v346_v21, %v3725_v55  ;;  %s3377_s3 = smov 32  }
 0x126   :  { %6812 = vst [vmem:[#allocation58_spill] sm:$0xff] %v3957_v24  ;;  %6813 = vst [vmem:[#allocation59_spill] sm:$0xff] %v3960_v28  ;;  %v3996_v28 = vadd.s32 1, %v441_v48  ;;  %v3998_v24 = vadd.s32 4294967295, %v441_v48  ;;  %v6828_v59 = vmov 0  ;;  %v6834_v26 = vsel %vm4016_vm11, 4294967295, %v6833_v26 }
 0x127   :  { %6816 = vst [vmem:[#allocation60_spill] sm:$0xff] %v6815_v18  ;;  %6819 = vst [vmem:[#allocation61_spill] sm:$0xff] %v6818_v60  ;;  %v6829_v59 = vsel %vm4008_vm8, 4294967295, %v6828_v59  ;;  %v4023_v55 = vadd.s32 4294967295, %v3938_v45  ;;  %v4026_v52 = vadd.s32 1, %v3938_v45  ;;  %v6841_v62 = vsel %vm4032_vm4, 4294967295, %v6840_v62 }
 0x128   :  { %6822 = vst [vmem:[#allocation62_spill] sm:$0xff] %v6821_v30  ;;  %6823 = vst [vmem:[#allocation63_spill] sm:$0xff] %v3991_v44  ;;  %vm6843_vm10 = vcmp.ge.s32.totalorder %v3694_v6, 0  ;;  %v6844_v48 = vmov 0  ;;  %v4048_v4 = vadd.s32 4294967295, %v3949_v33  ;;  %v4050_v21 = vadd.s32 1, %v442_v8 }
 0x129   :  { %6824 = vst [vmem:[#allocation64_spill] sm:$0xff] %v3994_v46  ;;  %6825 = vst [vmem:[#allocation65_spill] sm:$0xff] %v3996_v28  ;;  %v367_v6 = vmul.f32 %v4001_v9, %v3641_v0  ;;  %v371_v28 = vsub.f32 %v369_v14, %v370_v50  ;;  %v358_v45 = vmul.f32 %v3560_v49, %v4001_v9  ;;  %vm6851_vm12 = vcmp.lt.s32.totalorder %v3701_v15, 8  ;;  %v6876_v50 = vld [vmem:[#allocation9_spill] sm:$0xff]  ;;  %v6925_v44 = vld [vmem:[#allocation15_spill] sm:$0xff] }
 0x12a   :  { %6826 = vst [vmem:[#allocation66_spill] sm:$0xff] %v3998_v24  ;;  %6827 = vst [vmem:[#allocation67_spill] sm:$0xff] %v4001_v9  ;;  %v4052_v24 = vadd.s32 4294967295, %v442_v8  ;;  %vm6852_vm14 = vcmp.ge.s32.totalorder %v3701_v15, 0  ;;  %v6853_v8 = vmov 0  ;;  %v360_v49 = vmul.f32 %v3574_v61, %v4001_v9 }
 0x12b   :  { %6830 = vst [vmem:[#allocation68_spill] sm:$0xff] %v6829_v59  ;;  %6835 = vst [vmem:[#allocation69_spill] sm:$0xff] %v6834_v26  ;;  %v361_v0 = vmul.f32 %v4001_v9, %v3590_v11  ;;  %v353_v15 = vmul.f32 %v4001_v9, %v3539_v34  ;;  %v6858_v14 = vmov 0  ;;  %v359_v61 = vmul.f32 %v4001_v9, %v3576_v63 }
 0x12c   :  { %6836 = vst [vmem:[#allocation70_spill] sm:$0xff] %v4023_v55  ;;  %6837 = vst [vmem:[#allocation71_spill] sm:$0xff] %v4026_v52  ;;  %v4055_v52 = vadd.s32 1, %v3949_v33  ;;  %v354_v55 = vmul.f32 %v3533_v31, %v4001_v9  ;;  %v355_v31 = vmul.f32 %v4001_v9, %v3549_v42  ;;  %v4093_v42 = vrot.slane %v371_v28, %v3665_v36 }
 0x12d   :  { %vm4040_vm6 = vmand %vm6843_vm10, %vm6842_vm9  ;;  %6847 = vst [vmem:[#allocation73_spill] sm:$0xff] %v4048_v4  ;;  %v356_v34 = vmul.f32 %v3547_v40, %v4001_v9  ;;  %vm6862_vm7 = vcmp.lt.s32.totalorder %v3708_v19, 8  ;;  %v6864_v11 = vmov 0  ;;  %vm6868_vm4 = vcmp.ge.s32.totalorder %v3715_v39, 0 }
 0x12e   :  { %v6845_v48 = vsel %vm4040_vm6, 4294967295, %v6844_v48  ;;  %6848 = vst [vmem:[#allocation74_spill] sm:$0xff] %v4050_v21  ;;  %6849 = vst [vmem:[#allocation75_spill] sm:$0xff] %v4052_v24  ;;  %vm6867_vm6 = vcmp.lt.s32.totalorder %v3715_v39, 8  ;;  %v6869_v40 = vmov 0  ;;  %v4133_v36 = vmul.f32 %v6876_v50, %v4001_v9  ;;  %v6878_v39 = vld [vmem:[#allocation12_spill] sm:$0xff] }
 0x12f   :  { %6846 = vst [vmem:[#allocation72_spill] sm:$0xff] %v6845_v48  ;;  %6850 = vst [vmem:[#allocation76_spill] sm:$0xff] %v4055_v52  ;;  %v4137_v24 = vmul.f32 %v4001_v9, %v6878_v39  ;;  %v392_v52 = vadd.f32 %v4093_v42, %v367_v6  ;;  %v383_v21 = vadd.f32 %v4093_v42, %v358_v45  ;;  %v6884_v6 = vmov 0 }
 0x130   :  { %vm4067_vm9 = vmand %vm6852_vm14, %vm6851_vm12  ;;  %vm6856_vm12 = vcmp.lt.s32.totalorder %v3682_v56, 8  ;;  %vm6857_vm14 = vcmp.ge.s32.totalorder %v3682_v56, 0  ;;  %6861 = vst [vmem:[#allocation79_spill] sm:$0xff] %v4093_v42  ;;  %v4109_v56 = vmul.f32 %v4001_v9, %v3562_v51  ;;  %v6872_v51 = vld [vmem:[#allocation8_spill] sm:$0xff]  ;;  %v379_v33 = vadd.f32 %v4093_v42, %v354_v55 }
 0x131   :  { %v6854_v8 = vsel %vm4067_vm9, 4294967295, %v6853_v8  ;;  %vm4086_vm10 = vmand %vm6857_vm14, %vm6856_vm12  ;;  %vm6863_vm12 = vcmp.ge.s32.totalorder %v3708_v19, 0  ;;  %v4125_v63 = vmul.f32 %v6872_v51, %v4001_v9  ;;  %v6874_v19 = vld [vmem:[#allocation10_spill] sm:$0xff]  ;;  %6877 = vst [vmem:[#allocation9_spill] sm:$0xff] %v4133_v36  ;;  %v385_v51 = vadd.f32 %v4093_v42, %v360_v49  ;;  %v6924_v36 = vld [vmem:[#allocation27_spill] sm:$0xff] }
 0x132   :  { %6855 = vst [vmem:[#allocation77_spill] sm:$0xff] %v6854_v8  ;;  %v6859_v14 = vsel %vm4086_vm10, 4294967295, %v6858_v14  ;;  %vm4103_vm14 = vmand %vm6863_vm12, %vm6862_vm7  ;;  %v4129_v28 = vmul.f32 %v4001_v9, %v6874_v19  ;;  %vm6883_vm7 = vcmp.ge.s32.totalorder %v3705_v17, 0  ;;  %v6887_v45 = vmov 0  ;;  %v6894_v49 = vld [vmem:[#allocation14_spill] sm:$0xff]  ;;  %v7013_v19 = vld [vmem:[#allocation35_spill] sm:$0xff] }
 0x133   :  { %6860 = vst [vmem:[#allocation78_spill] sm:$0xff] %v6859_v14  ;;  %v6865_v11 = vsel %vm4103_vm14, 4294967295, %v6864_v11  ;;  %vm4117_vm11 = vmand %vm6868_vm4, %vm6867_vm6  ;;  %vm6880_vm4 = vcmp.lt.s32.totalorder %v3703_v16, 8  ;;  %vm6890_vm13 = vcmp.ge.s32.totalorder %v3696_v7, 0  ;;  %v6891_v55 = vmov 0 }
 0x134   :  { %6866 = vst [vmem:[#allocation80_spill] sm:$0xff] %v6865_v11  ;;  %v6870_v40 = vsel %vm4117_vm11, 4294967295, %v6869_v40  ;;  %6873 = vst [vmem:[#allocation8_spill] sm:$0xff] %v4125_v63  ;;  %v380_v50 = vadd.f32 %v4093_v42, %v355_v31  ;;  %v386_v39 = vadd.f32 %v4093_v42, %v361_v0  ;;  %v378_v14 = vadd.f32 %v4093_v42, %v353_v15  ;;  %v6903_v0 = vld [vmem:[#allocation28_spill] sm:$0xff] }
 0x135   :  { %6871 = vst [vmem:[#allocation81_spill] sm:$0xff] %v6870_v40  ;;  %6875 = vst [vmem:[#allocation10_spill] sm:$0xff] %v4129_v28  ;;  %v384_v17 = vadd.f32 %v4093_v42, %v359_v61  ;;  %v6900_v31 = vmov 0  ;;  %v4198_v15 = vmax.f32 %v392_v52, 0.0  ;;  %v4200_v61 = vmax.f32 %v383_v21, 0.0  ;;  %v6931_v28 = vld [vmem:[#allocation17_spill] sm:$0xff] }
 0x136   :  { %6879 = vst [vmem:[#allocation12_spill] sm:$0xff] %v4137_v24  ;;  %vm4147_vm6 = vmand %vm4086_vm10, %vm6880_vm4  ;;  %vm6889_vm4 = vcmp.lt.s32.totalorder %v3696_v7, 8  ;;  %v6896_v7 = vmov 0  ;;  %v4203_v4 = vmax.f32 %v379_v33, 0.0  ;;  %v4205_v9 = vmax.f32 %v385_v51, 0.0 }
 0x137   :  { %vm4155_vm12 = vmand %vm4086_vm10, %vm6883_vm7  ;;  %6904 = vst [vmem:[#allocation83_spill] sm:$0xff] %v4198_v15  ;;  %v6913_v52 = vmov 0  ;;  %v4223_v33 = vmax.f32 %v380_v50, 0.0  ;;  %v4225_v21 = vmax.f32 %v386_v39, 0.0  ;;  %v4227_v51 = vmax.f32 %v378_v14, 0.0 }
 0x138   :  { %v6885_v6 = vsel %vm4155_vm12, 4294967295, %v6884_v6  ;;  %vm6886_vm3 = vmmov %vm6883_vm7  ;;  %vm6899_vm7 = vcmp.ge.s32.totalorder %v3718_v41, 0  ;;  %6905 = vst [vmem:[#allocation84_spill] sm:$0xff] %v4200_v61  ;;  %v4229_v15 = vmax.f32 %v384_v17, 0.0  ;;  %vm6920_vm12 = vcmp.ge.s32.totalorder %v3721_v53, 0 }
 0x139   :  { %vm4163_vm5 = vmand %vm4103_vm14, %vm6886_vm3  ;;  %vm6895_vm3 = vcmp.lt.s32.totalorder %v3703_v16, 8  ;;  %v6906_v16 = vld [vmem:[#allocation18_spill] sm:$0xff]  ;;  %6907 = vst [vmem:[#allocation85_spill] sm:$0xff] %v4203_v4  ;;  %v6921_v24 = vmov 0  ;;  %v829_v14 = vsel %vm3969_vm1, %v4200_v61, 0.0  ;;  %v1517_v17 = vsel %vm3977_vm0, %v4203_v4, 0.0 }
 0x13a   :  { %v6888_v45 = vsel %vm4163_vm5, 4294967295, %v6887_v45  ;;  %vm4171_vm2 = vmand %vm6890_vm13, %vm6889_vm4  ;;  %vm6898_vm4 = vcmp.lt.s32.totalorder %v3718_v41, 8  ;;  %6908 = vst [vmem:[#allocation86_spill] sm:$0xff] %v4205_v9  ;;  %v6910_v41 = vmov 0  ;;  %v381_v50 = vadd.f32 %v4093_v42, %v356_v34 }
 0x13b   :  { %v6892_v55 = vsel %vm4171_vm2, 4294967295, %v6891_v55  ;;  %vm4185_vm13 = vmand %vm4067_vm9, %vm6895_vm3  ;;  %vm6909_vm3 = vcmp.lt.s32.totalorder %v3710_v35, 8  ;;  %6915 = vst [vmem:[#allocation87_spill] sm:$0xff] %v4223_v33  ;;  %v6928_v39 = vmov 0  ;;  %v6932_v46 = vmov 0.0  }
 0x13c   :  { %6893 = vst [vmem:[#allocation82_spill] sm:$0xff] %v6892_v55  ;;  %v6897_v7 = vsel %vm4185_vm13, 4294967295, %v6896_v7  ;;  %vm4193_vm10 = vmand %vm6899_vm7, %vm6898_vm4  ;;  %vm6912_vm4 = vcmp.ge.s32.totalorder %v3712_v27, 0  ;;  %v3108_v63 = vpack.i.bf16 %v829_v14, %v6932_v46  ;;  %v1518_v12 = vsel %vm4008_vm8, %v4223_v33, 0.0  ;;  %v6960_v55 = vld [vmem:[#allocation31_spill] sm:$0xff] }
 0x13d   :  { %v6901_v31 = vsel %vm4193_vm10, 4294967295, %v6900_v31  ;;  %vm4211_vm7 = vmand %vm4117_vm11, %vm6909_vm3  ;;  %6916 = vst [vmem:[#allocation88_spill] sm:$0xff] %v4225_v21  ;;  %vm6919_vm3 = vcmp.lt.s32.totalorder %v3721_v53, 8  ;;  %v1523_v53 = vsel %vm3985_vm15, %v4205_v9, 0.0  ;;  %vm6933_vm15 = vnez %v6834_v26 }
 0x13e   :  { %6902 = vst [vmem:[#allocation14_spill] sm:$0xff] %v6901_v31  ;;  %v6911_v41 = vsel %vm4211_vm7, 4294967295, %v6910_v41  ;;  %vm4219_vm5 = vmand %vm4171_vm2, %vm6912_vm4  ;;  %v3113_v32 = vpack.i.bf16 %v1523_v53, %v1517_v17  ;;  %v1524_v34 = vsel %vm6933_vm15, %v4225_v21, 0.0  ;;  %vm6940_vm4 = vnez %v6841_v62  ;;  %3109 = vrot.lane.b32.xlu1 %v3108_v63, %s3377_s3 }
 0x13f   :  { %v6914_v52 = vsel %vm4219_vm5, 4294967295, %v6913_v52  ;;  %6917 = vst [vmem:[#allocation89_spill] sm:$0xff] %v4227_v51  ;;  %6918 = vst [vmem:[#allocation90_spill] sm:$0xff] %v4229_v15  ;;  %v3123_v14 = vpack.i.bf16 %v1524_v34, %v1518_v12  ;;  %v824_v17 = vsel %vm6940_vm4, %v4227_v51, 0.0  ;;  %vm6941_vm8 = vnez %v6845_v48  ;;  %v7090_v34 = vld [vmem:[#allocation43_spill] sm:$0xff] }
 0x140   :  { %vm4235_vm7 = vmand %vm6920_vm12, %vm6919_vm3  ;;  %vm6926_vm12 = vcmp.lt.s32.totalorder %v3698_v10, 8  ;;  %vm6927_vm3 = vcmp.ge.s32.totalorder %v3698_v10, 0  ;;  %v6936_v10 = vmov 0  ;;  %v830_v53 = vsel %vm6941_vm8, %v4229_v15, 0.0  ;;  %3114 = vrot.lane.b32.xlu0 %v3113_v32, %s3378_s16 }
 0x141   :  { %v6922_v24 = vsel %vm4235_vm7, 4294967295, %v6921_v24  ;;  %vm4256_vm5 = vmand %vm6927_vm3, %vm6926_vm12  ;;  %vm6934_vm12 = vcmp.lt.s32.totalorder %v3732_v2, 8  ;;  %vm6935_vm3 = vcmp.ge.s32.totalorder %v3732_v2, 0  ;;  %v4284_v46 = vmax.f32 %v381_v50, 0.0 }
 0x142   :  { %6923 = vst [vmem:[#allocation91_spill] sm:$0xff] %v6922_v24  ;;  %v6929_v39 = vsel %vm4256_vm5, 4294967295, %v6928_v39  ;;  %vm4273_vm0 = vmand %vm6935_vm3, %vm6934_vm12  ;;  %vm6943_vm15 = vcmp.lt.s32.totalorder %v3710_v35, 8  ;;  %v6944_v2 = vmov 0  ;;  %vm6946_vm3 = vcmp.ge.s32.totalorder %v3712_v27, 0  ;;  %v6961_v27 = vld [vmem:[#allocation33_spill] sm:$0xff] }
 0x143   :  { %6930 = vst [vmem:[#allocation15_spill] sm:$0xff] %v6929_v39  ;;  %v6937_v10 = vsel %vm4273_vm0, 4294967295, %v6936_v10  ;;  %6942 = vst [vmem:[#allocation92_spill] sm:$0xff] %v4284_v46  ;;  %v6947_v12 = vmov 0  ;;  %vm6949_vm8 = vcmp.lt.s32.totalorder %v3723_v54, 8  ;;  %v6950_v50 = vmov 0 }
 0x144   :  { %6938 = vst [vmem:[#allocation17_spill] sm:$0xff] %v6937_v10  ;;  %vm4290_vm12 = vmand %vm4171_vm2, %vm6943_vm15  ;;  %v6957_v35 = vmov 0  ;;  %v3118_v54 = vpack.i.bf16 %v830_v53, %v824_v17  ;;  %v825_v21 = vsel %vm4067_vm9, %v4203_v4, 0.0  ;;  %v6963_v51 = vmov 0  ;;  %3124 = vrot.lane.b32.xlu0 %v3123_v14, %s3378_s16  ;;  %v7033_v10 = vld [vmem:[#allocation6_spill] sm:$0xff] }
 0x145   :  { %v6945_v2 = vsel %vm4290_vm12, 4294967295, %v6944_v2  ;;  %vm4298_vm13 = vmand %vm4193_vm10, %vm6946_vm3  ;;  %vm6955_vm3 = vcmp.lt.s32.totalorder %v3772_v38, 8  ;;  %v6967_v32 = vmov 0  ;;  %v674_v17 = vrot.slane %v4223_v33, 7 }
 0x146   :  { %v6948_v12 = vsel %vm4298_vm13, 4294967295, %v6947_v12  ;;  %vm4306_vm4 = vmand %vm4256_vm5, %vm6949_vm8  ;;  %vm6956_vm13 = vcmp.ge.s32.totalorder %v3772_v38, 0  ;;  %v958_v38 = vrot.slane %v4223_v33, 1  ;;  %v1519_v53 = vsel %vm4103_vm14, %v4284_v46, 0.0  ;;  %3119 = vrot.lane.b32.xlu1 %v3118_v54, %s3377_s3 }
 0x147   :  { %v6951_v50 = vsel %vm4306_vm4, 4294967295, %v6950_v50  ;;  %vm6952_vm15 = vmmov %vm6949_vm8  ;;  %vm6966_vm4 = vcmp.ge.s32.totalorder %v3729_v1, 0  ;;  %v6974_v63 = vmov 0  ;;  %v382_v11 = vadd.f32 %v4093_v42, %v4109_v56 }
 0x148   :  { %vm4314_vm2 = vmand %vm4235_vm7, %vm6952_vm15  ;;  %v6986_v39 = vrot.slane %v4284_v46, 1  ;;  %vm6987_vm7 = vcmask 1046528   ;;  %v6992_v42 = vrot.slane %v4284_v46, 7  ;;  %v7010_v54 = vmov 0 }
 0x149   :  { %vm4322_vm12 = vmand %vm6956_vm13, %vm6955_vm3  ;;  %vm6962_vm13 = vcmp.ge.s32.totalorder %v3727_v57, 0  ;;  %vm6965_vm3 = vcmp.lt.s32.totalorder %v3729_v1, 8  ;;  %v6970_v1 = vmov 0  ;;  %v6984_v57 = vmov 0 }
 0x14a   :  { %v6958_v35 = vsel %vm4322_vm12, 4294967295, %v6957_v35  ;;  %vm4339_vm15 = vmand %vm4273_vm0, %vm6962_vm13  ;;  %v4412_v9 = vsel %vm6987_vm7, %v958_v38, %v6986_v39  ;;  %vm6998_vm7 = vcmp.lt.s32.totalorder %v3512_v25, 8  ;;  %v7004_v39 = vrot.slane %v4203_v4, 1 }
 0x14b   :  { %6959 = vst [vmem:[#allocation93_spill] sm:$0xff] %v6958_v35  ;;  %v6964_v51 = vsel %vm4339_vm15, 4294967295, %v6963_v51  ;;  %vm4347_vm8 = vmand %vm6966_vm4, %vm6965_vm3  ;;  %vm6972_vm4 = vcmp.lt.s32.totalorder %v3784_v20, 8  ;;  %vm6973_vm3 = vcmp.ge.s32.totalorder %v3784_v20, 0  ;;  %v6978_v20 = vmov 0 }
 0x14c   :  { %v6968_v32 = vsel %vm4347_vm8, 4294967295, %v6967_v32  ;;  %vm4361_vm9 = vmand %vm4256_vm5, %vm6962_vm13  ;;  %vm6977_vm13 = vcmp.lt.s32.totalorder %v3734_v3, 8  ;;  %vm6983_vm5 = vcmp.ge.s32.totalorder %v3736_v5, 0  ;;  %6988 = vst [vmem:[#allocation95_spill] sm:$0xff] %v4412_v9  ;;  %v6989_v3 = vrot.slane %v4203_v4, 7 }
 0x14d   :  { %6969 = vst [vmem:[#allocation31_spill] sm:$0xff] %v6968_v32  ;;  %v6971_v1 = vsel %vm4361_vm9, 4294967295, %v6970_v1  ;;  %vm4369_vm15 = vmand %vm6973_vm3, %vm6972_vm4  ;;  %v7030_v32 = vmov 0  ;;  %v7035_v31 = vmov 0  ;;  %v7046_v18 = vmov 0 }
 0x14e   :  { %v6975_v63 = vsel %vm4369_vm15, 4294967295, %v6974_v63  ;;  %vm4387_vm4 = vmand %vm4347_vm8, %vm6977_vm13  ;;  %v7097_v40 = vmov 0 }
 0x14f   :  { %6976 = vst [vmem:[#allocation94_spill] sm:$0xff] %v6975_v63  ;;  %v6979_v20 = vsel %vm4387_vm4, 4294967295, %v6978_v20  ;;  %vm6980_vm3 = vmmov %vm6977_vm13  ;;  %vm6995_vm13 = vcmp.ge.s32.totalorder %v3736_v5, 0  ;;  %v7140_v63 = vld [vmem:[#allocation44_spill] sm:$0xff] }
 0x150   :  { %vm4395_vm14 = vmand %vm4322_vm12, %vm6980_vm3  ;;  %vm6990_vm3 = vcmask 1040384  }
 0x151   :  { %vm4403_vm9 = vmand %vm4369_vm15, %vm6983_vm5  ;;  %v4417_v8 = vsel %vm6990_vm3, %v6989_v3, %v674_v17  ;;  %v7000_v3 = vmov 0 }
 0x152   :  { %v6985_v57 = vsel %vm4403_vm9, 4294967295, %v6984_v57  ;;  %6991 = vst [vmem:[#allocation96_spill] sm:$0xff] %v4417_v8  ;;  %vm6993_vm5 = vmmov %vm6990_vm3  ;;  %vm6999_vm3 = vcmp.ge.s32.totalorder %v3512_v25, 0  ;;  %vm7009_vm9 = vcmp.ge.s32.totalorder %v6894_v49, 0 }
 0x153   :  { %v4422_v43 = vsel %vm6993_vm5, %v674_v17, %v6992_v42  ;;  %vm4429_vm4 = vmand %vm4347_vm8, %vm6995_vm13  ;;  %v1297_v42 = vsel %vm4147_vm6, %v4412_v9, 0.0  ;;  %vm7003_vm13 = vnez %v6885_v6  ;;  %vm7008_vm5 = vcmp.lt.s32.totalorder %v6894_v49, 8  ;;  %v7019_v49 = vld [vmem:[#allocation39_spill] sm:$0xff] }
 0x154   :  { %6994 = vst [vmem:[#allocation97_spill] sm:$0xff] %v4422_v43  ;;  %vm4437_vm15 = vmand %vm6999_vm3, %vm6998_vm7  ;;  %v1135_v25 = vsel %vm7003_vm13, %v4417_v8, 0.0  ;;  %vm7005_vm7 = vcmask 1046528   ;;  %vm7007_vm3 = vnez %v6888_v45  ;;  %v3128_v6 = vpack.i.bf16 %v825_v21, %v1297_v42 }
 0x155   :  { %v7001_v3 = vsel %vm4437_vm15, 4294967295, %v7000_v3  ;;  %v4454_v17 = vsel %vm7005_vm7, %v7004_v39, %v958_v38  ;;  %v1443_v26 = vsel %vm7007_vm3, %v4422_v43, 0.0  ;;  %vm4463_vm8 = vmand %vm7009_vm9, %vm7008_vm5  ;;  %v3138_v14 = vpack.i.bf16 %v1135_v25, %v1519_v53  ;;  %v7025_v25 = vld [vmem:[#allocation36_spill] sm:$0xff] }
 0x156   :  { %7002 = vst [vmem:[#allocation98_spill] sm:$0xff] %v7001_v3  ;;  %7006 = vst [vmem:[#allocation99_spill] sm:$0xff] %v4454_v17  ;;  %v7011_v54 = vsel %vm4463_vm8, 4294967295, %v7010_v54  ;;  %vm7014_vm13 = vnez %v6897_v7  ;;  %v4471_v39 = vmax.f32 %v382_v11, 0.0  ;;  %vm7016_vm7 = vcmp.lt.s32.totalorder %v6903_v0, 8  ;;  %3129 = vrot.lane.b32.xlu0 %v3128_v6, %s3377_s3 }
 0x157   :  { %7012 = vst [vmem:[#allocation100_spill] sm:$0xff] %v7011_v54  ;;  %v1004_v38 = vsel %vm7014_vm13, %v4454_v17, 0.0  ;;  %vm4477_vm3 = vmand %vm3969_vm1, %vm7016_vm7  ;;  %vm7020_vm6 = vnez %v6911_v41  ;;  %vm7021_vm13 = vnez %v6914_v52  ;;  %v680_v53 = vrot.slane %v4200_v61, 7  ;;  %v7042_v54 = vld [vmem:[#allocation41_spill] sm:$0xff]  ;;  %3139 = vrot.lane.b32.xlu1 %v3138_v14, %s3378_s16 }
 0x158   :  { %7015 = vst [vmem:[#allocation101_spill] sm:$0xff] %v4471_v39  ;;  %v3133_v21 = vpack.i.bf16 %v1004_v38, %v1443_v26  ;;  %v1005_v7 = vsel %vm7020_vm6, %v4412_v9, 0.0  ;;  %v1136_v11 = vsel %vm7021_vm13, %v4422_v43, 0.0  ;;  %vm7022_vm7 = vcmp.ge.s32.totalorder %v6906_v16, 0  ;;  %v7043_v43 = vld [vmem:[#allocation5_spill] sm:$0xff] }
 0x159   :  { %vm4494_vm1 = vmand %vm4463_vm8, %vm7022_vm7  ;;  %v7023_v42 = vmov 0  ;;  %v962_v26 = vrot.slane %v4471_v39, 1  ;;  %v678_v41 = vrot.slane %v4471_v39, 7  ;;  %v1520_v52 = vsel %vm4193_vm10, %v4471_v39, 0.0 }
 0x15a   :  { %v7024_v42 = vsel %vm4494_vm1, 4294967295, %v7023_v42  ;;  %v1521_v38 = vsel %vm4273_vm0, %v4200_v61, 0.0  ;;  %vm7026_vm6 = vcmp.lt.s32.totalorder %v6924_v36, 8  ;;  %v7027_v9 = vmov 0  ;;  %3134 = vrot.lane.b32.xlu0 %v3133_v21, %s3379_s17 }
 0x15b   :  { %vm4511_vm13 = vmand %vm4437_vm15, %vm7026_vm6  ;;  %vm7029_vm7 = vcmp.lt.s32.totalorder %v6903_v0, 8  ;;  %vm7034_vm0 = vnez %v7033_v10  ;;  %v7039_v0 = vmov 0  ;;  %v4543_v10 = vpack.i.bf16 %v1136_v11, %v1520_v52 }
 0x15c   :  { %v7028_v9 = vsel %vm4511_vm13, 4294967295, %v7027_v9  ;;  %vm4519_vm9 = vmand %vm4463_vm8, %vm7029_vm7  ;;  %vm7038_vm13 = vcmp.ge.s32.totalorder %v6925_v44, 0  ;;  %v828_v36 = vsel %vm4322_vm12, %v4471_v39, 0.0  ;;  %vm7049_vm7 = vcmp.ge.s32.totalorder %v6931_v28, 0 }
 0x15d   :  { %v7031_v32 = vsel %vm4519_vm9, 4294967295, %v7030_v32  ;;  %vm7032_vm5 = vmmov %vm7026_vm6  ;;  %vm7037_vm6 = vcmp.lt.s32.totalorder %v6925_v44, 8  ;;  %v7050_v6 = vmov 0  ;;  %v7053_v14 = vrot.slane %v4284_v46, 1 }
 0x15e   :  { %vm4527_vm10 = vmand %vm7034_vm0, %vm7032_vm5  ;;  %vm7044_vm0 = vcmp.ge.s32.totalorder %v7043_v43, 0  ;;  %vm7045_vm5 = vnez %v6818_v60  ;;  %vm7054_vm9 = vcmask 1046528   ;;  %v7056_v52 = vrot.slane %v4284_v46, 7 }
 0x15f   :  { %v7036_v31 = vsel %vm4527_vm10, 4294967295, %v7035_v31  ;;  %vm4535_vm1 = vmand %vm7038_vm13, %vm7037_vm6  ;;  %vm7048_vm6 = vcmp.lt.s32.totalorder %v6931_v28, 8  ;;  %v4571_v11 = vsel %vm7054_vm9, %v7053_v14, %v962_v26  ;;  %v7059_v28 = vrot.slane %v4200_v61, 1 }
 0x160   :  { %v7040_v0 = vsel %vm4535_vm1, 4294967295, %v7039_v0  ;;  %vm4554_vm13 = vmand %vm7045_vm5, %vm7044_vm0  ;;  %7055 = vst [vmem:[#allocation41_spill] sm:$0xff] %v4571_v11  ;;  %vm7057_vm0 = vcmask 1040384   ;;  %vm7064_vm12 = vcmp.ge.s32.totalorder %v6906_v16, 0  ;;  %vm7065_vm10 = vnez %v6821_v30 }
 0x161   :  { %7041 = vst [vmem:[#allocation39_spill] sm:$0xff] %v7040_v0  ;;  %v7047_v18 = vsel %vm4554_vm13, 4294967295, %v7046_v18  ;;  %vm4562_vm8 = vmand %vm7049_vm7, %vm7048_vm6  ;;  %v4576_v5 = vsel %vm7057_vm0, %v7056_v52, %v678_v41  ;;  %vm7072_vm13 = vnez %v6945_v2  ;;  %v1006_v35 = vsel %vm4314_vm2, %v4571_v11, 0.0  ;;  %v7149_v0 = vld [vmem:[#allocation88_spill] sm:$0xff] }
 0x162   :  { %v7051_v6 = vsel %vm4562_vm8, 4294967295, %v7050_v6  ;;  %7058 = vst [vmem:[#allocation5_spill] sm:$0xff] %v4576_v5  ;;  %vm7060_vm7 = vmmov %vm7054_vm9  ;;  %vm7068_vm9 = vcmp.lt.s32.totalorder %v6939_v58, 8  ;;  %v7077_v39 = vmov 0  ;;  %v7081_v2 = vmov 0 }
 0x163   :  { %7052 = vst [vmem:[#allocation6_spill] sm:$0xff] %v7051_v6  ;;  %v4581_v44 = vsel %vm7060_vm7, %v962_v26, %v7059_v28  ;;  %vm7062_vm6 = vmmov %vm7057_vm0  ;;  %v7071_v26 = vld [vmem:[#allocation42_spill] sm:$0xff]  ;;  %vm7076_vm7 = vnez %v6841_v62  ;;  %v7146_v6 = vld [vmem:[#allocation49_spill] sm:$0xff]  ;;  %v7158_v45 = vrot.slane %v4229_v15, 1  ;;  %v7199_v14 = vmov 0 }
 0x164   :  { %7061 = vst [vmem:[#allocation102_spill] sm:$0xff] %v4581_v44  ;;  %v4584_v60 = vsel %vm7062_vm6, %v678_v41, %v680_v53  ;;  %vm4590_vm5 = vmand %vm7065_vm10, %vm7064_vm12  ;;  %v1298_v41 = vsel %vm7072_vm13, %v4571_v11, 0.0  ;;  %vm7073_vm12 = vnez %v6948_v12  ;;  %vm7074_vm10 = vnez %v6951_v50  ;;  %v7089_v50 = vld [vmem:[#allocation37_spill] sm:$0xff] }
 0x165   :  { %7063 = vst [vmem:[#allocation103_spill] sm:$0xff] %v4584_v60  ;;  %vm4598_vm0 = vmand %vm4535_vm1, %vm7068_vm9  ;;  %v1444_v28 = vsel %vm7073_vm12, %v4576_v5, 0.0  ;;  %v1299_v30 = vsel %vm7074_vm10, %v4581_v44, 0.0  ;;  %vm7075_vm9 = vcmp.ge.s32.totalorder %v6960_v55, 0  ;;  %vm7080_vm13 = vcmp.ge.s32.totalorder %v7043_v43, 0 }
 0x166   :  { %vm4620_vm6 = vmand %vm7076_vm7, %vm7075_vm9  ;;  %vm7083_vm10 = vcmp.lt.s32.totalorder %v6961_v27, 8  ;;  %vm7086_vm9 = vcmp.lt.s32.totalorder %v6939_v58, 8  ;;  %v7091_v11 = vsel %vm4117_vm11, %v4223_v33, 0.0  ;;  %v3148_v16 = vpack.i.bf16 %v1005_v7, %v1444_v28  ;;  %v7100_v7 = vld [vmem:[#allocation38_spill] sm:$0xff] }
 0x167   :  { %v7078_v39 = vsel %vm4620_vm6, 4294967295, %v7077_v39  ;;  %vm4628_vm12 = vmand %vm4437_vm15, %vm7080_vm13  ;;  %v3143_v3 = vpack.i.bf16 %v7091_v11, %v1298_v41  ;;  %vm7096_vm15 = vnez %v6845_v48  ;;  %v7099_v11 = vld [vmem:[#allocation40_spill] sm:$0xff]  ;;  %v7102_v41 = vrot.slane %v4229_v15, 1  ;;  %v7306_v48 = vld [vmem:[#allocation65_spill] sm:$0xff] }
 0x168   :  { %7079 = vst [vmem:[#allocation42_spill] sm:$0xff] %v7078_v39  ;;  %v7082_v2 = vsel %vm4628_vm12, 4294967295, %v7081_v2  ;;  %vm4636_vm2 = vmand %vm4562_vm8, %vm7083_vm10  ;;  %vm7092_vm10 = vnez %v6922_v24  ;;  %v7103_v28 = vrot.slane %v4200_v61, 1  ;;  %vm7107_vm11 = vcmask 1040384   ;;  %3149 = vrot.lane.b32.xlu0 %v3148_v16, %s3379_s17  ;;  %v7250_v39 = vld [vmem:[#allocation8_spill] sm:$0xff] }
 0x169   :  { %vm4644_vm6 = vmand %vm7076_vm7, %vm7086_vm9  ;;  %v7093_v62 = vsel %vm7092_vm10, %v4284_v46, 0.0  ;;  %vm7094_vm7 = vnez %v6964_v51  ;;  %vm7095_vm9 = vcmp.lt.s32.totalorder %v6961_v27, 8  ;;  %v7106_v27 = vrot.slane %v4229_v15, 7  ;;  %3144 = vrot.lane.b32.xlu1 %v3143_v3, %s3377_s3  ;;  %v7155_v46 = vld [vmem:[#allocation50_spill] sm:$0xff] }
 0x16a   :  { %v4659_v58 = vpack.i.bf16 %v7093_v62, %v1299_v30  ;;  %v1445_v8 = vsel %vm7094_vm7, %v4584_v60, 0.0  ;;  %vm4668_vm12 = vmand %vm7096_vm15, %vm7095_vm9  ;;  %vm7101_vm7 = vnez %v6971_v1  ;;  %vm7104_vm9 = vcmask 1046528   ;;  %v7119_v1 = vld [vmem:[#allocation45_spill] sm:$0xff] }
 0x16b   :  { %v7098_v40 = vsel %vm4668_vm12, 4294967295, %v7097_v40  ;;  %v4676_v30 = vpack.i.bf16 %v1006_v35, %v1445_v8  ;;  %v1137_v51 = vsel %vm7101_vm7, %v4576_v5, 0.0  ;;  %v4686_v62 = vsel %vm7104_vm9, %v7103_v28, %v7102_v41  ;;  %v7131_v28 = vld [vmem:[#allocation69_spill] sm:$0xff] }
 0x16c   :  { %7105 = vst [vmem:[#allocation43_spill] sm:$0xff] %v4686_v62  ;;  %v4691_v24 = vsel %vm7107_vm11, %v680_v53, %v7106_v27  ;;  %vm7109_vm10 = vcmp.ge.s32.totalorder %v6960_v55, 0  ;;  %vm7110_vm13 = vnez %v6829_v59  ;;  %v7111_v35 = vmov 0  ;;  %3159 = vrot.lane.b32.xlu0 %v4659_v58, %s3377_s3 }
 0x16d   :  { %7108 = vst [vmem:[#allocation38_spill] sm:$0xff] %v4691_v24  ;;  %vm4697_vm15 = vmand %vm7110_vm13, %vm7109_vm10  ;;  %vm7116_vm9 = vcmp.ge.s32.totalorder %v3831_v22, 0  ;;  %v4721_v55 = vpack.i.bf16 %v1137_v51, %v1521_v38  ;;  %v1007_v53 = vsel %vm4395_vm14, %v4581_v44, 0.0  ;;  %vm7122_vm13 = vcmp.lt.s32.totalorder %v3878_v23, 8  ;;  %v7127_v38 = vld [vmem:[#allocation46_spill] sm:$0xff]  ;;  %3154 = vrot.lane.b32.xlu1 %v4543_v10, %s3378_s16 }
 0x16e   :  { %v7112_v35 = vsel %vm4697_vm15, 4294967295, %v7111_v35  ;;  %vm7113_vm7 = vmmov %vm7109_vm10  ;;  %vm7123_vm15 = vcmp.ge.s32.totalorder %v3878_v23, 0  ;;  %v7124_v3 = vmov 0  ;;  %v7128_v23 = vld [vmem:[#allocation94_spill] sm:$0xff]  ;;  %v7133_v44 = vmov 0 }
 0x16f   :  { %vm4705_vm12 = vmand %vm4535_vm1, %vm7113_vm7  ;;  %vm7120_vm7 = vnez %v6979_v20  ;;  %vm7129_vm14 = vnez %v7128_v23  ;;  %vm7136_vm1 = vcmp.ge.s32.totalorder %v3833_v47, 0  ;;  %v1008_v59 = vsel %vm4477_vm3, %v4686_v62, 0.0 }
 0x170   :  { %vm4713_vm11 = vmand %vm4562_vm8, %vm7116_vm9  ;;  %v1300_v21 = vsel %vm7120_vm7, %v4686_v62, 0.0  ;;  %vm7121_vm9 = vnez %v6985_v57  ;;  %v1138_v57 = vsel %vm4429_vm4, %v4584_v60, 0.0  ;;  %v1522_v51 = vsel %vm7129_vm14, %v4229_v15, 0.0  ;;  %3169 = vrot.lane.b32.xlu0 %v4721_v55, %s3378_s16 }
 0x171   :  { %v1446_v41 = vsel %vm7121_vm9, %v4691_v24, 0.0  ;;  %vm4736_vm10 = vmand %vm7123_vm15, %vm7122_vm13  ;;  %v4743_v20 = vpack.i.bf16 %v828_v36, %v1300_v21  ;;  %vm7130_vm15 = vcmp.ge.s32.totalorder %v3831_v22, 0  ;;  %vm7132_vm13 = vnez %v7131_v28  ;;  %v7142_v28 = vld [vmem:[#allocation86_spill] sm:$0xff]  ;;  %3164 = vrot.lane.b32.xlu1 %v4676_v30, %s3379_s17 }
 0x172   :  { %v7125_v3 = vsel %vm4736_vm10, 4294967295, %v7124_v3  ;;  %v4745_v56 = vpack.i.bf16 %v1007_v53, %v1446_v41  ;;  %vm4757_vm9 = vmand %vm7132_vm13, %vm7130_vm15  ;;  %vm7135_vm7 = vcmp.lt.s32.totalorder %v3833_v47, 8  ;;  %v7137_v36 = vmov 0  ;;  %v7141_v53 = vld [vmem:[#allocation89_spill] sm:$0xff]  ;;  %v7323_v22 = vld [vmem:[#allocation66_spill] sm:$0xff] }
 0x173   :  { %7126 = vst [vmem:[#allocation104_spill] sm:$0xff] %v7125_v3  ;;  %v7134_v44 = vsel %vm4757_vm9, 4294967295, %v7133_v44  ;;  %vm4765_vm8 = vmand %vm7136_vm1, %vm7135_vm7  ;;  %v4771_v21 = vpack.i.bf16 %v1138_v57, %v1522_v51  ;;  %v954_v41 = vrot.slane %v7141_v53, 1  ;;  %v968_v23 = vrot.slane %v7142_v28, 1  ;;  %v7147_v57 = vld [vmem:[#allocation55_spill] sm:$0xff] }
 0x174   :  { %v7138_v36 = vsel %vm4765_vm8, 4294967295, %v7137_v36  ;;  %vm7143_vm15 = vcmp.lt.s32.totalorder %v7013_v19, 8  ;;  %v7144_v47 = vmov 0  ;;  %v670_v51 = vrot.slane %v7141_v53, 7  ;;  %v7161_v53 = vld [vmem:[#allocation29_spill] sm:$0xff]  ;;  %3179 = vrot.lane.b32.xlu0 %v4745_v56, %s3379_s17 }
 0x175   :  { %7139 = vst [vmem:[#allocation105_spill] sm:$0xff] %v7138_v36  ;;  %vm4782_vm1 = vmand %vm4736_vm10, %vm7143_vm15  ;;  %vm7148_vm3 = vnez %v7024_v42  ;;  %vm7150_vm15 = vcmp.lt.s32.totalorder %v7019_v49, 8  ;;  %vm7151_vm7 = vcmp.ge.s32.totalorder %v7019_v49, 0  ;;  %v7152_v61 = vmov 0  ;;  %3174 = vrot.lane.b32.xlu1 %v4743_v20, %s3377_s3 }
 0x176   :  { %v7145_v47 = vsel %vm4782_vm1, 4294967295, %v7144_v47  ;;  %v1139_v62 = vsel %vm7148_vm3, %v4691_v24, 0.0  ;;  %vm4800_vm13 = vmand %vm7151_vm7, %vm7150_vm15  ;;  %v7156_v16 = vrot.slane %v4203_v4, 1  ;;  %vm7157_vm14 = vcmask 1046528  }
 0x177   :  { %v7153_v61 = vsel %vm4800_vm13, 4294967295, %v7152_v61  ;;  %vm7159_vm3 = vmmov %vm7157_vm14  ;;  %v1296_v33 = vsel %vm4598_vm0, %v4454_v17, 0.0  ;;  %vm7163_vm7 = vcmp.ge.s32.totalorder %v7025_v25, 0  ;;  %v7164_v10 = vmov 0 }
 0x178   :  { %7154 = vst [vmem:[#allocation44_spill] sm:$0xff] %v7153_v61  ;;  %v957_v42 = vsel %vm7157_vm14, %v954_v41, %v7156_v16  ;;  %v4813_v5 = vsel %vm7159_vm3, %v7158_v45, %v968_v23  ;;  %vm7162_vm1 = vmmov %vm7159_vm3  ;;  %v7166_v16 = vld [vmem:[#allocation57_spill] sm:$0xff]  ;;  %vm7167_vm4 = vnez %v7028_v9  ;;  %vm7169_vm0 = vnez %v7036_v31  ;;  %v7178_v9 = vld [vmem:[#allocation47_spill] sm:$0xff] }
 0x179   :  { %7160 = vst [vmem:[#allocation55_spill] sm:$0xff] %v4813_v5  ;;  %v955_v49 = vsel %vm7162_vm1, %v7161_v53, %v954_v41  ;;  %vm4824_vm15 = vmand %vm4765_vm8, %vm7163_vm7  ;;  %v1295_v45 = vsel %vm7167_vm4, %v957_v42, 0.0  ;;  %vm7168_vm1 = vnez %v7031_v32  ;;  %v7170_v17 = vrot.slane %v4203_v4, 7  ;;  %v7299_v53 = vld [vmem:[#allocation54_spill] sm:$0xff]  ;;  %3184 = vrot.lane.b32.xlu1 %v4771_v21, %s3378_s16 }
 0x17a   :  { %v7165_v10 = vsel %vm4824_vm15, 4294967295, %v7164_v10  ;;  %v1301_v52 = vsel %vm7168_vm1, %v4813_v5, 0.0  ;;  %v1002_v41 = vsel %vm7169_vm0, %v955_v49, 0.0  ;;  %vm7171_vm7 = vcmask 1040384  }
 0x17b   :  { %v4840_v24 = vsel %vm7171_vm7, %v670_v51, %v7170_v17  ;;  %vm7173_vm15 = vcmp.lt.s32.totalorder %v7042_v54, 8  ;;  %vm7174_vm14 = vcmp.ge.s32.totalorder %v7042_v54, 0  ;;  %v7175_v60 = vmov 0  ;;  %vm7181_vm0 = vmmov %vm7171_vm7 }
 0x17c   :  { %7172 = vst [vmem:[#allocation57_spill] sm:$0xff] %v4840_v24  ;;  %vm4846_vm3 = vmand %vm7174_vm14, %vm7173_vm15  ;;  %v4852_v32 = vpack.i.bf16 %v1301_v52, %v1295_v45  ;;  %v4854_v31 = vpack.i.bf16 %v1008_v59, %v1002_v41  ;;  %v7179_v49 = vrot.slane %v7142_v28, 7  ;;  %v7180_v17 = vrot.slane %v4229_v15, 7  ;;  %v7189_v59 = vld [vmem:[#allocation58_spill] sm:$0xff] }
 0x17d   :  { %v7176_v60 = vsel %vm4846_vm3, 4294967295, %v7175_v60  ;;  %vm7183_vm15 = vnez %v7047_v18  ;;  %vm7184_vm14 = vcmp.lt.s32.totalorder %v3851_v13, 8  ;;  %vm7185_vm7 = vcmp.ge.s32.totalorder %v3851_v13, 0  ;;  %v7190_v52 = vld [vmem:[#allocation30_spill] sm:$0xff] }
 0x17e   :  { %7177 = vst [vmem:[#allocation106_spill] sm:$0xff] %v7176_v60  ;;  %v4861_v4 = vsel %vm7181_vm0, %v7180_v17, %v7179_v49  ;;  %v1441_v54 = vsel %vm7183_vm15, %v4840_v24, 0.0  ;;  %vm4870_vm4 = vmand %vm7185_vm7, %vm7184_vm14  ;;  %v7186_v45 = vmov 0  ;;  %v4883_v41 = vsel %vm7181_vm0, %v7190_v52, %v670_v51  ;;  %v7207_v51 = vld [vmem:[#allocation52_spill] sm:$0xff]  ;;  %v7292_v52 = vld [vmem:[#allocation83_spill] sm:$0xff]  ;;  %3189 = vrot.lane.b32.xlu0 %v4852_v32, %s3377_s3  ;;  %3199 = vrot.lane.b32.xlu1 %v4854_v31, %s3379_s17 }
 0x17f   :  { %7182 = vst [vmem:[#allocation47_spill] sm:$0xff] %v4861_v4  ;;  %v7187_v45 = vsel %vm4870_vm4, 4294967295, %v7186_v45  ;;  %v1447_v18 = vsel %vm4590_vm5, %v4861_v4, 0.0  ;;  %7191 = vst [vmem:[#allocation58_spill] sm:$0xff] %v4883_v41  ;;  %v7192_v13 = vrot.slane %v7149_v0, 1  ;;  %vm7193_vm15 = vcmask 1046528  }
 0x180   :  { %7188 = vst [vmem:[#allocation107_spill] sm:$0xff] %v7187_v45  ;;  %v1003_v17 = vsel %vm4644_vm6, %v957_v42, 0.0  ;;  %vm7195_vm14 = vcmp.lt.s32.totalorder %v7013_v19, 8  ;;  %vm7198_vm5 = vcmp.ge.s32.totalorder %v7025_v25, 0  ;;  %vm7202_vm6 = vcmp.ge.s32.totalorder %v7071_v26, 0  ;;  %v7341_v32 = vld [vmem:[#allocation56_spill] sm:$0xff] }
 0x181   :  { %v4888_v49 = vsel %vm7193_vm15, %v968_v23, %v7192_v13  ;;  %vm4896_vm7 = vmand %vm4765_vm8, %vm7195_vm14  ;;  %vm7201_vm15 = vcmp.lt.s32.totalorder %v7071_v26, 8  ;;  %v7203_v43 = vmov 0  ;;  %v7206_v23 = vld [vmem:[#allocation51_spill] sm:$0xff]  ;;  %v4920_v42 = vpack.i.bf16 %v1447_v18, %v1441_v54 }
 0x182   :  { %7194 = vst [vmem:[#allocation108_spill] sm:$0xff] %v4888_v49  ;;  %vm4904_vm0 = vmand %vm4800_vm13, %vm7198_vm5  ;;  %vm7208_vm5 = vnez %v7082_v2  ;;  %v1302_v19 = vsel %vm4636_vm2, %v4888_v49, 0.0  ;;  %v7211_v30 = vmov 0  ;;  %v7214_v2 = vmov 0  ;;  %v7221_v54 = vld [vmem:[#allocation59_spill] sm:$0xff] }
 0x183   :  { %v7200_v14 = vsel %vm4904_vm0, 4294967295, %v7199_v14  ;;  %vm4912_vm1 = vmand %vm7202_vm6, %vm7201_vm15  ;;  %v1133_v13 = vsel %vm7208_vm5, %v4883_v41, 0.0  ;;  %vm7210_vm15 = vcmp.lt.s32.totalorder %v7089_v50, 8  ;;  %vm7216_vm14 = vcmp.lt.s32.totalorder %v7090_v34, 8  ;;  %3194 = vrot.lane.b32.xlu0 %v4920_v42, %s3379_s17 }
 0x184   :  { %v7204_v43 = vsel %vm4912_vm1, 4294967295, %v7203_v43  ;;  %vm4935_vm6 = vmand %vm4870_vm4, %vm7210_vm15  ;;  %vm7217_vm2 = vcmp.ge.s32.totalorder %v7090_v34, 0  ;;  %v7218_v12 = vmov 0  ;;  %v4957_v18 = vpack.i.bf16 %v1139_v62, %v1133_v13  ;;  %v7235_v13 = vld [vmem:[#allocation96_spill] sm:$0xff] }
 0x185   :  { %7205 = vst [vmem:[#allocation109_spill] sm:$0xff] %v7204_v43  ;;  %v7212_v30 = vsel %vm4935_vm6, 4294967295, %v7211_v30  ;;  %vm7213_vm9 = vmmov %vm7210_vm15  ;;  %v4959_v26 = vpack.i.bf16 %v1302_v19, %v1296_v33  ;;  %v7224_v34 = vmov 0  ;;  %vm7230_vm6 = vcmp.ge.s32.totalorder %v7100_v7, 0  ;;  %v7234_v19 = vld [vmem:[#allocation48_spill] sm:$0xff]  ;;  %v7357_v33 = vld [vmem:[#allocation74_spill] sm:$0xff] }
 0x186   :  { %vm4943_vm5 = vmand %vm4846_vm3, %vm7213_vm9  ;;  %vm7222_vm9 = vnez %v7098_v40  ;;  %v7231_v40 = vmov 0  ;;  %v7245_v8 = vrot.slane %v7149_v0, 7  ;;  %v7246_v27 = vrot.slane %v7142_v28, 7  ;;  %3204 = vrot.lane.b32.xlu1 %v4957_v18, %s3378_s16 }
 0x187   :  { %v7215_v2 = vsel %vm4943_vm5, 4294967295, %v7214_v2  ;;  %vm4951_vm8 = vmand %vm7217_vm2, %vm7216_vm14  ;;  %v1009_v50 = vsel %vm7222_vm9, %v4813_v5, 0.0  ;;  %vm7223_vm5 = vcmp.ge.s32.totalorder %v7099_v11, 0  ;;  %vm7229_vm9 = vcmp.lt.s32.totalorder %v7100_v7, 8  ;;  %3209 = vrot.lane.b32.xlu0 %v4959_v26, %s3377_s3 }
 0x188   :  { %v7219_v12 = vsel %vm4951_vm8, 4294967295, %v7218_v12  ;;  %vm4969_vm14 = vmand %vm4912_vm1, %vm7223_vm5  ;;  %v4991_v62 = vpack.i.bf16 %v1009_v50, %v1003_v17  ;;  %v1134_v5 = vsel %vm4705_vm12, %v4840_v24, 0.0  ;;  %v1140_v7 = vsel %vm4713_vm11, %v4861_v4, 0.0 }
 0x189   :  { %7220 = vst [vmem:[#allocation51_spill] sm:$0xff] %v7219_v12  ;;  %v7225_v34 = vsel %vm4969_vm14, 4294967295, %v7224_v34  ;;  %vm7226_vm2 = vmmov %vm7223_vm5  ;;  %vm7240_vm5 = vcmp.lt.s32.totalorder %v3923_v29, 8  ;;  %v7242_v50 = vmov 0  ;;  %vm7247_vm11 = vcmask 1040384  }
 0x18a   :  { %vm4977_vm15 = vmand %vm4870_vm4, %vm7226_vm2  ;;  %vm7236_vm2 = vnez %v7112_v35  ;;  %v7244_v35 = vld [vmem:[#allocation53_spill] sm:$0xff]  ;;  %v5026_v17 = vsel %vm7247_vm11, %v7246_v27, %v7245_v8  ;;  %v5028_v41 = vpack.i.bf16 %v1140_v7, %v1134_v5  ;;  %v7253_v55 = vmov 0  ;;  %v7262_v7 = vld [vmem:[#allocation64_spill] sm:$0xff]  ;;  %3219 = vrot.lane.b32.xlu1 %v4991_v62, %s3379_s17 }
 0x18b   :  { %vm4985_vm0 = vmand %vm7230_vm6, %vm7229_vm9  ;;  %v1442_v36 = vsel %vm7236_vm2, %v7235_v13, 0.0  ;;  %vm7237_vm6 = vcmp.lt.s32.totalorder %v7119_v1, 8  ;;  %vm7241_vm2 = vcmp.ge.s32.totalorder %v3923_v29, 0  ;;  %7248 = vst [vmem:[#allocation59_spill] sm:$0xff] %v5026_v17  ;;  %v7251_v29 = vld [vmem:[#allocation79_spill] sm:$0xff]  ;;  %v831_v13 = vsel %vm4736_vm10, %v7142_v28, 0.0 }
 0x18c   :  { %v7232_v40 = vsel %vm4985_vm0, 4294967295, %v7231_v40  ;;  %vm5006_vm9 = vmand %vm4985_vm0, %vm7237_vm6  ;;  %7249 = vst [vmem:[#allocation48_spill] sm:$0xff] %v5028_v41  ;;  %v387_v15 = vadd.f32 %v7251_v29, %v7250_v39  ;;  %v7256_v5 = vmov 0  ;;  %vm7258_vm12 = vcmp.lt.s32.totalorder %v3943_v37, 8  ;;  %v7290_v1 = vld [vmem:[#allocation67_spill] sm:$0xff] }
 0x18d   :  { %7233 = vst [vmem:[#allocation52_spill] sm:$0xff] %v7232_v40  ;;  %vm5014_vm14 = vmand %vm7241_vm2, %vm7240_vm5  ;;  %vm7255_vm2 = vcmp.ge.s32.totalorder %v7127_v38, 0  ;;  %vm7259_vm4 = vcmp.ge.s32.totalorder %v3943_v37, 0  ;;  %v7260_v39 = vmov 0  ;;  %v7266_v40 = vld [vmem:[#allocation10_spill] sm:$0xff]  ;;  %v7269_v20 = vmov 0 }
 0x18e   :  { %v7243_v50 = vsel %vm5014_vm14, 4294967295, %v7242_v50  ;;  %vm7252_vm5 = vmmov %vm7237_vm6  ;;  %v388_v28 = vadd.f32 %v7251_v29, %v7266_v40  ;;  %v7288_v4 = vmov 0  ;;  %v7303_v25 = vmov 0 }
 0x18f   :  { %vm5039_vm6 = vmand %vm4951_vm8, %vm7252_vm5  ;;  %vm7268_vm5 = vcmp.ge.s32.totalorder %v7140_v63, 0  ;;  %v7308_v21 = vrot.slane %v7149_v0, 1  ;;  %v7311_v43 = vrot.slane %v7149_v0, 7  ;;  %v7332_v58 = vmov 0 }
 0x190   :  { %v7254_v55 = vsel %vm5039_vm6, 4294967295, %v7253_v55  ;;  %vm5047_vm11 = vmand %vm4985_vm0, %vm7255_vm2  ;;  %vm7263_vm2 = vnez %v7134_v44  ;;  %vm7264_vm0 = vnez %v7145_v47  ;;  %v7272_v44 = vld [vmem:[#allocation63_spill] sm:$0xff]  ;;  %v5085_v47 = vmax.f32 %v387_v15, 0.0 }
 0x191   :  { %v7257_v5 = vsel %vm5047_vm11, 4294967295, %v7256_v5  ;;  %vm5055_vm10 = vmand %vm7259_vm4, %vm7258_vm12  ;;  %v1448_v8 = vsel %vm7263_vm2, %v5026_v17, 0.0  ;;  %v1010_v27 = vsel %vm7264_vm0, %v4888_v49, 0.0  ;;  %vm7265_vm4 = vnez %v7165_v10  ;;  %v7274_v49 = vld [vmem:[#allocation9_spill] sm:$0xff] }
 0x192   :  { %v7261_v39 = vsel %vm5055_vm10, 4294967295, %v7260_v39  ;;  %v1141_v37 = vsel %vm7265_vm4, %v5026_v17, 0.0  ;;  %vm7267_vm12 = vcmp.lt.s32.totalorder %v7140_v63, 8  ;;  %v5083_v24 = vpack.i.bf16 %v1448_v8, %v1442_v36  ;;  %7273 = vst [vmem:[#allocation8_spill] sm:$0xff] %v5085_v47  ;;  %v7286_v8 = vld [vmem:[#allocation12_spill] sm:$0xff] }
 0x193   :  { %vm5078_vm6 = vmand %vm7268_vm5, %vm7267_vm12  ;;  %v832_v10 = vsel %vm4846_vm3, %v7149_v0, 0.0  ;;  %v389_v40 = vadd.f32 %v7251_v29, %v7274_v49  ;;  %vm7275_vm0 = vcmp.ge.s32.totalorder %v7127_v38, 0  ;;  %v7276_v63 = vmov 0 }
 0x194   :  { %v7270_v20 = vsel %vm5078_vm6, 4294967295, %v7269_v20  ;;  %vm5096_vm5 = vmand %vm5014_vm14, %vm7275_vm0  ;;  %vm7278_vm4 = vcmp.lt.s32.totalorder %v7146_v6, 8  ;;  %v7279_v15 = vmov 0  ;;  %vm7281_vm2 = vcmp.lt.s32.totalorder %v7147_v57, 8  ;;  %3214 = vrot.lane.b32.xlu0 %v5083_v24, %s3379_s17 }
 0x195   :  { %7271 = vst [vmem:[#allocation53_spill] sm:$0xff] %v7270_v20  ;;  %v7277_v63 = vsel %vm5096_vm5, 4294967295, %v7276_v63  ;;  %vm5104_vm12 = vmand %vm5055_vm10, %vm7278_vm4  ;;  %vm7282_vm3 = vcmp.ge.s32.totalorder %v7147_v57, 0  ;;  %v7283_v36 = vmov 0  ;;  %v5116_v49 = vmax.f32 %v388_v28, 0.0  ;;  %v7291_v57 = vld [vmem:[#allocation11_spill] sm:$0xff] }
 0x196   :  { %v7280_v15 = vsel %vm5104_vm12, 4294967295, %v7279_v15  ;;  %vm5112_vm11 = vmand %vm7282_vm3, %vm7281_vm2  ;;  %v5120_v17 = vadd.f32 %v7251_v29, %v7286_v8  ;;  %vm7287_vm0 = vcmp.ge.s32.totalorder %v7155_v46, 0  ;;  %v5132_v38 = vmul.f32 %v7291_v57, %v7290_v1  ;;  %v7293_v28 = vld [vmem:[#allocation70_spill] sm:$0xff] }
 0x197   :  { %v7284_v36 = vsel %vm5112_vm11, 4294967295, %v7283_v36  ;;  %7285 = vst [vmem:[#allocation79_spill] sm:$0xff] %v5116_v49  ;;  %vm5126_vm4 = vmand %vm5078_vm6, %vm7287_vm0  ;;  %v972_v8 = vrot.slane %v5085_v47, 1  ;;  %v688_v60 = vrot.slane %v5085_v47, 7  ;;  %v1525_v11 = vsel %vm4800_vm13, %v5085_v47, 0.0 }
 0x198   :  { %v7289_v4 = vsel %vm5126_vm4, 4294967295, %v7288_v4  ;;  %v5144_v3 = vmax.f32 %v389_v40, 0.0  ;;  %vm7295_vm0 = vcmp.lt.s32.totalorder %v7166_v16, 8  ;;  %vm7296_vm4 = vcmp.ge.s32.totalorder %v7166_v16, 0 }
 0x199   :  { %vm5150_vm3 = vmand %vm7296_vm4, %vm7295_vm0  ;;  %v7297_v57 = vmov 0  ;;  %v5158_v56 = vpack.i.bf16 %v1141_v37, %v1525_v11  ;;  %v974_v40 = vrot.slane %v5116_v49, 1  ;;  %v690_v61 = vrot.slane %v5116_v49, 7  ;;  %v7307_v11 = vld [vmem:[#allocation71_spill] sm:$0xff] }
 0x19a   :  { %7294 = vst [vmem:[#allocation64_spill] sm:$0xff] %v5144_v3  ;;  %v7298_v57 = vsel %vm5150_vm3, 4294967295, %v7297_v57  ;;  %v1526_v16 = vsel %vm4912_vm1, %v5116_v49, 0.0  ;;  %vm7301_vm4 = vcmp.lt.s32.totalorder %v7178_v9, 8  ;;  %vm7302_vm0 = vcmp.ge.s32.totalorder %v7178_v9, 0 }
 0x19b   :  { %7300 = vst [vmem:[#allocation10_spill] sm:$0xff] %v5158_v56  ;;  %vm5169_vm2 = vmand %vm7302_vm0, %vm7301_vm4  ;;  %vm7309_vm10 = vcmask 1046528   ;;  %vm7312_vm1 = vcmask 1040384   ;;  %v833_v9 = vsel %vm4951_vm8, %v5085_v47, 0.0  ;;  %vm7313_vm4 = vcmp.lt.s32.totalorder %v7146_v6, 8 }
 0x19c   :  { %v7304_v25 = vsel %vm5169_vm2, 4294967295, %v7303_v25  ;;  %v5179_v37 = vsel %vm7309_vm10, %v7308_v21, %v972_v8  ;;  %v5184_v56 = vsel %vm7312_vm1, %v7311_v43, %v688_v60  ;;  %vm5194_vm0 = vmand %vm5078_vm6, %vm7313_vm4  ;;  %vm7316_vm10 = vcmp.ge.s32.totalorder %v7155_v46, 0 }
 0x19d   :  { %7305 = vst [vmem:[#allocation63_spill] sm:$0xff] %v7304_v25  ;;  %7310 = vst [vmem:[#allocation9_spill] sm:$0xff] %v5179_v37  ;;  %vm7319_vm13 = vcmp.lt.s32.totalorder %v7189_v59, 8  ;;  %vm7320_vm5 = vcmp.ge.s32.totalorder %v7189_v59, 0  ;;  %v1303_v20 = vsel %vm4896_vm7, %v5179_v37, 0.0  ;;  %vm7325_vm6 = vcmask 1046528  }
 0x19e   :  { %vm5202_vm1 = vmand %vm5112_vm11, %vm7316_vm10  ;;  %vm7324_vm10 = vnez %v7200_v14  ;;  %v5222_v0 = vsel %vm7325_vm6, %v972_v8, %v974_v40  ;;  %vm7327_vm8 = vcmask 1040384   ;;  %v7329_v59 = vmov 0  ;;  %v7334_v14 = vld [vmem:[#allocation73_spill] sm:$0xff] }
 0x19f   :  { %vm5210_vm12 = vmand %vm7320_vm5, %vm7319_vm13  ;;  %v1449_v47 = vsel %vm7324_vm10, %v5184_v56, 0.0  ;;  %7326 = vst [vmem:[#allocation12_spill] sm:$0xff] %v5222_v0  ;;  %v5225_v6 = vsel %vm7327_vm8, %v688_v60, %v690_v61  ;;  %vm7328_vm13 = vcmp.lt.s32.totalorder %v7206_v23, 8  ;;  %vm7331_vm7 = vcmp.ge.s32.totalorder %v7207_v51, 0 }
 0x1a0   :  { %vm5231_vm5 = vmand %vm5150_vm3, %vm7328_vm13  ;;  %v5247_v60 = vpack.i.bf16 %v831_v13, %v1303_v20  ;;  %v5249_v8 = vpack.i.bf16 %v1010_v27, %v1449_v47  ;;  %vm7335_vm10 = vnez %v7212_v30  ;;  %vm7336_vm13 = vnez %v7215_v2  ;;  %v7358_v20 = vld [vmem:[#allocation76_spill] sm:$0xff] }
 0x1a1   :  { %v7330_v59 = vsel %vm5231_vm5, 4294967295, %v7329_v59  ;;  %vm5239_vm4 = vmand %vm5169_vm2, %vm7331_vm7  ;;  %v1304_v46 = vsel %vm7335_vm10, %v5222_v0, 0.0  ;;  %v1011_v12 = vsel %vm7336_vm13, %v5179_v37, 0.0  ;;  %vm7337_vm7 = vcmp.lt.s32.totalorder %v7221_v54, 8 }
 0x1a2   :  { %v7333_v58 = vsel %vm5239_vm4, 4294967295, %v7332_v58  ;;  %vm7338_vm6 = vcmp.ge.s32.totalorder %v7221_v54, 0  ;;  %v7339_v41 = vmov 0  ;;  %v5269_v30 = vpack.i.bf16 %v832_v10, %v1304_v46  ;;  %3229 = vrot.lane.b32.xlu0 %v5247_v60, %s3377_s3 }
 0x1a3   :  { %vm5261_vm8 = vmand %vm7338_vm6, %vm7337_vm7  ;;  %vm7342_vm10 = vnez %v7225_v34  ;;  %v1142_v54 = vsel %vm4977_vm15, %v5184_v56, 0.0  ;;  %v7343_v13 = vrot.slane %v5144_v3, 1  ;;  %vm7344_vm6 = vcmask 1046528  }
 0x1a4   :  { %v7340_v41 = vsel %vm5261_vm8, 4294967295, %v7339_v41  ;;  %v1450_v2 = vsel %vm7342_vm10, %v5225_v6, 0.0  ;;  %vm7346_vm13 = vcmp.lt.s32.totalorder %v7206_v23, 8  ;;  %v7347_v46 = vmov 0 }
 0x1a5   :  { %v5280_v27 = vsel %vm7344_vm6, %v974_v40, %v7343_v13  ;;  %vm5286_vm7 = vmand %vm5169_vm2, %vm7346_vm13  ;;  %vm7349_vm4 = vcmp.ge.s32.totalorder %v7207_v51, 0  ;;  %vm7352_vm15 = vcmp.lt.s32.totalorder %v7234_v19, 8  ;;  %vm7353_vm6 = vcmp.ge.s32.totalorder %v7234_v19, 0  ;;  %v7438_v13 = vld [vmem:[#allocation48_spill] sm:$0xff] }
 0x1a6   :  { %7345 = vst [vmem:[#allocation11_spill] sm:$0xff] %v5280_v27  ;;  %v7348_v46 = vsel %vm5286_vm7, 4294967295, %v7347_v46  ;;  %vm5294_vm10 = vmand %vm5210_vm12, %vm7349_vm4  ;;  %v7354_v34 = vmov 0  ;;  %v5309_v47 = vpack.i.bf16 %v1011_v12, %v1450_v2  ;;  %v5311_v10 = vpack.i.bf16 %v1142_v54, %v1526_v16  ;;  %3224 = vrot.lane.b32.xlu1 %v7438_v13, %s3378_s16  ;;  %v2120_v2 = vld [vmem:[%s6501_s4 + $0xd0] sm:$0xff] }
 0x1a7   :  { %vm5302_vm5 = vmand %vm7353_vm6, %vm7352_vm15  ;;  %v1305_v40 = vsel %vm5006_vm9, %v5280_v27, 0.0  ;;  %v692_v19 = vrot.slane %v5144_v3, 7  ;;  %vm7359_vm4 = vcmp.lt.s32.totalorder %v7244_v35, 8  ;;  %vm7362_vm6 = vnez %v7254_v55  ;;  %v7447_v13 = vld [vmem:[#allocation18_spill] sm:$0xff] }
 0x1a8   :  { %v7355_v34 = vsel %vm5302_vm5, 4294967295, %v7354_v34  ;;  %vm5321_vm15 = vmand %vm5302_vm5, %vm7359_vm4  ;;  %v5325_v25 = vpack.i.bf16 %v833_v9, %v1305_v40  ;;  %v1012_v12 = vsel %vm7362_vm6, %v5222_v0, 0.0  ;;  %vm7363_vm2 = vnez %v7257_v5 }
 0x1a9   :  { %7356 = vst [vmem:[#allocation83_spill] sm:$0xff] %v7355_v34  ;;  %v1143_v45 = vsel %vm7363_vm2, %v5225_v6, 0.0  ;;  %v1527_v16 = vsel %vm5014_vm14, %v5144_v3, 0.0  ;;  %vm7364_vm9 = vmmov %vm7359_vm4  ;;  %vm7367_vm7 = vcmp.lt.s32.totalorder %v7262_v7, 8  ;;  %vm7368_vm6 = vcmp.ge.s32.totalorder %v7262_v7, 0 }
 0x1aa   :  { %vm5340_vm4 = vmand %vm5261_vm8, %vm7364_vm9  ;;  %v7369_v55 = vmov 0  ;;  %vm7371_vm2 = vcmask 1040384   ;;  %v5357_v9 = vpack.i.bf16 %v1143_v45, %v1527_v16  ;;  %v5360_v54 = vmax.f32 %v5120_v17, 0.0  ;;  %3234 = vrot.lane.b32.xlu1 %v5249_v8, %s3379_s17 }
 0x1ab   :  { %vm5348_vm13 = vmand %vm7368_vm6, %vm7367_vm7  ;;  %v5355_v5 = vsel %vm7371_vm2, %v690_v61, %v692_v19  ;;  %vm7373_vm9 = vnez %v7261_v39  ;;  %vm7374_vm7 = vcmp.ge.s32.totalorder %v7272_v44, 0  ;;  %v7375_v7 = vmov 0 }
 0x1ac   :  { %v7370_v55 = vsel %vm5348_vm13, 4294967295, %v7369_v55  ;;  %7372 = vst [vmem:[#allocation70_spill] sm:$0xff] %v5360_v54  ;;  %v834_v40 = vsel %vm7373_vm9, %v5116_v49, 0.0  ;;  %vm5369_vm6 = vmand %vm5348_vm13, %vm7374_vm7  ;;  %vm7377_vm2 = vnez %v7277_v63  ;;  %vm7378_vm14 = vnez %v7280_v15  ;;  %v7382_v63 = vld [vmem:[#allocation75_spill] sm:$0xff] }
 0x1ad   :  { %v7376_v7 = vsel %vm5369_vm6, 4294967295, %v7375_v7  ;;  %v1451_v61 = vsel %vm7377_vm2, %v5355_v5, 0.0  ;;  %v1013_v42 = vsel %vm7378_vm14, %v5280_v27, 0.0  ;;  %vm7379_vm9 = vnez %v7289_v4  ;;  %vm5390_vm6 = vmand %vm5302_vm5, %vm7374_vm7 }
 0x1ae   :  { %v1144_v17 = vsel %vm7379_vm9, %v5355_v5, 0.0  ;;  %v391_v45 = vadd.f32 %v7251_v29, %v5132_v38  ;;  %v5395_v16 = vpack.i.bf16 %v1012_v12, %v1451_v61  ;;  %v978_v15 = vrot.slane %v5360_v54, 1  ;;  %3244 = vrot.lane.b32.xlu1 %v5269_v30, %s3377_s3 }
 0x1af   :  { %v694_v4 = vrot.slane %v5360_v54, 7  ;;  %v1528_v38 = vsel %vm5112_vm11, %v5360_v54, 0.0  ;;  %vm7383_vm14 = vcmp.lt.s32.totalorder %v7293_v28, 8  ;;  %vm7384_vm9 = vcmp.ge.s32.totalorder %v7293_v28, 0 }
 0x1b0   :  { %vm5406_vm7 = vmand %vm7384_vm9, %vm7383_vm14  ;;  %v7385_v34 = vmov 0  ;;  %v5410_v27 = vpack.i.bf16 %v1144_v17, %v1528_v38  ;;  %v5412_v12 = vmax.f32 %v391_v45, 0.0  ;;  %v835_v61 = vsel %vm5150_vm3, %v5144_v3, 0.0 }
 0x1b1   :  { %v7386_v34 = vsel %vm5406_vm7, 4294967295, %v7385_v34  ;;  %v836_v0 = vsel %vm5261_vm8, %v5360_v54, 0.0  ;;  %vm7389_vm2 = vcmp.lt.s32.totalorder %v7299_v53, 8  ;;  %vm7390_vm5 = vcmp.ge.s32.totalorder %v7299_v53, 0 }
 0x1b2   :  { %7387 = vst [vmem:[#allocation54_spill] sm:$0xff] %v5410_v27  ;;  %7388 = vst [vmem:[#allocation65_spill] sm:$0xff] %v5412_v12  ;;  %v7391_v28 = vmov 0  ;;  %v7394_v17 = vrot.slane %v5144_v3, 1  ;;  %vm7395_vm9 = vcmask 1046528   ;;  %vm7396_vm3 = vcmask 1040384   ;;  %3254 = vrot.lane.b32.xlu1 %v5311_v10, %s3378_s16 }
 0x1b3   :  { %vm5424_vm14 = vmand %vm7390_vm5, %vm7389_vm2  ;;  %v5436_v38 = vsel %vm7396_vm3, %v692_v19, %v694_v4  ;;  %v1530_v53 = vsel %vm5348_vm13, %v7292_v52, 0.0  ;;  %vm7397_vm5 = vcmp.lt.s32.totalorder %v7306_v48, 8  ;;  %v7398_v26 = vmov 0  ;;  %v7577_v19 = vld [vmem:[#allocation96_spill] sm:$0xff]  ;;  %v7761_v24 = vld [vmem:[#allocation70_spill] sm:$0xff] }
 0x1b4   :  { %v7392_v28 = vsel %vm5424_vm14, 4294967295, %v7391_v28  ;;  %v5433_v45 = vsel %vm7395_vm9, %v7394_v17, %v978_v15  ;;  %vm5446_vm2 = vmand %vm5406_vm7, %vm7397_vm5  ;;  %vm7400_vm9 = vcmp.lt.s32.totalorder %v7307_v11, 8  ;;  %vm7401_vm8 = vcmp.ge.s32.totalorder %v7307_v11, 0 }
 0x1b5   :  { %7393 = vst [vmem:[#allocation71_spill] sm:$0xff] %v7392_v28  ;;  %v7399_v26 = vsel %vm5446_vm2, 4294967295, %v7398_v26  ;;  %vm5454_vm3 = vmand %vm7401_vm8, %vm7400_vm9  ;;  %v1306_v17 = vsel %vm5194_vm0, %v5433_v45, 0.0  ;;  %v1452_v54 = vsel %vm5202_vm1, %v5436_v38, 0.0  ;;  %v980_v3 = vrot.slane %v5412_v12, 1 }
 0x1b6   :  { %v696_v37 = vrot.slane %v5412_v12, 7  ;;  %vm7404_vm8 = vcmp.ge.s32.totalorder %v7323_v22, 0  ;;  %v5476_v62 = vpack.i.bf16 %v834_v40, %v1306_v17  ;;  %v5478_v1 = vpack.i.bf16 %v1013_v42, %v1452_v54  ;;  %3264 = vrot.lane.b32.xlu1 %v5395_v16, %s3379_s17 }
 0x1b7   :  { %vm5472_vm5 = vmand %vm5424_vm14, %vm7404_vm8  ;;  %vm7407_vm0 = vnez %v7330_v59  ;;  %vm7408_vm1 = vnez %v7333_v58  ;;  %vm7409_vm9 = vcmp.lt.s32.totalorder %v7334_v14, 8  ;;  %vm7410_vm13 = vcmp.ge.s32.totalorder %v7334_v14, 0 }
 0x1b8   :  { %v1014_v43 = vsel %vm7407_vm0, %v5433_v45, 0.0  ;;  %v1145_v49 = vsel %vm7408_vm1, %v5436_v38, 0.0  ;;  %vm5490_vm8 = vmand %vm7410_vm13, %vm7409_vm9  ;;  %v7411_v27 = vmov 0  ;;  %vm7413_vm11 = vcmask 1046528  }
 0x1b9   :  { %v7412_v27 = vsel %vm5490_vm8, 4294967295, %v7411_v27  ;;  %v5495_v40 = vsel %vm7413_vm11, %v978_v15, %v980_v3  ;;  %vm7414_vm2 = vcmask 1040384   ;;  %v1529_v59 = vsel %vm5210_vm12, %v5412_v12, 0.0  ;;  %vm7416_vm0 = vmmov %vm7413_vm11 }
 0x1ba   :  { %v5498_v54 = vsel %vm7414_vm2, %v694_v4, %v696_v37  ;;  %v7415_v58 = vrot.slane %v7292_v52, 1  ;;  %vm7417_vm13 = vcmp.lt.s32.totalorder %v7341_v32, 8  ;;  %vm7418_vm1 = vcmp.ge.s32.totalorder %v7341_v32, 0  ;;  %3274 = vrot.lane.b32.xlu1 %v5476_v62, %s3377_s3 }
 0x1bb   :  { %vm5512_vm9 = vmand %vm7418_vm1, %vm7417_vm13  ;;  %v7419_v14 = vmov 0  ;;  %vm7422_vm11 = vnez %v7348_v46  ;;  %v5524_v4 = vpack.i.bf16 %v1145_v49, %v1529_v59  ;;  %vm7424_vm2 = vcmp.lt.s32.totalorder %v7306_v48, 8 }
 0x1bc   :  { %v5506_v42 = vsel %vm7416_vm0, %v980_v3, %v7415_v58  ;;  %v7420_v14 = vsel %vm5512_vm9, 4294967295, %v7419_v14  ;;  %v1307_v15 = vsel %vm7422_vm11, %v5495_v40, 0.0  ;;  %v1453_v3 = vsel %vm5294_vm10, %v5498_v54, 0.0  ;;  %vm5533_vm0 = vmand %vm5424_vm14, %vm7424_vm2 }
 0x1bd   :  { %7421 = vst [vmem:[#allocation66_spill] sm:$0xff] %v7420_v14  ;;  %7423 = vst [vmem:[#allocation73_spill] sm:$0xff] %v5524_v4  ;;  %v1308_v32 = vsel %vm5321_vm15, %v5506_v42, 0.0  ;;  %vm7427_vm13 = vcmp.ge.s32.totalorder %v7323_v22, 0  ;;  %vm7430_vm10 = vcmp.lt.s32.totalorder %v7357_v33, 8  ;;  %vm7433_vm11 = vcmp.lt.s32.totalorder %v7358_v20, 8 }
 0x1be   :  { %vm5541_vm1 = vmand %vm5454_vm3, %vm7427_vm13  ;;  %vm7434_vm2 = vcmp.ge.s32.totalorder %v7358_v20, 0  ;;  %v7435_v31 = vmov 0  ;;  %v5563_v17 = vpack.i.bf16 %v835_v61, %v1307_v15  ;;  %v5565_v59 = vpack.i.bf16 %v1014_v43, %v1453_v3  ;;  %v2118_v20 = vld [vmem:[%s6501_s4 + $0xc0] sm:$0xff]  ;;  %v2119_v4 = vld [vmem:[%s6501_s4 + $0xc8] sm:$0xff] }
 0x1bf   :  { %vm5549_vm15 = vmand %vm5512_vm9, %vm7430_vm10  ;;  %v5567_v58 = vpack.i.bf16 %v836_v0, %v1308_v32  ;;  %v7442_v28 = vrot.slane %v7292_v52, 7  ;;  %vm7443_vm13 = vcmask 1040384   ;;  %v2102_v61 = vld [vmem:[%s6501_s4 + $0x40] sm:$0xff]  ;;  %v1015_v0 = vsel %vm5340_vm4, %v5495_v40, 0.0  ;;  %v7445_v43 = vld [vmem:[#allocation67_spill] sm:$0xff] }
 0x1c0   :  { %vm5557_vm14 = vmand %vm7434_vm2, %vm7433_vm11  ;;  %7439 = vst [vmem:[#allocation76_spill] sm:$0xff] %v5563_v17  ;;  %vm7444_vm10 = vnez %v7376_v7  ;;  %v7446_v15 = vld [vmem:[#allocation13_spill] sm:$0xff]  ;;  %v2121_v7 = vld [vmem:[%s6501_s4 + $0xd8] sm:$0xff]  ;;  %vm7448_vm4 = vcmp.ge.s32.totalorder %v7447_v13, 0  ;;  %vm7455_vm2 = vcmp.lt.s32.totalorder %v7357_v33, 8  ;;  %v7521_v21 = vmov 0 }
 0x1c1   :  { %v7436_v31 = vsel %vm5557_vm14, 4294967295, %v7435_v31  ;;  %7440 = vst [vmem:[#allocation75_spill] sm:$0xff] %v5565_v59  ;;  %7441 = vst [vmem:[#allocation48_spill] sm:$0xff] %v5567_v58  ;;  %v5572_v14 = vsel %vm7443_vm13, %v696_v37, %v7442_v28  ;;  %v1146_v28 = vsel %vm5390_vm6, %v5498_v54, 0.0  ;;  %v368_v3 = vmul.f32 %v7446_v15, %v7445_v43  ;;  %v2103_v32 = vld [vmem:[%s6501_s4 + $0x48] sm:$0xff]  ;;  %v7449_v58 = vld [vmem:[#allocation60_spill] sm:$0xff] }
 0x1c2   :  { %7437 = vst [vmem:[#allocation56_spill] sm:$0xff] %v7436_v31  ;;  %v1454_v37 = vsel %vm7444_vm10, %v5572_v14, 0.0  ;;  %vm7450_vm11 = vnez %v7449_v58  ;;  %v5613_v15 = vpack.i.bf16 %v1146_v28, %v1530_v53  ;;  %vm5619_vm13 = vmand %vm5490_vm8, %vm7455_vm2  ;;  %vm7458_vm10 = vcmp.ge.s32.totalorder %v7382_v63, 0  ;;  %v2105_v28 = vld [vmem:[%s6501_s4 + $0x58] sm:$0xff]  ;;  %v7463_v31 = vld [vmem:[#allocation34_spill] sm:$0xff] }
 0x1c3   :  { %vm5607_vm6 = vmand %vm7450_vm11, %vm7448_vm4  ;;  %v5611_v43 = vpack.i.bf16 %v1015_v0, %v1454_v37  ;;  %v393_v58 = vadd.f32 %v7251_v29, %v368_v3  ;;  %v3049_v0 = vpack.c.bf16 %v2119_v4, %v2118_v20  ;;  %v2104_v37 = vld [vmem:[%s6501_s4 + $0x50] sm:$0xff]  ;;  %v3051_v29 = vpack.c.bf16 %v2103_v32, %v2102_v61  ;;  %v2122_v3 = vld [vmem:[%s6501_s4 + $0xe0] sm:$0xff] }
 0x1c4   :  { %7454 = vst [vmem:[#allocation13_spill] sm:$0xff] %v5613_v15  ;;  %vm5630_vm4 = vmand %vm5557_vm14, %vm7458_vm10  ;;  %v3053_v60 = vpack.c.bf16 %v2121_v7, %v2120_v2  ;;  %v2123_v4 = vld [vmem:[%s6501_s4 + $0xe8] sm:$0xff]  ;;  %v2106_v20 = vld [vmem:[%s6501_s4 + $0x60] sm:$0xff]  ;;  %v1147_v8 = vsel %vm5472_vm5, %v5572_v14, 0.0  ;;  %v837_v7 = vsel %vm5406_vm7, %v5412_v12, 0.0  ;;  %vm7462_vm5 = vnez %v7399_v26 }
 0x1c5   :  { %7453 = vst [vmem:[#allocation67_spill] sm:$0xff] %v5611_v43  ;;  %v5651_v13 = vmax.f32 %v393_v58, 0.0  ;;  %3089 = vmatprep.subr.bf16.mxu1 %v3049_v0  ;;  %v2107_v61 = vld [vmem:[%s6501_s4 + $0x68] sm:$0xff]  ;;  %v2124_v32 = vld [vmem:[%s6501_s4 + $0xf0] sm:$0xff]  ;;  %v2125_v2 = vld [vmem:[%s6501_s4 + $0xf8] sm:$0xff]  ;;  %3050 = vmatprep.subr.bf16.mxu0 %v3049_v0  ;;  %v1016_v11 = vsel %vm7462_vm5, %v5506_v42, 0.0  ;;  %v3055_v58 = vpack.c.bf16 %v2105_v28, %v2104_v37  ;;  %v3057_v37 = vpack.c.bf16 %v2123_v4, %v2122_v3 }
 0x1c6   :  { %3097 = vmatpush3.bf16.msra.mxu1 %v3051_v29  ;;  %3052 = vmatpush3.bf16.msra.mxu0 %v3051_v29  ;;  %vm7464_vm11 = vcmp.ge.s32.totalorder %v7463_v31, 0  ;;  %v7465_v33 = vld [vmem:[#allocation72_spill] sm:$0xff]  ;;  %v7467_v15 = vmov 0  ;;  %v7469_v0 = vld [vmem:[#allocation10_spill] sm:$0xff]  ;;  %v7474_v28 = vmov 0  ;;  %v3061_v17 = vpack.c.bf16 %v2125_v2, %v2124_v32 }
 0x1c7   :  { %7461 = vst [vmem:[#allocation18_spill] sm:$0xff] %v5651_v13  ;;  %vm7466_vm2 = vnez %v7465_v33  ;;  %3239 = vrot.lane.b32.xlu0 %v7469_v0, %s3378_s16  ;;  %v984_v12 = vrot.slane %v5651_v13, 1  ;;  %v1130_v43 = vrot.slane %v5651_v13, 7  ;;  %v1531_v26 = vsel %vm5454_vm3, %v5651_v13, 0.0  ;;  %3090 = vmatprep.subr.bf16.mxu1 %v3053_v60  ;;  %v7470_v31 = vld [vmem:[#allocation36_spill] sm:$0xff]  ;;  %v7478_v4 = vld [vmem:[#allocation106_spill] sm:$0xff] }
 0x1c8   :  { %vm5675_vm10 = vmand %vm7466_vm2, %vm7464_vm11  ;;  %vm7471_vm5 = vcmp.ge.s32.totalorder %v7470_v31, 0  ;;  %v7472_v33 = vld [vmem:[#allocation104_spill] sm:$0xff]  ;;  %v5696_v29 = vpack.i.bf16 %v1147_v8, %v1531_v26  ;;  %v838_v0 = vsel %vm5490_vm8, %v7292_v52, 0.0  ;;  %v3059_v13 = vpack.c.bf16 %v2107_v61, %v2106_v20  ;;  %3054 = vmatprep.subr.bf16.mxu0 %v3053_v60  ;;  %v7486_v20 = vld [vmem:[#allocation29_spill] sm:$0xff] }
 0x1c9   :  { %v7468_v15 = vsel %vm5675_vm10, 4294967295, %v7467_v15  ;;  %vm7473_vm11 = vnez %v7472_v33  ;;  %v7476_v3 = vld [vmem:[#allocation40_spill] sm:$0xff]  ;;  %vm7479_vm9 = vnez %v7478_v4  ;;  %v7480_v31 = vmov 0  ;;  %v7488_v61 = vld [vmem:[#allocation30_spill] sm:$0xff] }
 0x1ca   :  { %vm5690_vm2 = vmand %vm7473_vm11, %vm7471_vm5  ;;  %vm7477_vm14 = vcmp.ge.s32.totalorder %v7476_v3, 0  ;;  %v7482_v33 = vrot.slane %v7292_v52, 1  ;;  %vm7483_vm11 = vcmask 1046528   ;;  %v7484_v8 = vrot.slane %v7292_v52, 7  ;;  %v7490_v2 = vld [vmem:[#allocation46_spill] sm:$0xff]  ;;  %v7492_v3 = vld [vmem:[#allocation51_spill] sm:$0xff]  ;;  %3098 = vmatpush3.bf16.msra.mxu1 %v3055_v58  ;;  %3056 = vmatpush3.bf16.msra.mxu0 %v3055_v58 }
 0x1cb   :  { %v7475_v28 = vsel %vm5690_vm2, 4294967295, %v7474_v28  ;;  %vm5705_vm5 = vmand %vm7479_vm9, %vm7477_vm14  ;;  %vm7485_vm7 = vcmask 1040384   ;;  %vm7491_vm14 = vcmp.ge.s32.totalorder %v7490_v2, 0  ;;  %vm7493_vm9 = vnez %v7492_v3  ;;  %v7496_v2 = vld [vmem:[#allocation45_spill] sm:$0xff]  ;;  %3249 = vrot.lane.b32.xlu0 %v5309_v47, %s3379_s17  ;;  %3091 = vmatprep.subr.bf16.mxu1 %v3057_v37  ;;  %v2108_v58 = vld [vmem:[%s6501_s4 + $0x70] sm:$0xff] }
 0x1cc   :  { %v7481_v31 = vsel %vm5705_vm5, 4294967295, %v7480_v31  ;;  %v5712_v30 = vsel %vm7483_vm11, %v7482_v33, %v984_v12  ;;  %v5717_v26 = vsel %vm7485_vm7, %v7484_v8, %v1130_v43  ;;  %vm7487_vm8 = vmmov %vm7483_vm11  ;;  %3058 = vmatprep.subr.bf16.mxu0 %v3057_v37  ;;  %v7533_v16 = vmov 0 }
 0x1cd   :  { %v5721_v60 = vsel %vm7487_vm8, %v984_v12, %v7486_v20  ;;  %vm7489_vm2 = vmmov %vm7485_vm7  ;;  %v1309_v33 = vsel %vm5533_vm0, %v5712_v30, 0.0  ;;  %v1455_v12 = vsel %vm5541_vm1, %v5717_v26, 0.0  ;;  %v1017_v8 = vsel %vm5619_vm13, %v5712_v30, 0.0 }
 0x1ce   :  { %v1439_v32 = vsel %vm7489_vm2, %v1130_v43, %v7488_v61  ;;  %vm5729_vm5 = vmand %vm7493_vm9, %vm7491_vm14  ;;  %v1310_v43 = vsel %vm5549_vm15, %v5721_v60, 0.0  ;;  %vm7497_vm7 = vcmp.lt.s32.totalorder %v7496_v2, 8  ;;  %vm7498_vm8 = vnez %v7243_v50  ;;  %v2109_v50 = vld [vmem:[%s6501_s4 + $0x78] sm:$0xff]  ;;  %v7501_v2 = vld [vmem:[#allocation50_spill] sm:$0xff]  ;;  %3099 = vmatpush3.bf16.msra.mxu1 %v3059_v13  ;;  %3060 = vmatpush3.bf16.msra.mxu0 %v3059_v13 }
 0x1cf   :  { %vm5749_vm2 = vmand %vm7498_vm8, %vm7497_vm7  ;;  %v3318_v46 = vpack.i.bf16 %v837_v7, %v1309_v33  ;;  %v3323_v49 = vpack.i.bf16 %v1016_v11, %v1455_v12  ;;  %v3333_v3 = vpack.i.bf16 %v838_v0, %v1310_v43  ;;  %v1456_v59 = vsel %vm5630_vm4, %v1439_v32, 0.0  ;;  %v2126_v7 = vld [vmem:[%s6501_s4 + $0x100] sm:$0xff]  ;;  %v2127_v11 = vld [vmem:[%s6501_s4 + $0x108] sm:$0xff]  ;;  %3259 = vrot.lane.b32.xlu0 %v5325_v25, %s3377_s3  ;;  %3092 = vmatprep.subr.bf16.mxu1 %v3061_v17 }
 0x1d0   :  { %vm7502_vm0 = vcmp.ge.s32.totalorder %v7501_v2, 0  ;;  %vm7503_vm1 = vnez %v7261_v39  ;;  %v3338_v53 = vpack.i.bf16 %v1017_v8, %v1456_v59  ;;  %v7506_v0 = vld [vmem:[#allocation49_spill] sm:$0xff]  ;;  %vm7508_vm4 = vnez %v7284_v36  ;;  %v7511_v32 = vld [vmem:[#allocation103_spill] sm:$0xff]  ;;  %v7515_v36 = vld [vmem:[#allocation38_spill] sm:$0xff]  ;;  %3062 = vmatprep.subr.bf16.mxu0 %v3061_v17 }
 0x1d1   :  { %vm5767_vm15 = vmand %vm7503_vm1, %vm7502_vm0  ;;  %vm7507_vm13 = vcmp.lt.s32.totalorder %v7506_v0, 8  ;;  %vm7512_vm14 = vcmp.lt.s32.totalorder %v7206_v23, 8  ;;  %v3063_v33 = vpack.c.bf16 %v2109_v50, %v2108_v58  ;;  %vm7516_vm7 = vcmp.lt.s32.totalorder %v7244_v35, 8  ;;  %v7523_v35 = vld [vmem:[#allocation47_spill] sm:$0xff]  ;;  %v7543_v58 = vld [vmem:[#allocation54_spill] sm:$0xff] }
 0x1d2   :  { %vm5783_vm11 = vmand %vm7508_vm4, %vm7507_vm13  ;;  %vm7517_vm8 = vnez %v7370_v55  ;;  %v7518_v43 = vmov 0  ;;  %v5811_v23 = vpack.c.bf16 %v2127_v11, %v2126_v7  ;;  %vm7525_vm4 = vcmp.ge.s32.totalorder %v7207_v51, 0  ;;  %v7529_v25 = vld [vmem:[#allocation59_spill] sm:$0xff]  ;;  %3284 = vrot.lane.b32.xlu1 %v7543_v58, %s3378_s16  ;;  %v7544_v50 = vld [vmem:[#allocation76_spill] sm:$0xff] }
 0x1d3   :  { %vm5794_vm9 = vmand %vm5210_vm12, %vm7512_vm14  ;;  %vm7520_vm12 = vcmp.lt.s32.totalorder %v7306_v48, 8  ;;  %vm7526_vm14 = vnez %v7298_v57  ;;  %v7527_v48 = vmov 0  ;;  %3100 = vmatpush3.bf16.msra.mxu1 %v3063_v33  ;;  %3064 = vmatpush3.bf16.msra.mxu0 %v3063_v33  ;;  %v7537_v57 = vmov 0  ;;  %v7545_v2 = vld [vmem:[#allocation75_spill] sm:$0xff]  ;;  %v7546_v7 = vld [vmem:[#allocation73_spill] sm:$0xff] }
 0x1d4   :  { %vm5805_vm0 = vmand %vm7517_vm8, %vm7516_vm7  ;;  %vm7531_vm8 = vcmp.ge.s32.totalorder %v7272_v44, 0  ;;  %3269 = vrot.lane.b32.xlu0 %v5357_v9, %s3378_s16  ;;  %3066 = vmatprep.subr.bf16.mxu0 %v5811_v23  ;;  %v7547_v11 = vld [vmem:[#allocation48_spill] sm:$0xff]  ;;  %v7548_v0 = vld [vmem:[#allocation67_spill] sm:$0xff] }
 0x1d5   :  { %v7519_v43 = vsel %vm5805_vm0, 4294967295, %v7518_v43  ;;  %vm5817_vm1 = vmand %vm5454_vm3, %vm7520_vm12  ;;  %vm7530_vm3 = vnez %v7481_v31  ;;  %vm7532_vm12 = vnez %v7340_v41  ;;  %v7551_v33 = vld [vmem:[#allocation66_spill] sm:$0xff]  ;;  %v7563_v13 = vld [vmem:[#allocation57_spill] sm:$0xff] }
 0x1d6   :  { %v7522_v21 = vsel %vm5817_vm1, 4294967295, %v7521_v21  ;;  %vm5830_vm7 = vmand %vm7526_vm14, %vm7525_vm4  ;;  %vm7535_vm4 = vcmp.ge.s32.totalorder %v7323_v22, 0  ;;  %vm7536_vm14 = vnez %v7386_v34  ;;  %v7541_v22 = vmov 0  ;;  %3294 = vrot.lane.b32.xlu1 %v7545_v2, %s3379_s17  ;;  %v7561_v59 = vld [vmem:[#allocation78_spill] sm:$0xff] }
 0x1d7   :  { %v7528_v48 = vsel %vm5830_vm7, 4294967295, %v7527_v48  ;;  %vm5841_vm10 = vmand %vm7532_vm12, %vm7531_vm8  ;;  %vm7539_vm8 = vcmp.ge.s32.totalorder %v7382_v63, 0  ;;  %vm7540_vm12 = vnez %v7412_v27  ;;  %v7566_v51 = vld [vmem:[#allocation22_spill] sm:$0xff] }
 0x1d8   :  { %v7534_v16 = vsel %vm5841_vm10, 4294967295, %v7533_v16  ;;  %vm5852_vm13 = vmand %vm7536_vm14, %vm7535_vm4  ;;  %3279 = vrot.lane.b32.xlu0 %v5478_v1, %s3379_s17  ;;  %v7549_v1 = vld [vmem:[#allocation13_spill] sm:$0xff]  ;;  %vm7567_vm1 = vcmp.ge.s32.totalorder %v7566_v51, 0  ;;  %v7574_v51 = vld [vmem:[#allocation92_spill] sm:$0xff] }
 0x1d9   :  { %v7538_v57 = vsel %vm5852_vm13, 4294967295, %v7537_v57  ;;  %vm5869_vm4 = vmand %vm7540_vm12, %vm7539_vm8  ;;  %vm6753_vm13 = vcmask 523264   ;;  %v7706_v31 = vld [vmem:[#allocation62_spill] sm:$0xff] }
 0x1da   :  { %v7542_v22 = vsel %vm5869_vm4, 4294967295, %v7541_v22  ;;  %3304 = vrot.lane.b32.xlu1 %v7547_v11, %s3377_s3  ;;  %vm7550_vm14 = vmmov %vm7539_vm8  ;;  %vm7552_vm8 = vnez %v7551_v33 }
 0x1db   :  { %vm1081_vm12 = vmand %vm7552_vm8, %vm7550_vm14  ;;  %vm7562_vm8 = vnez %v7561_v59  ;;  %v7568_v59 = vld [vmem:[#allocation81_spill] sm:$0xff] }
 0x1dc   :  { %3289 = vrot.lane.b32.xlu0 %v7544_v50, %s3377_s3  ;;  %v1148_v58 = vsel %vm1081_vm12, %v5717_v26, 0.0  ;;  %v7553_v50 = vmov 0.0   ;;  %v7556_v26 = vld [vmem:[#allocation77_spill] sm:$0xff] }
 0x1dd   :  { %v3343_v2 = vpack.i.bf16 %v1148_v58, %v7553_v50  ;;  %vm7557_vm12 = vnez %v7556_v26 }
 0x1de   :  { %3314 = vrot.lane.b32.xlu1 %v7549_v1, %s3378_s16 }
 0x1e0   :  { %3299 = vrot.lane.b32.xlu0 %v7546_v7, %s3378_s16 }
 0x1e2   :  { %3324 = vrot.lane.b32.xlu1 %v3323_v49, %s3379_s17  ;;  %v5930_v49 = vpop.permute.xlu0 %3114 }
 0x1e4   :  { %3309 = vrot.lane.b32.xlu0 %v7548_v0, %s3379_s17  ;;  %v7554_v0 = vld [vmem:[#allocation20_spill] sm:$0xff] }
 0x1e5   :  { %vm7555_vm14 = vcmp.ge.s32.totalorder %v7554_v0, 0 }
 0x1e6   :  { %3334 = vrot.lane.b32.xlu1 %v3333_v3, %s3377_s3  ;;  %v5932_v63 = vpop.permute.xlu0 %3124  ;;  %vm5940_vm4 = vmand %vm7557_vm12, %vm7555_vm14  ;;  %vm7564_vm14 = vcmask 261120  }
 0x1e7   :  { %v718_v27 = vsel %vm5940_vm4, %v7563_v13, 0.0  ;;  %vm7565_vm12 = vmmov %vm7564_vm14  ;;  %vm7572_vm4 = vcmask 785408  }
 0x1e8   :  { %3319 = vrot.lane.b32.xlu0 %v3318_v46, %s3377_s3  ;;  %v5928_v46 = vpop.permute.xlu1 %3109  ;;  %vm7573_vm0 = vmmov %vm7572_vm4 }
 0x1ea   :  { %3344 = vrot.lane.b32.xlu1 %v3343_v2, %s3378_s16  ;;  %v3130_v11 = vpop.permute.xlu0 %3129  ;;  %v7560_v2 = vld [vmem:[#allocation87_spill] sm:$0xff] }
 0x1eb   :  { %v3131_v1 = vunpack.i.l.bf16 %v3130_v11  ;;  %v1215_v8 = vsel %vm7562_vm8, %v7560_v2, 0.0  ;;  %vm7569_vm8 = vnez %v7568_v59 }
 0x1ec   :  { %3329 = vrot.lane.b32.xlu0 %v5696_v29, %s3378_s16  ;;  %v5934_v7 = vpop.permute.xlu1 %3119  ;;  %vm5956_vm10 = vmand %vm7569_vm8, %vm7567_vm1 }
 0x1ed   :  { %v719_v55 = vsel %vm5956_vm10, %v7577_v19, 0.0  ;;  %vm7578_vm1 = vmmov %vm7565_vm12 }
 0x1ee   :  { %v3135_v58 = vpop.permute.xlu0 %3134 }
 0x1ef   :  { %v3137_v26 = vunpack.i.h.bf16 %v3135_v58  ;;  %v3136_v62 = vunpack.i.l.bf16 %v3135_v58 }
 0x1f0   :  { %3339 = vrot.lane.b32.xlu0 %v3338_v53, %s3379_s17  ;;  %v3140_v29 = vpop.permute.xlu1 %3139  ;;  %v3132_v53 = vunpack.i.h.bf16 %v3130_v11  ;;  %v2048_v11 = vsel %vm7564_vm14, %v1215_v8, %v3131_v1 }
 0x1f1   :  { %v3142_v0 = vunpack.i.h.bf16 %v3140_v29  ;;  %v3141_v17 = vunpack.i.l.bf16 %v3140_v29  ;;  %v2064_v13 = vsel %vm6753_vm13, %v2048_v11, %v3136_v62 }
 0x1f2   :  { %v1998_v44 = vsel %vm7565_vm12, %v718_v27, %v3132_v53  ;;  %v3150_v3 = vpop.permute.xlu0 %3149  ;;  %v7575_v53 = vld [vmem:[#allocation82_spill] sm:$0xff]  ;;  %vm7579_vm12 = vmmov %vm7578_vm1 }
 0x1f3   :  { %v2015_v29 = vsel %vm6753_vm13, %v1998_v44, %v3137_v26  ;;  %v2080_v58 = vsel %vm7572_vm4, %v2064_v13, %v3141_v17  ;;  %v3152_v8 = vunpack.i.h.bf16 %v3150_v3  ;;  %v3151_v1 = vunpack.i.l.bf16 %v3150_v3  ;;  %v7580_v13 = vld [vmem:[#allocation24_spill] sm:$0xff] }
 0x1f4   :  { %v3145_v9 = vpop.permute.xlu1 %3144  ;;  %2252 = vmatprep.mubr.f32.mxu1 %v2080_v58  ;;  %vm7576_vm14 = vnez %v7575_v53 }
 0x1f5   :  { %v3147_v34 = vunpack.i.h.bf16 %v3145_v9  ;;  %v3146_v41 = vunpack.i.l.bf16 %v3145_v9  ;;  %v2032_v9 = vsel %vm7573_vm0, %v2015_v29, %v3142_v0  ;;  %v1216_v59 = vsel %vm7576_vm14, %v7574_v51, 0.0  ;;  %v7582_v29 = vld [vmem:[#allocation91_spill] sm:$0xff]  ;;  %v7589_v51 = vld [vmem:[#allocation97_spill] sm:$0xff] }
 0x1f6   :  { %2253 = vmatmul.mubr.f32.vlgmr.msra.gmra.mrb[0].mxu1 %v2032_v9  ;;  %vm7581_vm0 = vcmp.ge.s32.totalorder %v7580_v13, 0  ;;  %vm7583_vm8 = vnez %v7582_v29  ;;  %v3160_v3 = vpop.permute.xlu0 %3159  ;;  %vm7584_vm14 = vcmask 785408  }
 0x1f7   :  { %v2049_v44 = vsel %vm7578_vm1, %v1216_v59, %v3146_v41  ;;  %v1999_v17 = vsel %vm7579_vm12, %v719_v55, %v3147_v34  ;;  %vm575_vm4 = vmand %vm7583_vm8, %vm7581_vm0  ;;  %v3162_v58 = vunpack.i.h.bf16 %v3160_v3  ;;  %v3161_v9 = vunpack.i.l.bf16 %v3160_v3  ;;  %v7586_v34 = vld [vmem:[#allocation101_spill] sm:$0xff] }
 0x1f8   :  { %v3155_v27 = vpop.permute.xlu1 %3154  ;;  %v2065_v0 = vsel %vm6753_vm13, %v2049_v44, %v3151_v1  ;;  %v2016_v26 = vsel %vm6753_vm13, %v1999_v17, %v3152_v8  ;;  %vm7585_vm10 = vmmov %vm7584_vm14  ;;  %v7587_v1 = vld [vmem:[#allocation15_spill] sm:$0xff]  ;;  %v720_v53 = vsel %vm575_vm4, %v7589_v51, 0.0  ;;  %vm7595_vm4 = vcmask 785408   ;;  %v7597_v51 = vld [vmem:[#allocation84_spill] sm:$0xff] }
 0x1f9   :  { %v3157_v62 = vunpack.i.h.bf16 %v3155_v27  ;;  %v3156_v11 = vunpack.i.l.bf16 %v3155_v27  ;;  %vm7588_vm1 = vnez %v7587_v1  ;;  %vm7590_vm0 = vmmov %vm7579_vm12 }
 0x1fa   :  { %v1217_v8 = vsel %vm7588_vm1, %v7586_v34, 0.0  ;;  %v2000_v44 = vsel %vm7590_vm0, %v720_v53, %v3162_v58  ;;  %vm7596_vm1 = vmmov %vm7595_vm4  ;;  %v7598_v53 = vld [vmem:[#allocation31_spill] sm:$0xff] }
 0x1fb   :  { %v2081_v2 = vsel %vm7584_vm14, %v2065_v0, %v3156_v11  ;;  %v2033_v19 = vsel %vm7585_vm10, %v2016_v26, %v3157_v62  ;;  %v2050_v59 = vsel %vm7579_vm12, %v1217_v8, %v3161_v9  ;;  %v3170_v11 = vpop.permute.xlu0 %3169  ;;  %vm7599_vm12 = vnez %v7598_v53  ;;  %v7606_v53 = vld [vmem:[#allocation89_spill] sm:$0xff] }
 0x1fc   :  { %v3165_v27 = vpop.permute.xlu1 %3164  ;;  %2257 = vmatprep.mubr.f32.mxu1 %v2081_v2  ;;  %v3172_v17 = vunpack.i.h.bf16 %v3170_v11  ;;  %v3171_v62 = vunpack.i.l.bf16 %v3170_v11  ;;  %v7591_v2 = vld [vmem:[#allocation26_spill] sm:$0xff] }
 0x1fd   :  { %v3167_v41 = vunpack.i.h.bf16 %v3165_v27  ;;  %v3166_v55 = vunpack.i.l.bf16 %v3165_v27  ;;  %2258 = vmatmul.mubr.f32.gmra.mrb[2].mxu1 %v2033_v19  ;;  %vm7592_vm8 = vcmp.ge.s32.totalorder %v7591_v2, 0  ;;  %v7593_v19 = vld [vmem:[#allocation93_spill] sm:$0xff] }
 0x1fe   :  { %vm7594_vm14 = vnez %v7593_v19 }
 0x1ff   :  { %v2066_v29 = vsel %vm6753_vm13, %v2050_v59, %v3166_v55  ;;  %v2017_v3 = vsel %vm6753_vm13, %v2000_v44, %v3167_v41  ;;  %vm576_vm10 = vmand %vm7594_vm14, %vm7592_vm8  ;;  %v3180_v58 = vpop.permute.xlu0 %3179  ;;  %v1218_v55 = vsel %vm7599_vm12, %v7597_v51, 0.0  ;;  %v7600_v41 = vld [vmem:[#allocation5_spill] sm:$0xff]  ;;  %v3111_v51 = vunpack.i.l.bf16 %v5928_v46 }
 0x200   :  { %v3175_v0 = vpop.permute.xlu1 %3174  ;;  %v2082_v27 = vsel %vm7595_vm4, %v2066_v29, %v3171_v62  ;;  %v2034_v9 = vsel %vm7596_vm1, %v2017_v3, %v3172_v17  ;;  %v3182_v34 = vunpack.i.h.bf16 %v3180_v58  ;;  %v3181_v1 = vunpack.i.l.bf16 %v3180_v58  ;;  %vm7601_vm8 = vmmov %vm7590_vm0 }
 0x201   :  { %v3177_v26 = vunpack.i.h.bf16 %v3175_v0  ;;  %v3176_v13 = vunpack.i.l.bf16 %v3175_v0  ;;  %2262 = vmatprep.mubr.f32.mxu1 %v2082_v27  ;;  %v721_v59 = vsel %vm576_vm10, %v7600_v41, 0.0  ;;  %vm7602_vm14 = vmmov %vm7596_vm1 }
 0x202   :  { %2263 = vmatmul.mubr.f32.gmra.mrb[4].mxu1 %v2034_v9  ;;  %vm7603_vm4 = vmmov %vm7596_vm1  ;;  %v2128_v9 = vld [vmem:[%s6501_s4 + $0x110] sm:$0xff] }
 0x203   :  { %v2051_v0 = vsel %vm7590_vm0, %v1218_v55, %v3176_v13  ;;  %v2001_v62 = vsel %vm7601_vm8, %v721_v59, %v3177_v26  ;;  %v3190_v3 = vpop.permute.xlu0 %3189  ;;  %v2129_v13 = vld [vmem:[%s6501_s4 + $0x118] sm:$0xff]  ;;  %v7607_v55 = vld [vmem:[#allocation98_spill] sm:$0xff]  ;;  %vm7612_vm8 = vmmov %vm7590_vm0 }
 0x204   :  { %v3185_v8 = vpop.permute.xlu1 %3184  ;;  %v2067_v17 = vsel %vm6753_vm13, %v2051_v0, %v3181_v1  ;;  %v2018_v29 = vsel %vm6753_vm13, %v2001_v62, %v3182_v34  ;;  %v3192_v26 = vunpack.i.h.bf16 %v3190_v3  ;;  %v3191_v58 = vunpack.i.l.bf16 %v3190_v3  ;;  %v7604_v34 = vld [vmem:[#allocation7_spill] sm:$0xff]  ;;  %v7609_v0 = vld [vmem:[#allocation90_spill] sm:$0xff]  ;;  %v7610_v62 = vld [vmem:[#allocation100_spill] sm:$0xff] }
 0x205   :  { %v3187_v44 = vunpack.i.h.bf16 %v3185_v8  ;;  %v3186_v11 = vunpack.i.l.bf16 %v3185_v8  ;;  %vm7605_vm10 = vnez %v7604_v34  ;;  %v3112_v8 = vunpack.i.h.bf16 %v5928_v46 }
 0x206   :  { %v716_v1 = vsel %vm7605_vm10, %v7488_v61, 0.0  ;;  %vm7608_vm1 = vnez %v7607_v55  ;;  %vm7611_vm12 = vnez %v7610_v62  ;;  %v3117_v3 = vunpack.i.h.bf16 %v5930_v49 }
 0x207   :  { %v2083_v2 = vsel %vm7602_vm14, %v2067_v17, %v3186_v11  ;;  %v2035_v19 = vsel %vm7603_vm4, %v2018_v29, %v3187_v44  ;;  %v1213_v41 = vsel %vm7608_vm1, %v7606_v53, 0.0  ;;  %v3195_v11 = vpop.permute.xlu0 %3194  ;;  %v1219_v17 = vsel %vm7611_vm12, %v7609_v0, 0.0  ;;  %vm7613_vm14 = vmmov %vm7590_vm0 }
 0x208   :  { %v3200_v27 = vpop.permute.xlu1 %3199  ;;  %2267 = vmatprep.mubr.f32.mxu1 %v2083_v2  ;;  %v3069_v29 = vpack.c.bf16 %v2129_v13, %v2128_v9  ;;  %v3116_v61 = vunpack.i.l.bf16 %v5930_v49  ;;  %v3197_v2 = vunpack.i.h.bf16 %v3195_v11  ;;  %v2046_v55 = vsel %vm7590_vm0, %v1213_v41, %v3191_v58  ;;  %vm7615_vm4 = vmmov %vm7590_vm0 }
 0x209   :  { %2268 = vmatmul.mubr.f32.gmra.mrb[6].mxu1 %v2035_v19  ;;  %v3202_v59 = vunpack.i.h.bf16 %v3200_v27  ;;  %v3201_v44 = vunpack.i.l.bf16 %v3200_v27  ;;  %v3196_v19 = vunpack.i.l.bf16 %v3195_v11  ;;  %v2052_v53 = vsel %vm7612_vm8, %v1219_v17, %v3192_v26 }
 0x20a   :  { %v1996_v27 = vsel %vm7613_vm14, %v716_v1, %v3111_v51  ;;  %v2068_v0 = vsel %vm6753_vm13, %v2052_v53, %v3197_v2  ;;  %v7614_v9 = vsel %vm5607_vm6, %v7511_v32, 0.0  ;;  %vm7616_vm10 = vcmask 785408   ;;  %vm7626_vm14 = vmmov %vm7615_vm4 }
 0x20b   :  { %v2062_v10 = vsel %vm6753_vm13, %v2046_v55, %v3196_v19  ;;  %v2002_v49 = vsel %vm7615_vm4, %v7614_v9, %v3112_v8  ;;  %v2013_v13 = vsel %vm6753_vm13, %v1996_v27, %v3201_v44  ;;  %v3210_v11 = vpop.permute.xlu0 %3209  ;;  %vm7617_vm1 = vmmov %vm7616_vm10  ;;  %v3122_v8 = vunpack.i.h.bf16 %v5934_v7  ;;  %v7624_v19 = vld [vmem:[#allocation6_spill] sm:$0xff] }
 0x20c   :  { %v3205_v34 = vpop.permute.xlu1 %3204  ;;  %v2078_v62 = vsel %vm7616_vm10, %v2062_v10, %v3116_v61  ;;  %v2084_v58 = vsel %vm7617_vm1, %v2068_v0, %v3117_v3  ;;  %v2019_v26 = vsel %vm6753_vm13, %v2002_v49, %v3202_v59  ;;  %vm7618_vm12 = vmmov %vm7617_vm1  ;;  %v3212_v41 = vunpack.i.h.bf16 %v3210_v11  ;;  %v7620_v3 = vld [vmem:[#allocation85_spill] sm:$0xff]  ;;  %v7621_v61 = vld [vmem:[#allocation39_spill] sm:$0xff] }
 0x20d   :  { %v3207_v46 = vunpack.i.h.bf16 %v3205_v34  ;;  %v3206_v12 = vunpack.i.l.bf16 %v3205_v34  ;;  %2242 = vmatprep.mubr.f32.mxu0 %v2078_v62  ;;  %2272 = vmatprep.mubr.f32.mxu1 %v2084_v58  ;;  %vm7619_vm0 = vmmov %vm7617_vm1  ;;  %v3211_v32 = vunpack.i.l.bf16 %v3210_v11  ;;  %v3121_v44 = vunpack.i.l.bf16 %v5934_v7  ;;  %v7627_v62 = vld [vmem:[#allocation42_spill] sm:$0xff] }
 0x20e   :  { %vm7622_vm6 = vnez %v7621_v61  ;;  %vm7625_vm8 = vnez %v7624_v19  ;;  %v3126_v55 = vunpack.i.l.bf16 %v5932_v63  ;;  %vm7628_vm10 = vnez %v7627_v62  ;;  %v7629_v58 = vld [vmem:[#allocation58_spill] sm:$0xff]  ;;  %vm7631_vm1 = vmmov %vm7615_vm4  ;;  %v7645_v19 = vld [vmem:[#allocation32_spill] sm:$0xff] }
 0x20f   :  { %v2030_v51 = vsel %vm7618_vm12, %v2013_v13, %v3206_v12  ;;  %v2036_v18 = vsel %vm7619_vm0, %v2019_v26, %v3207_v46  ;;  %v3215_v59 = vpop.permute.xlu0 %3214  ;;  %v1214_v2 = vsel %vm7622_vm6, %v7620_v3, 0.0  ;;  %v7623_v12 = vld [vmem:[#allocation86_spill] sm:$0xff]  ;;  %v3127_v46 = vunpack.i.h.bf16 %v5932_v63  ;;  %vm7634_vm0 = vmmov %vm7631_vm1 }
 0x210   :  { %v3220_v1 = vpop.permute.xlu1 %3219  ;;  %2243 = vmatmul.mubr.f32.vlgmr.msra.gmra.mrb[16].mxu0 %v2030_v51  ;;  %2273 = vmatmul.mubr.f32.gmra.mrb[8].mxu1 %v2036_v18  ;;  %v1220_v34 = vsel %vm7625_vm8, %v7623_v12, 0.0  ;;  %v3217_v53 = vunpack.i.h.bf16 %v3215_v59  ;;  %v3216_v7 = vunpack.i.l.bf16 %v3215_v59  ;;  %v2047_v9 = vsel %vm7626_vm14, %v1214_v2, %v3211_v32  ;;  %v7635_v18 = vld [vmem:[#allocation27_spill] sm:$0xff] }
 0x211   :  { %3068 = vmatpush3.bf16.msra.mxu0 %v5811_v23  ;;  %v3222_v10 = vunpack.i.h.bf16 %v3220_v1  ;;  %v3221_v17 = vunpack.i.l.bf16 %v3220_v1  ;;  %v2053_v49 = vsel %vm7615_vm4, %v1220_v34, %v3212_v41  ;;  %v7630_v26 = vsel %vm7628_vm10, %v7629_v58, 0.0  ;;  %v7637_v41 = vld [vmem:[#allocation61_spill] sm:$0xff]  ;;  %v7647_v34 = vld [vmem:[#allocation68_spill] sm:$0xff] }
 0x212   :  { %3070 = vmatprep.subr.bf16.mxu0 %v3069_v29  ;;  %v2063_v13 = vsel %vm6753_vm13, %v2047_v9, %v3216_v7  ;;  %v2069_v11 = vsel %vm6753_vm13, %v2053_v49, %v3217_v53  ;;  %v1997_v1 = vsel %vm7631_vm1, %v7630_v26, %v3121_v44  ;;  %vm7632_vm12 = vnez %v7468_v15  ;;  %v7652_v7 = vld [vmem:[#allocation19_spill] sm:$0xff]  ;;  %v7659_v9 = vld [vmem:[#allocation105_spill] sm:$0xff] }
 0x213   :  { %v7633_v63 = vsel %vm7632_vm12, %v7515_v36, 0.0  ;;  %vm7636_vm6 = vcmp.lt.s32.totalorder %v7635_v18, 8  ;;  %vm7638_vm8 = vnez %v7637_v41  ;;  %vm7641_vm4 = vcmask 785408   ;;  %v7667_v41 = vld [vmem:[#allocation41_spill] sm:$0xff] }
 0x214   :  { %v2003_v51 = vsel %vm7634_vm0, %v7633_v63, %v3122_v8  ;;  %vm6068_vm14 = vmand %vm7638_vm8, %vm7636_vm6  ;;  %v3230_v59 = vpop.permute.xlu0 %3229  ;;  %v2079_v3 = vsel %vm7641_vm4, %v2063_v13, %v3126_v55  ;;  %v2014_v15 = vsel %vm6753_vm13, %v1997_v1, %v3221_v17  ;;  %vm7646_vm0 = vcmp.lt.s32.totalorder %v7645_v19, 8 }
 0x215   :  { %3072 = vmatpush3.bf16.msra.mxu0 %v3069_v29  ;;  %vm7642_vm10 = vmmov %vm7641_vm4  ;;  %v2020_v36 = vsel %vm6753_vm13, %v2003_v51, %v3222_v10  ;;  %v3232_v61 = vunpack.i.h.bf16 %v3230_v59  ;;  %v3231_v8 = vunpack.i.l.bf16 %v3230_v59  ;;  %2247 = vmatprep.mubr.f32.mxu0 %v2079_v3  ;;  %vm7648_vm6 = vnez %v7647_v34  ;;  %v7651_v10 = vld [vmem:[#allocation99_spill] sm:$0xff]  ;;  %v7668_v59 = vld [vmem:[#allocation21_spill] sm:$0xff] }
 0x216   :  { %v2085_v44 = vsel %vm7642_vm10, %v2069_v11, %v3127_v46  ;;  %vm7643_vm1 = vmmov %vm7641_vm4  ;;  %v1598_v53 = vsel %vm6068_vm14, %v7651_v10, 0.0  ;;  %vm7653_vm4 = vcmp.lt.s32.totalorder %v7652_v7, 8  ;;  %vm7663_vm13 = vnez %v7475_v28  ;;  %v7666_v51 = vld [vmem:[#allocation95_spill] sm:$0xff]  ;;  %v7670_v3 = vld [vmem:[#allocation14_spill] sm:$0xff] }
 0x217   :  { %2277 = vmatprep.mubr.f32.mxu1 %v2085_v44  ;;  %vm7644_vm12 = vmmov %vm7643_vm1  ;;  %v7664_v11 = vsel %vm7663_vm13, %v7523_v35, 0.0  ;;  %v7686_v34 = vld [vmem:[#allocation102_spill] sm:$0xff] }
 0x218   :  { %v3225_v27 = vpop.permute.xlu1 %3224  ;;  %vm6082_vm8 = vmand %vm7648_vm6, %vm7646_vm0  ;;  %vm7661_vm0 = vcmask 261120  }
 0x219   :  { %v3227_v23 = vunpack.i.h.bf16 %v3225_v27  ;;  %v3226_v0 = vunpack.i.l.bf16 %v3225_v27  ;;  %v7654_v27 = vld [vmem:[#allocation80_spill] sm:$0xff]  ;;  %vm7662_vm6 = vmmov %vm7661_vm0  ;;  %v1599_v18 = vsel %vm6082_vm8, %v7666_v51, 0.0 }
 0x21a   :  { %vm7655_vm10 = vnez %v7654_v27  ;;  %vm7665_vm14 = vmmov %vm7661_vm0  ;;  %v7688_v27 = vld [vmem:[#allocation8_spill] sm:$0xff] }
 0x21b   :  { %v2031_v2 = vsel %vm7643_vm1, %v2014_v15, %v3226_v0  ;;  %v2037_v12 = vsel %vm7644_vm12, %v2020_v36, %v3227_v23  ;;  %vm6093_vm1 = vmand %vm7655_vm10, %vm7653_vm4  ;;  %v7658_v0 = vld [vmem:[#allocation88_spill] sm:$0xff]  ;;  %vm7660_vm12 = vnez %v7659_v9  ;;  %v2004_v62 = vsel %vm7665_vm14, %v7664_v11, %v3232_v61  ;;  %v7677_v61 = vld [vmem:[#allocation23_spill] sm:$0xff] }
 0x21c   :  { %v3235_v29 = vpop.permute.xlu1 %3234  ;;  %2248 = vmatmul.mubr.f32.gmra.mrb[18].mxu0 %v2031_v2  ;;  %2278 = vmatmul.mubr.f32.gmra.mrb[10].mxu1 %v2037_v12  ;;  %v1221_v49 = vsel %vm7660_vm12, %v7658_v0, 0.0  ;;  %v1600_v32 = vsel %vm6093_vm1, %v7667_v41, 0.0  ;;  %vm7669_vm4 = vcmp.lt.s32.totalorder %v7668_v59, 8  ;;  %vm7671_vm10 = vnez %v7670_v3  ;;  %vm7674_vm13 = vmmov %vm7661_vm0  ;;  %v7689_v23 = vld [vmem:[#allocation107_spill] sm:$0xff] }
 0x21d   :  { %v3237_v17 = vunpack.i.h.bf16 %v3235_v29  ;;  %v3236_v46 = vunpack.i.l.bf16 %v3235_v29  ;;  %2982 = vmatprep.mubr.msk.f32.mxu0 %vm7661_vm0, %v1598_v53  ;;  %v2054_v13 = vsel %vm7662_vm6, %v1221_v49, %v3231_v8  ;;  %vm6117_vm12 = vmand %vm7671_vm10, %vm7669_vm4  ;;  %vm7675_vm0 = vcmask 523264   ;;  %v7679_v8 = vld [vmem:[#allocation17_spill] sm:$0xff]  ;;  %v7687_v53 = vld [vmem:[#allocation43_spill] sm:$0xff] }
 0x21e   :  { %vm7676_vm6 = vmmov %vm7675_vm0  ;;  %vm7678_vm8 = vcmp.lt.s32.totalorder %v7677_v61, 8  ;;  %vm7680_vm1 = vnez %v7679_v8  ;;  %vm7684_vm10 = vcmask 785408   ;;  %v1601_v55 = vsel %vm6117_vm12, %v7686_v34, 0.0  ;;  %v7715_v61 = vld [vmem:[#allocation69_spill] sm:$0xff]  ;;  %v7721_v34 = vld [vmem:[#allocation35_spill] sm:$0xff] }
 0x21f   :  { %v2070_v15 = vsel %vm7675_vm0, %v2054_v13, %v3236_v46  ;;  %v2021_v36 = vsel %vm7676_vm6, %v2004_v62, %v3237_v17  ;;  %vm6128_vm14 = vmand %vm7680_vm1, %vm7678_vm8  ;;  %v7693_v11 = vsel %vm7530_vm3, %v7529_v25, 0.0  ;;  %vm7707_vm3 = vnez %v7706_v31 }
 0x220   :  { %v3245_v63 = vpop.permute.xlu1 %3244  ;;  %2983 = vmatmul.mubr.msk.f32.vlgmr.msra.gmra.mrb[20].mxu0 %vm7674_vm13, %v1599_v18  ;;  %vm7683_vm4 = vmmov %vm7674_vm13  ;;  %v1602_v7 = vsel %vm6128_vm14, %v7687_v53, 0.0  ;;  %vm7690_vm13 = vnez %v7689_v23  ;;  %v7704_v18 = vld [vmem:[#allocation28_spill] sm:$0xff] }
 0x221   :  { %v3247_v35 = vunpack.i.h.bf16 %v3245_v63  ;;  %v3246_v44 = vunpack.i.l.bf16 %v3245_v63  ;;  %2985 = vmatprep.mubr.msk.f32.mxu0 %vm7683_vm4, %v1600_v32  ;;  %vm7685_vm7 = vmmov %vm7684_vm10  ;;  %v1222_v0 = vsel %vm7690_vm13, %v7688_v27, 0.0  ;;  %vm7705_vm13 = vcmp.lt.s32.totalorder %v7704_v18, 8  ;;  %v7741_v18 = vld [vmem:[#allocation109_spill] sm:$0xff] }
 0x222   :  { %vm7692_vm0 = vmmov %vm7683_vm4  ;;  %v7732_v27 = vsel %vm5729_vm5, %v5184_v56, 0.0 }
 0x223   :  { %v2055_v13 = vsel %vm7692_vm0, %v1222_v0, %v3246_v44  ;;  %vm7694_vm12 = vmmov %vm7692_vm0  ;;  %v7712_v44 = vld [vmem:[#allocation55_spill] sm:$0xff] }
 0x224   :  { %v3255_v10 = vpop.permute.xlu1 %3254  ;;  %v2005_v62 = vsel %vm7694_vm12, %v7693_v11, %v3247_v35  ;;  %vm7701_vm14 = vmmov %vm7692_vm0  ;;  %vm7710_vm0 = vcmask 785408   ;;  %v7734_v11 = vld [vmem:[#allocation9_spill] sm:$0xff] }
 0x225   :  { %v3257_v9 = vunpack.i.h.bf16 %v3255_v10  ;;  %v3256_v49 = vunpack.i.l.bf16 %v3255_v10  ;;  %vm7711_vm12 = vmmov %vm7710_vm0  ;;  %v7728_v10 = vld [vmem:[#allocation52_spill] sm:$0xff] }
 0x228   :  { %v3265_v35 = vpop.permute.xlu1 %3264 }
 0x229   :  { %v3267_v29 = vunpack.i.h.bf16 %v3265_v35 }
 0x239   :  { %v3240_v58 = vpop.permute.xlu0 %3239 }
 0x23a   :  { %v3242_v26 = vunpack.i.h.bf16 %v3240_v58  ;;  %v3241_v1 = vunpack.i.l.bf16 %v3240_v58  ;;  %v7695_v58 = vld [vmem:[#allocation25_spill] sm:$0xff] }
 0x23b   :  { %vm7696_vm6 = vcmp.lt.s32.totalorder %v7695_v58, 8  ;;  %v7735_v58 = vld [vmem:[#allocation12_spill] sm:$0xff] }
 0x23c   :  { %v2086_v2 = vsel %vm7684_vm10, %v2070_v15, %v3241_v1  ;;  %v2038_v12 = vsel %vm7685_vm7, %v2021_v36, %v3242_v26  ;;  %vm7691_vm7 = vmmov %vm7683_vm4  ;;  %v7697_v26 = vld [vmem:[#allocation94_spill] sm:$0xff]  ;;  %vm7702_vm4 = vcmask 523264   ;;  %v7713_v36 = vld [vmem:[#allocation33_spill] sm:$0xff] }
 0x23d   :  { %v3250_v19 = vpop.permute.xlu0 %3249  ;;  %2282 = vmatprep.mubr.f32.mxu1 %v2086_v2  ;;  %2986 = vmatmul.mubr.msk.f32.gmra.mrb[22].mxu0 %vm7691_vm7, %v1601_v55  ;;  %vm7698_vm8 = vnez %v7697_v26  ;;  %vm7703_vm10 = vmmov %vm7702_vm4  ;;  %v3266_v2 = vunpack.i.l.bf16 %v3265_v35  ;;  %v7723_v55 = vld [vmem:[#allocation44_spill] sm:$0xff] }
 0x23e   :  { %v3252_v17 = vunpack.i.h.bf16 %v3250_v19  ;;  %v3251_v46 = vunpack.i.l.bf16 %v3250_v19  ;;  %2283 = vmatmul.mubr.f32.gmra.mrb[12].mxu1 %v2038_v12  ;;  %vm6155_vm1 = vmand %vm7698_vm8, %vm7696_vm6  ;;  %2988 = vmatprep.mubr.msk.f32.mxu0 %vm7701_vm14, %v1602_v7  ;;  %vm7714_vm6 = vcmp.lt.s32.totalorder %v7713_v36, 8  ;;  %vm7716_vm8 = vnez %v7715_v61  ;;  %v7720_v12 = vld [vmem:[#allocation108_spill] sm:$0xff] }
 0x23f   :  { %vm6166_vm7 = vmand %vm7707_vm3, %vm7705_vm13  ;;  %v1603_v15 = vsel %vm6155_vm1, %v7712_v44, 0.0  ;;  %vm7724_vm1 = vnez %v7723_v55  ;;  %vm7729_vm3 = vnez %v7728_v10  ;;  %v7747_v44 = vld [vmem:[#allocation64_spill] sm:$0xff] }
 0x240   :  { %v2071_v63 = vsel %vm7702_vm4, %v2055_v13, %v3251_v46  ;;  %v2022_v51 = vsel %vm7703_vm10, %v2005_v62, %v3252_v17  ;;  %vm6179_vm14 = vmand %vm7716_vm8, %vm7714_vm6  ;;  %vm7719_vm4 = vcmask 261120   ;;  %v1604_v19 = vsel %vm6166_vm7, %v7720_v12, 0.0  ;;  %v7727_v46 = vld [vmem:[#allocation79_spill] sm:$0xff]  ;;  %v3275_v13 = vpop.permute.xlu1 %3274 }
 0x241   :  { %v3260_v41 = vpop.permute.xlu0 %3259  ;;  %v2087_v32 = vsel %vm7710_vm0, %v2071_v63, %v3256_v49  ;;  %v2039_v59 = vsel %vm7711_vm12, %v2022_v51, %v3257_v9  ;;  %2989 = vmatmul.mubr.msk.f32.gmra.mrb[24].mxu0 %vm7719_vm4, %v1603_v15  ;;  %vm7722_vm10 = vcmp.lt.s32.totalorder %v7721_v34, 8  ;;  %v1223_v53 = vsel %vm7729_vm3, %v7727_v46, 0.0  ;;  %vm7730_vm0 = vmmov %vm7719_vm4  ;;  %v7739_v51 = vld [vmem:[#allocation37_spill] sm:$0xff] }
 0x242   :  { %v3262_v3 = vunpack.i.h.bf16 %v3260_v41  ;;  %v3261_v28 = vunpack.i.l.bf16 %v3260_v41  ;;  %2287 = vmatprep.mubr.f32.mxu1 %v2087_v32  ;;  %vm6191_vm13 = vmand %vm7724_vm1, %vm7722_vm10  ;;  %2991 = vmatprep.mubr.msk.f32.mxu0 %vm7730_vm0, %v1604_v19  ;;  %v1605_v62 = vsel %vm6179_vm14, %v7734_v11, 0.0  ;;  %v3277_v1 = vunpack.i.h.bf16 %v3275_v13  ;;  %v7748_v15 = vld [vmem:[#allocation53_spill] sm:$0xff]  ;;  %v7770_v11 = vld [vmem:[#allocation74_spill] sm:$0xff] }
 0x243   :  { %2288 = vmatmul.mubr.f32.gmra.mrb[14].mxu1 %v2039_v59  ;;  %vm7731_vm12 = vmmov %vm7730_vm0  ;;  %v1606_v26 = vsel %vm6191_vm13, %v7735_v58, 0.0  ;;  %v3276_v63 = vunpack.i.l.bf16 %v3275_v13  ;;  %vm7737_vm8 = vcmask 523264   ;;  %vm7740_vm4 = vcmp.lt.s32.totalorder %v7739_v51, 8 }
 0x244   :  { %v2056_v7 = vsel %vm7731_vm12, %v1223_v53, %v3261_v28  ;;  %vm7733_vm7 = vmmov %vm7730_vm0  ;;  %vm7742_vm10 = vnez %v7741_v18  ;;  %vm7744_vm14 = vcmask 785408   ;;  %v7746_v28 = vld [vmem:[#allocation11_spill] sm:$0xff]  ;;  %vm7749_vm13 = vnez %v7748_v15 }
 0x245   :  { %v2006_v23 = vsel %vm7733_vm7, %v7732_v27, %v3262_v3  ;;  %vm7736_vm6 = vmmov %vm7730_vm0  ;;  %v2072_v56 = vsel %vm7737_vm8, %v2056_v7, %v3266_v2  ;;  %v3285_v3 = vpop.permute.xlu1 %3284  ;;  %v1224_v36 = vsel %vm7749_vm13, %v7747_v44, 0.0  ;;  %v7752_v2 = vsel %vm5767_vm15, %v5225_v6, 0.0 }
 0x246   :  { %v3270_v0 = vpop.permute.xlu0 %3269  ;;  %2992 = vmatmul.mubr.msk.f32.gmra.mrb[26].mxu0 %vm7736_vm6, %v1605_v62  ;;  %vm7738_vm5 = vmmov %vm7737_vm8  ;;  %v3287_v61 = vunpack.i.h.bf16 %v3285_v3  ;;  %v3286_v8 = vunpack.i.l.bf16 %v3285_v3  ;;  %v7754_v19 = vsel %vm5749_vm2, %v5433_v45, 0.0  ;;  %v7759_v45 = vsel %vm5783_vm11, %v5495_v40, 0.0  ;;  %v7772_v62 = vld [vmem:[#allocation56_spill] sm:$0xff] }
 0x247   :  { %v3272_v9 = vunpack.i.h.bf16 %v3270_v0  ;;  %v3271_v49 = vunpack.i.l.bf16 %v3270_v0  ;;  %v2023_v4 = vsel %vm7738_vm5, %v2006_v23, %v3267_v29  ;;  %vm1557_vm1 = vmand %vm7742_vm10, %vm7740_vm4  ;;  %v7762_v23 = vld [vmem:[#allocation63_spill] sm:$0xff]  ;;  %vm7771_vm11 = vcmp.lt.s32.totalorder %v7770_v11, 8 }
 0x248   :  { %vm7743_vm3 = vmmov %vm7730_vm0  ;;  %v1607_v35 = vsel %vm1557_vm1, %v7746_v28, 0.0  ;;  %vm7763_vm15 = vnez %v7762_v23 }
 0x249   :  { %2994 = vmatprep.mubr.msk.f32.mxu0 %vm7743_vm3, %v1606_v26  ;;  %v2088_v31 = vsel %vm7744_vm14, %v2072_v56, %v3271_v49  ;;  %vm7745_vm0 = vmmov %vm7744_vm14  ;;  %v3295_v6 = vpop.permute.xlu1 %3294  ;;  %v1225_v0 = vsel %vm7763_vm15, %v7761_v24, 0.0 }
 0x24a   :  { %v2040_v25 = vsel %vm7745_vm0, %v2023_v4, %v3272_v9  ;;  %v3280_v41 = vpop.permute.xlu0 %3279  ;;  %2292 = vmatprep.mubr.f32.mxu1 %v2088_v31  ;;  %vm7750_vm12 = vmmov %vm7743_vm3  ;;  %v3297_v7 = vunpack.i.h.bf16 %v3295_v6  ;;  %v3296_v27 = vunpack.i.l.bf16 %v3295_v6  ;;  %v7764_v9 = vsel %vm5794_vm9, %v5506_v42, 0.0 }
 0x24b   :  { %v3282_v32 = vunpack.i.h.bf16 %v3280_v41  ;;  %v3281_v59 = vunpack.i.l.bf16 %v3280_v41  ;;  %2293 = vmatmul.mubr.f32.gmra.mrb[16].mxu1 %v2040_v25  ;;  %2995 = vmatmul.mubr.msk.f32.gmra.mrb[28].mxu0 %vm7750_vm12, %v1607_v35  ;;  %vm7751_vm7 = vmmov %vm7743_vm3  ;;  %vm7773_vm12 = vnez %v7772_v62  ;;  %vm7776_vm9 = vnez %v7519_v43 }
 0x24c   :  { %v2057_v29 = vsel %vm7751_vm7, %v1224_v36, %v3276_v63  ;;  %vm7753_vm6 = vmmov %vm7743_vm3 }
 0x24d   :  { %v2007_v12 = vsel %vm7753_vm6, %v7752_v2, %v3277_v1  ;;  %vm7755_vm8 = vmmov %vm7743_vm3  ;;  %v2073_v34 = vsel %vm7738_vm5, %v2057_v29, %v3281_v59  ;;  %v3305_v26 = vpop.permute.xlu1 %3304 }
 0x24e   :  { %2997 = vmatprep.mubr.msk.f32.mxu0 %vm7755_vm8, %v7754_v19  ;;  %vm7756_vm4 = vmmov %vm7738_vm5  ;;  %v3290_v17 = vpop.permute.xlu0 %3289  ;;  %v3307_v1 = vunpack.i.h.bf16 %v3305_v26  ;;  %v3306_v63 = vunpack.i.l.bf16 %v3305_v26 }
 0x24f   :  { %v2024_v55 = vsel %vm7756_vm4, %v2007_v12, %v3282_v32  ;;  %vm7757_vm10 = vmmov %vm7745_vm0  ;;  %v3292_v47 = vunpack.i.h.bf16 %v3290_v17  ;;  %v3291_v53 = vunpack.i.l.bf16 %v3290_v17  ;;  %v7785_v32 = vld [vmem:[#allocation65_spill] sm:$0xff] }
 0x250   :  { %v2089_v46 = vsel %vm7757_vm10, %v2073_v34, %v3286_v8  ;;  %vm7758_vm1 = vmmov %vm7745_vm0  ;;  %vm7767_vm0 = vnez %v7528_v48 }
 0x251   :  { %v2041_v10 = vsel %vm7758_vm1, %v2024_v55, %v3287_v61  ;;  %2297 = vmatprep.mubr.f32.mxu1 %v2089_v46  ;;  %vm7760_vm2 = vmmov %vm7743_vm3  ;;  %v7768_v39 = vsel %vm7767_vm0, %v5355_v5, 0.0  ;;  %v7777_v5 = vsel %vm7776_vm9, %v5712_v30, 0.0  ;;  %v3315_v41 = vpop.permute.xlu1 %3314 }
 0x252   :  { %2298 = vmatmul.mubr.f32.gmra.mrb[18].mxu1 %v2041_v10  ;;  %2998 = vmatmul.mubr.msk.f32.gmra.mrb[30].mxu0 %vm7760_vm2, %v7759_v45  ;;  %vm7765_vm3 = vmmov %vm7760_vm2  ;;  %v3300_v13 = vpop.permute.xlu0 %3299  ;;  %v3317_v59 = vunpack.i.h.bf16 %v3315_v41  ;;  %v3316_v3 = vunpack.i.l.bf16 %v3315_v41  ;;  %v2674_v41 = vld [vmem:[%s6504_s7 + $0x10] sm:$0xff] }
 0x253   :  { %3000 = vmatprep.mubr.msk.f32.mxu0 %vm7765_vm3, %v7764_v9  ;;  %vm7766_vm14 = vmmov %vm7760_vm2  ;;  %v3302_v42 = vunpack.i.h.bf16 %v3300_v13  ;;  %v3301_v37 = vunpack.i.l.bf16 %v3300_v13 }
 0x254   :  { %v2058_v49 = vsel %vm7766_vm14, %v1225_v0, %v3291_v53  ;;  %vm7769_vm13 = vmmov %vm7760_vm2  ;;  %vm7788_vm14 = vnez %v7534_v16 }
 0x255   :  { %v2008_v40 = vsel %vm7769_vm13, %v7768_v39, %v3292_v47  ;;  %vm6264_vm7 = vmand %vm7773_vm12, %vm7771_vm11  ;;  %v7789_v35 = vsel %vm7788_vm14, %v5436_v38, 0.0  ;;  %v3325_v12 = vpop.permute.xlu1 %3324  ;;  %v7796_v38 = vld [vmem:[#allocation71_spill] sm:$0xff] }
 0x256   :  { %vm7778_vm6 = vmmov %vm7760_vm2  ;;  %v1613_v30 = vsel %vm6264_vm7, %v7486_v20, 0.0  ;;  %v3310_v43 = vpop.permute.xlu0 %3309  ;;  %v3327_v16 = vunpack.i.h.bf16 %v3325_v12  ;;  %v3326_v19 = vunpack.i.l.bf16 %v3325_v12 }
 0x257   :  { %3001 = vmatmul.mubr.msk.f32.gmra.mrb[32].mxu0 %vm7778_vm6, %v7777_v5  ;;  %vm7779_vm8 = vmmov %vm7756_vm4  ;;  %v3312_v31 = vunpack.i.h.bf16 %v3310_v43  ;;  %v3311_v25 = vunpack.i.l.bf16 %v3310_v43  ;;  %vm7797_vm6 = vnez %v7796_v38 }
 0x258   :  { %v2074_v48 = vsel %vm7779_vm8, %v2058_v49, %v3296_v27  ;;  %vm7780_vm5 = vmmov %vm7756_vm4  ;;  %vm7781_vm4 = vnez %v7522_v21  ;;  %v7786_v21 = vld [vmem:[#allocation83_spill] sm:$0xff]  ;;  %v1227_v34 = vsel %vm7797_vm6, %v7292_v52, 0.0  ;;  %v7805_v49 = vld [vmem:[#allocation18_spill] sm:$0xff]  ;;  %vm3381_vm6 = vmmov 0  }
 0x259   :  { %v2025_v56 = vsel %vm7780_vm5, %v2008_v40, %v3297_v7  ;;  %v7782_v4 = vsel %vm7781_vm4, %v5721_v60, 0.0  ;;  %vm7783_vm10 = vmmov %vm7760_vm2  ;;  %v2090_v51 = vsel %vm7758_vm1, %v2074_v48, %v3301_v37  ;;  %vm7787_vm15 = vnez %v7786_v21  ;;  %v3335_v6 = vpop.permute.xlu1 %3334 }
 0x25a   :  { %3003 = vmatprep.mubr.msk.f32.mxu0 %vm7783_vm10, %v7782_v4  ;;  %vm7784_vm2 = vmmov %vm7758_vm1  ;;  %2302 = vmatprep.mubr.f32.mxu1 %v2090_v51  ;;  %v1226_v60 = vsel %vm7787_vm15, %v7785_v32, 0.0  ;;  %v3320_v36 = vpop.permute.xlu0 %3319  ;;  %v3337_v7 = vunpack.i.h.bf16 %v3335_v6  ;;  %v3336_v27 = vunpack.i.l.bf16 %v3335_v6  ;;  %v3380_v32 = vmov 0.0|0.0  }
 0x25b   :  { %v2042_v18 = vsel %vm7784_vm2, %v2025_v56, %v3302_v42  ;;  %v2059_v28 = vsel %vm7765_vm3, %v1226_v60, %v3306_v63  ;;  %vm7790_vm0 = vmmov %vm7765_vm3  ;;  %v3322_v29 = vunpack.i.h.bf16 %v3320_v36  ;;  %v3321_v2 = vunpack.i.l.bf16 %v3320_v36  ;;  %3073 = vmatprep.subr.bf16.mxu0 %v3380_v32  ;;  %v2675_v60 = vld [vmem:[%s6504_s7 + $0x18] sm:$0xff] }
 0x25c   :  { %2303 = vmatmul.mubr.f32.gmra.mrb[20].mxu1 %v2042_v18  ;;  %v2009_v20 = vsel %vm7790_vm0, %v7789_v35, %v3307_v1  ;;  %vm7791_vm13 = vmmov %vm7790_vm0  ;;  %vm7806_vm3 = vnez %v7551_v33 }
 0x25d   :  { %3004 = vmatmul.mubr.msk.f32.gmra.mrb[34].mxu0 %vm7791_vm13, %v1613_v30  ;;  %vm7792_vm11 = vmmov %vm7780_vm5  ;;  %v3345_v9 = vpop.permute.xlu1 %3344  ;;  %v1228_v39 = vsel %vm7806_vm3, %v7805_v49, 0.0 }
 0x25e   :  { %v2075_v44 = vsel %vm7792_vm11, %v2059_v28, %v3311_v25  ;;  %vm7793_vm12 = vmmov %vm7780_vm5  ;;  %vm7799_vm5 = vnez %v7538_v57  ;;  %v3330_v10 = vpop.permute.xlu0 %3329  ;;  %v3347_v40 = vunpack.i.h.bf16 %v3345_v9  ;;  %v3346_v13 = vunpack.i.l.bf16 %v3345_v9  ;;  %v2673_v25 = vld [vmem:[%s6504_s7 + $0x8] sm:$0xff]  ;;  %3022 = vmatprep.mubr.msk.f32.mxu0 %vm3381_vm6, %v7553_v50  ;;  %v2678_v50 = vld [vmem:[%s6504_s7 + $0x30] sm:$0xff] }
 0x25f   :  { %v2026_v15 = vsel %vm7793_vm12, %v2009_v20, %v3312_v31  ;;  %vm7794_vm7 = vmmov %vm7758_vm1  ;;  %v7800_v17 = vsel %vm7799_vm5, %v5498_v54, 0.0  ;;  %v3332_v47 = vunpack.i.h.bf16 %v3330_v10  ;;  %v3331_v53 = vunpack.i.l.bf16 %v3330_v10  ;;  %v2672_v31 = vld [vmem:[%s6504_s7] sm:$0xff]  ;;  %v2677_v28 = vld [vmem:[%s6504_s7 + $0x28] sm:$0xff] }
 0x260   :  { %v2091_v61 = vsel %vm7794_vm7, %v2075_v44, %v3316_v3  ;;  %vm7795_vm9 = vmmov %vm7758_vm1  ;;  %v3074_v21 = vpack.c.bf16 %v2673_v25, %v2672_v31  ;;  %v2676_v3 = vld [vmem:[%s6504_s7 + $0x20] sm:$0xff] }
 0x261   :  { %v2043_v8 = vsel %vm7795_vm9, %v2026_v15, %v3317_v59  ;;  %2307 = vmatprep.mubr.f32.mxu1 %v2091_v61  ;;  %vm7798_vm8 = vmmov %vm7790_vm0  ;;  %v3077_v59 = vpack.c.bf16 %v2675_v60, %v2674_v41 }
 0x262   :  { %2308 = vmatmul.mubr.f32.gmra.mrb[22].mxu1 %v2043_v8  ;;  %v2060_v55 = vsel %vm7798_vm8, %v1227_v34, %v3321_v2  ;;  %vm7801_vm4 = vmmov %vm7790_vm0  ;;  %v3340_v0 = vpop.permute.xlu0 %3339  ;;  %3075 = vmatpush3.bf16.msra.mxu0 %v3074_v21  ;;  %v3080_v8 = vpack.c.bf16 %v2677_v28, %v2676_v3 }
 0x263   :  { %v2010_v46 = vsel %vm7801_vm4, %v7800_v17, %v3322_v29  ;;  %vm7802_vm10 = vmmov %vm7792_vm11  ;;  %v3342_v57 = vunpack.i.h.bf16 %v3340_v0  ;;  %v3341_v54 = vunpack.i.l.bf16 %v3340_v0  ;;  %3076 = vmatprep.subr.bf16.mxu0 %v3380_v32  ;;  %v2679_v29 = vld [vmem:[%s6504_s7 + $0x38] sm:$0xff] }
 0x264   :  { %v2076_v45 = vsel %vm7802_vm10, %v2060_v55, %v3326_v19  ;;  %vm7803_vm1 = vmmov %vm7802_vm10  ;;  %v3083_v2 = vpack.c.bf16 %v2679_v29, %v2678_v50 }
 0x265   :  { %v2027_v24 = vsel %vm7803_vm1, %v2010_v46, %v3327_v16  ;;  %v2092_v52 = vsel %vm7784_vm2, %v2076_v45, %v3331_v53  ;;  %vm7804_vm15 = vmmov %vm7784_vm2 }
 0x266   :  { %v2044_v23 = vsel %vm7804_vm15, %v2027_v24, %v3332_v47  ;;  %2312 = vmatprep.mubr.f32.mxu1 %v2092_v52  ;;  %vm7807_vm14 = vmmov %vm7790_vm0  ;;  %vm7808_vm0 = vnez %v7542_v22  ;;  %3078 = vmatpush3.bf16.msra.mxu0 %v3077_v59 }
 0x267   :  { %2313 = vmatmul.mubr.f32.gmra.mrb[24].mxu1 %v2044_v23  ;;  %v2061_v11 = vsel %vm7807_vm14, %v1228_v39, %v3336_v27  ;;  %v7809_v62 = vsel %vm7808_vm0, %v5572_v14, 0.0  ;;  %vm7810_vm13 = vmmov %vm7801_vm4  ;;  %3079 = vmatprep.subr.bf16.mxu0 %v3380_v32 }
 0x268   :  { %v2011_v58 = vsel %vm7810_vm13, %v7809_v62, %v3337_v7  ;;  %vm7811_vm11 = vmmov %vm7803_vm1 }
 0x269   :  { %v2077_v42 = vsel %vm7811_vm11, %v2061_v11, %v3341_v54  ;;  %vm7812_vm12 = vmmov %vm7803_vm1 }
 0x26a   :  { %v2028_v37 = vsel %vm7812_vm12, %v2011_v58, %v3342_v57  ;;  %vm7813_vm7 = vmmov %vm7784_vm2  ;;  %3081 = vmatpush3.bf16.msra.mxu0 %v3080_v8 }
 0x26b   :  { %v2093_v26 = vsel %vm7813_vm7, %v2077_v42, %v3346_v13  ;;  %vm7814_vm9 = vmmov %vm7784_vm2  ;;  %3082 = vmatprep.subr.bf16.mxu0 %v3380_v32 }
 0x26c   :  { %v2045_v1 = vsel %vm7814_vm9, %v2028_v37, %v3347_v40  ;;  %2317 = vmatprep.mubr.f32.mxu1 %v2093_v26  ;;  %vm7815_vm8 = vmmov %vm7803_vm1 }
 0x26d   :  { %2318 = vmatmul.mubr.f32.gmra.mrb[26].mxu1 %v2045_v1  ;;  %vm7816_vm5 = vmmov %vm7803_vm1 }
 0x26e   :  { %3084 = vmatpush3.bf16.msra.mxu0 %v3083_v2  ;;  %vm7817_vm4 = vmmov %vm7803_vm1 }
 0x26f   :  { %vm7818_vm10 = vmmov %vm7803_vm1 }
 0x270   :  { %vm7819_vm2 = vmmov %vm7803_vm1 }
 0x271   :  { %vm7820_vm15 = vmmov %vm7803_vm1 }
 0x272   :  { %vm7821_vm3 = vmmov %vm7803_vm1 }
 0x273   :  { %vm7822_vm14 = vmmov %vm7803_vm1 }
 0x274   :  { %vm7823_vm0 = vmmov %vm7803_vm1 }
 0x275   :  { %vm7824_vm13 = vmmov %vm7823_vm0 }
 0x276   :  { %vm7825_vm11 = vmmov %vm7823_vm0 }
 0x277   :  { %vm7826_vm12 = vmmov %vm7823_vm0 }
 0x278   :  { %vm7827_vm7 = vmmov %vm7823_vm0 }
 0x279   :  { %vm7828_vm9 = vmmov %vm7823_vm0 }
 0x27a   :  { %vm7829_vm6 = vmmov %vm7823_vm0 }
 0x2c9   :  { %v2871_v33 = vpop.f32.mrb[0].mxu1 }
 0x2ca   :  { %v2872_v63 = vpop.f32.mrb[1].mxu1 }
 0x2cb   :  { %v2873_v5 = vadd.f32 %v2872_v63, %v2871_v33 }
 0x2d0   :  { %v2874_v48 = vpop.f32.mrb[2].mxu1 }
 0x2d1   :  { %v2875_v56 = vpop.f32.mrb[3].mxu1 }
 0x2d2   :  { %v2876_v22 = vadd.f32 %v2875_v56, %v2874_v48 }
 0x2d5   :  { %v2877_v4 = vpop.f32.mrb[4].mxu1 }
 0x2d6   :  { %v2878_v14 = vpop.f32.mrb[5].mxu1 }
 0x2d7   :  { %v6325_v51 = vadd.f32 %v2878_v14, %v2877_v4 }
 0x2dc   :  { %v2880_v18 = vpop.f32.mrb[6].mxu1 }
 0x2dd   :  { %v2881_v30 = vpop.f32.mrb[7].mxu1 }
 0x2de   :  { %v2882_v43 = vadd.f32 %v2881_v30, %v2880_v18 }
 0x2e3   :  { %v2865_v35 = vpop.f32.mrb[16].mxu0  ;;  %v2883_v20 = vpop.f32.mrb[8].mxu1 }
 0x2e4   :  { %v2866_v44 = vpop.f32.mrb[17].mxu0  ;;  %v2884_v15 = vpop.f32.mrb[9].mxu1 }
 0x2e5   :  { %v2867_v36 = vadd.f32 %v2866_v44, %v2865_v35  ;;  %v2885_v61 = vadd.f32 %v2884_v15, %v2883_v20 }
 0x2ef   :  { %v2868_v12 = vpop.f32.mrb[18].mxu0  ;;  %v2886_v16 = vpop.f32.mrb[10].mxu1 }
 0x2f0   :  { %v2869_v19 = vpop.f32.mrb[19].mxu0  ;;  %v2887_v38 = vpop.f32.mrb[11].mxu1 }
 0x2f1   :  { %v2870_v34 = vadd.f32 %v2869_v19, %v2868_v12  ;;  %v2888_v55 = vadd.f32 %v2887_v38, %v2886_v16 }
 0x2f3   :  { %v2984_v17 = vpop.f32.mrb[20].mxu0 }
 0x2f4   :  { %v6352_v46 = vadd.f32 %v2984_v17, %v2870_v34  ;;  %v2389_v10 = vpop.f32.mrb[21].mxu0 }
 0x2f5   :  { %v6354_v47 = vadd.f32 %v2867_v36, %v2389_v10 }
 0x2f6   :  { %v2507_v53 = vmul.f32 %v6352_v46, %v6352_v46  ;;  %v2469_v7 = vsel %vm7815_vm8, %v6352_v46, 0.0  ;;  %vm7830_vm8 = vmmov %vm7823_vm0 }
 0x2f7   :  { %v2468_v27 = vsel %vm7816_vm5, %v6354_v47, 0.0  ;;  %v2506_v45 = vmul.f32 %v6354_v47, %v6354_v47  ;;  %vm7831_vm5 = vmmov %vm7823_vm0 }
 0x2f8   :  { %v2523_v54 = vsel %vm7817_vm4, %v2507_v53, 0.0  ;;  %v2470_v39 = vadd.f32 %v2469_v7, %v2468_v27  ;;  %vm7832_vm4 = vmmov %vm7823_vm0 }
 0x2f9   :  { %v2522_v9 = vsel %vm7818_vm10, %v2506_v45, 0.0  ;;  %vm7833_vm10 = vmmov %vm7823_vm0 }
 0x2fa   :  { %v2524_v42 = vadd.f32 %v2523_v54, %v2522_v9 }
 0x310   :  { %v2987_v52 = vpop.f32.mrb[22].mxu0 }
 0x311   :  { %v2889_v6 = vpop.f32.mrb[12].mxu1  ;;  %v6364_v0 = vadd.f32 %v2987_v52, %v2876_v22  ;;  %v2399_v57 = vpop.f32.mrb[23].mxu0 }
 0x312   :  { %v2890_v24 = vpop.f32.mrb[13].mxu1  ;;  %v6368_v49 = vadd.f32 %v2873_v5, %v2399_v57 }
 0x313   :  { %v2891_v23 = vadd.f32 %v2890_v24, %v2889_v6  ;;  %v2509_v40 = vmul.f32 %v6364_v0, %v6364_v0  ;;  %v2473_v63 = vsel %vm7819_vm2, %v6364_v0, 0.0  ;;  %vm7835_vm2 = vmmov %vm7823_vm0 }
 0x314   :  { %v2471_v13 = vsel %vm7803_vm1, %v6368_v49, 0.0  ;;  %v2508_v11 = vmul.f32 %v6368_v49, %v6368_v49  ;;  %v2990_v58 = vpop.f32.mrb[24].mxu0  ;;  %vm7834_vm1 = vmmov %vm7823_vm0 }
 0x315   :  { %v2472_v37 = vadd.f32 %v2471_v13, %v2470_v39  ;;  %v6376_v26 = vadd.f32 %v2990_v58, %v2882_v43  ;;  %v2409_v33 = vpop.f32.mrb[25].mxu0  ;;  %v2527_v14 = vsel %vm7821_vm3, %v2509_v40, 0.0  ;;  %vm7837_vm3 = vmmov %vm7823_vm0 }
 0x316   :  { %v2892_v62 = vpop.f32.mrb[14].mxu1  ;;  %v2525_v5 = vsel %vm7820_vm15, %v2508_v11, 0.0  ;;  %v6382_v56 = vadd.f32 %v6325_v51, %v2409_v33  ;;  %vm7836_vm15 = vmmov %vm7823_vm0 }
 0x317   :  { %v2893_v1 = vpop.f32.mrb[15].mxu1  ;;  %v2526_v22 = vadd.f32 %v2525_v5, %v2524_v42  ;;  %v2474_v4 = vadd.f32 %v2473_v63, %v2472_v37  ;;  %v2511_v18 = vmul.f32 %v6376_v26, %v6376_v26  ;;  %v2477_v21 = vsel %vm7823_vm0, %v6376_v26, 0.0 }
 0x318   :  { %v2894_v48 = vadd.f32 %v2893_v1, %v2892_v62  ;;  %v2475_v30 = vsel %vm7822_vm14, %v6382_v56, 0.0  ;;  %v2510_v43 = vmul.f32 %v6382_v56, %v6382_v56  ;;  %vm7838_vm14 = vmmov %vm7823_vm0 }
 0x319   :  { %v2993_v31 = vpop.f32.mrb[26].mxu0  ;;  %v2476_v25 = vadd.f32 %v2475_v30, %v2474_v4  ;;  %v2528_v41 = vadd.f32 %v2527_v14, %v2526_v22  ;;  %v2531_v20 = vsel %vm7825_vm11, %v2511_v18, 0.0  ;;  %vm7840_vm11 = vmmov %vm7823_vm0 }
 0x31a   :  { %v6391_v32 = vadd.f32 %v2993_v31, %v2888_v55  ;;  %v2419_v51 = vpop.f32.mrb[27].mxu0  ;;  %v2529_v60 = vsel %vm7824_vm13, %v2510_v43, 0.0  ;;  %vm7839_vm13 = vmmov %vm7823_vm0 }
 0x31b   :  { %v6396_v59 = vadd.f32 %v2885_v61, %v2419_v51  ;;  %v2530_v3 = vadd.f32 %v2529_v60, %v2528_v41  ;;  %v2478_v28 = vadd.f32 %v2477_v21, %v2476_v25 }
 0x31c   :  { %v2513_v44 = vmul.f32 %v6391_v32, %v6391_v32  ;;  %v2481_v16 = vsel %vm7827_vm7, %v6391_v32, 0.0  ;;  %vm7842_vm7 = vmmov %vm7823_vm0 }
 0x31d   :  { %v2479_v15 = vsel %vm7826_vm12, %v6396_v59, 0.0  ;;  %v2512_v36 = vmul.f32 %v6396_v59, %v6396_v59  ;;  %v2532_v2 = vadd.f32 %v2531_v20, %v2530_v3  ;;  %vm7841_vm12 = vmmov %vm7823_vm0 }
 0x31e   :  { %v2895_v35 = vpop.f32.mrb[16].mxu1  ;;  %v2996_v50 = vpop.f32.mrb[28].mxu0  ;;  %v2480_v29 = vadd.f32 %v2479_v15, %v2478_v28  ;;  %v2535_v10 = vsel %vm7829_vm6, %v2513_v44, 0.0  ;;  %vm7844_vm6 = vmmov %vm7823_vm0 }
 0x31f   :  { %v2896_v8 = vpop.f32.mrb[17].mxu1  ;;  %v2429_v12 = vpop.f32.mrb[29].mxu0  ;;  %v2533_v19 = vsel %vm7828_vm9, %v2512_v36, 0.0  ;;  %v6408_v38 = vadd.f32 %v2996_v50, %v2894_v48  ;;  %vm7843_vm9 = vmmov %vm7823_vm0 }
 0x320   :  { %v2897_v61 = vadd.f32 %v2896_v8, %v2895_v35  ;;  %v6410_v34 = vadd.f32 %v2891_v23, %v2429_v12  ;;  %v2534_v55 = vadd.f32 %v2533_v19, %v2532_v2  ;;  %v2482_v17 = vadd.f32 %v2481_v16, %v2480_v29 }
 0x321   :  { %v2515_v53 = vmul.f32 %v6408_v38, %v6408_v38  ;;  %v2485_v54 = vsel %vm7831_vm5, %v6408_v38, 0.0  ;;  %vm7847_vm5 = vmmov %vm7823_vm0 }
 0x322   :  { %v2483_v6 = vsel %vm7830_vm8, %v6410_v34, 0.0  ;;  %v2514_v7 = vmul.f32 %v6410_v34, %v6410_v34  ;;  %v2536_v52 = vadd.f32 %v2535_v10, %v2534_v55  ;;  %vm7846_vm8 = vmmov %vm7823_vm0 }
 0x323   :  { %v2484_v24 = vadd.f32 %v2483_v6, %v2482_v17  ;;  %v2539_v62 = vsel %vm7833_vm10, %v2515_v53, 0.0  ;;  %vm7849_vm10 = vmmov %vm7823_vm0 }
 0x324   :  { %v2537_v9 = vsel %vm7832_vm4, %v2514_v7, 0.0  ;;  %vm7848_vm4 = vmmov %vm7823_vm0 }
 0x325   :  { %v2898_v27 = vpop.f32.mrb[18].mxu1  ;;  %v2999_v45 = vpop.f32.mrb[30].mxu0  ;;  %v2538_v13 = vadd.f32 %v2537_v9, %v2536_v52  ;;  %v2486_v11 = vadd.f32 %v2485_v54, %v2484_v24 }
 0x326   :  { %v2899_v57 = vpop.f32.mrb[19].mxu1  ;;  %v2439_v23 = vpop.f32.mrb[31].mxu0 }
 0x327   :  { %v2900_v39 = vadd.f32 %v2899_v57, %v2898_v27  ;;  %v6422_v40 = vadd.f32 %v2897_v61, %v2439_v23  ;;  %v2540_v63 = vadd.f32 %v2539_v62, %v2538_v13 }
 0x329   :  { %v6425_v58 = vadd.f32 %v2999_v45, %v2900_v39  ;;  %v2487_v42 = vsel %vm7834_vm1, %v6422_v40, 0.0  ;;  %v2516_v37 = vmul.f32 %v6422_v40, %v6422_v40  ;;  %vm7850_vm1 = vmmov %vm7823_vm0 }
 0x32a   :  { %v3002_v1 = vpop.f32.mrb[32].mxu0  ;;  %v2488_v33 = vadd.f32 %v2487_v42, %v2486_v11 }
 0x32b   :  { %v2449_v5 = vpop.f32.mrb[33].mxu0  ;;  %v2489_v48 = vsel %vm7835_vm2, %v6425_v58, 0.0  ;;  %v2517_v22 = vmul.f32 %v6425_v58, %v6425_v58  ;;  %v2541_v4 = vsel %vm7836_vm15, %v2516_v37, 0.0  ;;  %vm7851_vm2 = vmmov %vm7823_vm0 }
 0x32c   :  { %v2490_v14 = vadd.f32 %v2489_v48, %v2488_v33  ;;  %v2542_v18 = vadd.f32 %v2541_v4, %v2540_v63  ;;  %vm7852_vm15 = vmmov %vm7823_vm0 }
 0x32d   :  { %v2543_v43 = vsel %vm7837_vm3, %v2517_v22, 0.0  ;;  %vm7853_vm3 = vmmov %vm7823_vm0 }
 0x32e   :  { %v2544_v41 = vadd.f32 %v2543_v43, %v2542_v18 }
 0x32f   :  { %v2901_v30 = vpop.f32.mrb[20].mxu1 }
 0x330   :  { %v2902_v31 = vpop.f32.mrb[21].mxu1  ;;  %v3005_v25 = vpop.f32.mrb[34].mxu0 }
 0x331   :  { %v2903_v51 = vadd.f32 %v2902_v31, %v2901_v30  ;;  %v2459_v21 = vpop.f32.mrb[35].mxu0 }
 0x333   :  { %v2450_v60 = vadd.f32 %v2903_v51, %v2449_v5 }
 0x335   :  { %v2904_v3 = vpop.f32.mrb[22].mxu1  ;;  %v2491_v28 = vsel %vm7838_vm14, %v2450_v60, 0.0  ;;  %v2518_v35 = vmul.f32 %v2450_v60, %v2450_v60  ;;  %vm7854_vm14 = vmmov %vm7823_vm0 }
 0x336   :  { %v2905_v20 = vpop.f32.mrb[23].mxu1  ;;  %v2492_v44 = vadd.f32 %v2491_v28, %v2490_v14 }
 0x337   :  { %v2906_v15 = vadd.f32 %v2905_v20, %v2904_v3  ;;  %v2545_v36 = vsel %vm7823_vm0, %v2518_v35, 0.0  ;;  %v7845_v35 = vld [vmem:[#allocation16_spill] sm:$0xff] }
 0x338   :  { %v2546_v8 = vadd.f32 %v2545_v36, %v2544_v41 }
 0x339   :  { %v2455_v50 = vadd.f32 %v3002_v1, %v2906_v15  ;;  %v2589_v15 = vld [vmem:[%s6503_s6] sm:$0x1] }
 0x33a   :  { %v2907_v61 = vpop.f32.mrb[24].mxu1 }
 0x33b   :  { %v2493_v29 = vsel %vm7839_vm13, %v2455_v50, 0.0  ;;  %v2519_v2 = vmul.f32 %v2455_v50, %v2455_v50  ;;  %v2908_v19 = vpop.f32.mrb[25].mxu1  ;;  %vm7855_vm13 = vmmov %vm7823_vm0 }
 0x33c   :  { %v2494_v12 = vadd.f32 %v2493_v29, %v2492_v44  ;;  %v2909_v55 = vadd.f32 %v2908_v19, %v2907_v61 }
 0x33d   :  { %v2547_v16 = vsel %vm7840_vm11, %v2519_v2, 0.0  ;;  %vm7856_vm11 = vmmov %vm7823_vm0 }
 0x33e   :  { %v2548_v17 = vadd.f32 %v2547_v16, %v2546_v8  ;;  %v2460_v10 = vadd.f32 %v2909_v55, %v2459_v21  ;;  %v2563_v21 = vld [vmem:[%s6502_s5] sm:$0x1] }
 0x340   :  { %v2910_v53 = vpop.f32.mrb[26].mxu1  ;;  %v2495_v6 = vsel %vm7841_vm12, %v2460_v10, 0.0  ;;  %v2520_v7 = vmul.f32 %v2460_v10, %v2460_v10  ;;  %vm7857_vm12 = vmmov %vm7823_vm0 }
 0x341   :  { %v2911_v27 = vpop.f32.mrb[27].mxu1  ;;  %v2496_v45 = vadd.f32 %v2495_v6, %v2494_v12 }
 0x342   :  { %v2912_v24 = vadd.f32 %v2911_v27, %v2910_v53  ;;  %v2549_v52 = vsel %vm7842_vm7, %v2520_v7, 0.0  ;;  %vm7858_vm7 = vmmov %vm7823_vm0 }
 0x343   :  { %v2550_v57 = vadd.f32 %v2549_v52, %v2548_v17 }
 0x344   :  { %v2465_v23 = vadd.f32 %v3005_v25, %v2912_v24 }
 0x346   :  { %v2497_v54 = vsel %vm7843_vm9, %v2465_v23, 0.0  ;;  %v2521_v9 = vmul.f32 %v2465_v23, %v2465_v23  ;;  %vm7859_vm9 = vmmov %vm7823_vm0 }
 0x347   :  { %v2498_v39 = vadd.f32 %v2497_v54, %v2496_v45 }
 0x348   :  { %v2551_v13 = vsel %vm7844_vm6, %v2521_v9, 0.0  ;;  %vm7860_vm6 = vmmov %vm7823_vm0 }
 0x349   :  { %v2499_v11 = vrot.slane %v2498_v39, 4  ;;  %v2552_v62 = vadd.f32 %v2551_v13, %v2550_v57 }
 0x34b   :  { %v2500_v42 = vadd.f32 %v2499_v11, %v2498_v39  ;;  %v2553_v37 = vrot.slane %v2552_v62, 4 }
 0x34d   :  { %v2501_v1 = vrot.slane %v2500_v42, 2  ;;  %v2554_v33 = vadd.f32 %v2553_v37, %v2552_v62 }
 0x34f   :  { %v2502_v63 = vadd.f32 %v2501_v1, %v2500_v42  ;;  %v2555_v5 = vrot.slane %v2554_v33, 2 }
 0x351   :  { %v2503_v48 = vrot.slane %v2502_v63, 1  ;;  %v2556_v22 = vadd.f32 %v2555_v5, %v2554_v33 }
 0x353   :  { %v2504_v4 = vadd.f32 %v2503_v48, %v2502_v63  ;;  %v2557_v14 = vrot.slane %v2556_v22, 1 }
 0x355   :  { %v2505_v18 = vmul.f32 0.0078125, %v2504_v4  ;;  %v2558_v30 = vadd.f32 %v2557_v14, %v2556_v22 }
 0x357   :  { %v2559_v43 = vmul.f32 0.0078125, %v2558_v30  ;;  %v2560_v31 = vmul.f32 %v2505_v18, %v2505_v18 }
 0x359   :  { %v2561_v25 = vsub.f32 %v2559_v43, %v2560_v31 }
 0x35b   :  { %v2562_v41 = vmax.f32 %v2561_v25, 0.0 }
 0x35d   :  { %v2564_v51 = vadd.f32 1e-05, %v2562_v41 }
 0x35f   :  { %3350 = vrsqrt.f32 %v2564_v51 }
 0x369   :  { %v3351_v3 = vpop.eup %3350 }
 0x36a   :  { %v2566_v28 = vmul.f32 %v3351_v3, %v2563_v21 }
 0x36c   :  { %v2571_v20 = vrot.slane %v2566_v28, %v7845_v35  ;;  %v2590_v44 = vmul.f32 %v2566_v28, %v2505_v18 }
 0x36e   :  { %v2581_v36 = vmul.f32 %v2571_v20, %v6410_v34  ;;  %v2582_v8 = vmul.f32 %v2571_v20, %v6408_v38  ;;  %v2583_v29 = vmul.f32 %v2571_v20, %v6422_v40  ;;  %v2584_v2 = vmul.f32 %v2571_v20, %v6425_v58 }
 0x36f   :  { %v2585_v61 = vmul.f32 %v2571_v20, %v2450_v60  ;;  %v2586_v12 = vmul.f32 %v2571_v20, %v2455_v50  ;;  %v2587_v16 = vmul.f32 %v2571_v20, %v2460_v10  ;;  %v2588_v19 = vmul.f32 %v2571_v20, %v2465_v23 }
 0x370   :  { %v2591_v55 = vsub.f32 %v2589_v15, %v2590_v44  ;;  %v2578_v17 = vmul.f32 %v2571_v20, %v6376_v26  ;;  %v2579_v53 = vmul.f32 %v2571_v20, %v6396_v59  ;;  %v2573_v7 = vmul.f32 %v2571_v20, %v6354_v47 }
 0x371   :  { %v2580_v34 = vmul.f32 %v2571_v20, %v6391_v32  ;;  %v2574_v38 = vmul.f32 %v2571_v20, %v6352_v46  ;;  %v2575_v40 = vmul.f32 %v2571_v20, %v6368_v49  ;;  %v2576_v58 = vmul.f32 %v2571_v20, %v6364_v0 }
 0x372   :  { %v2596_v6 = vrot.slane %v2591_v55, %v7845_v35  ;;  %v2577_v60 = vmul.f32 %v2571_v20, %v6382_v56 }
 0x374   :  { %v2606_v50 = vadd.f32 %v2596_v6, %v2581_v36  ;;  %v2607_v10 = vadd.f32 %v2596_v6, %v2582_v8  ;;  %v2608_v27 = vadd.f32 %v2596_v6, %v2583_v29  ;;  %v2609_v26 = vadd.f32 %v2596_v6, %v2584_v2 }
 0x375   :  { %v2610_v45 = vadd.f32 %v2596_v6, %v2585_v61  ;;  %v2611_v59 = vadd.f32 %v2596_v6, %v2586_v12  ;;  %v2612_v24 = vadd.f32 %v2596_v6, %v2587_v16  ;;  %v2613_v52 = vadd.f32 %v2596_v6, %v2588_v19 }
 0x376   :  { %v2622_v57 = vmax.f32 %v2606_v50, 0.0  ;;  %v2623_v47 = vmax.f32 %v2607_v10, 0.0  ;;  %v2624_v23 = vmax.f32 %v2608_v27, 0.0  ;;  %v2625_v32 = vmax.f32 %v2609_v26, 0.0 }
 0x377   :  { %v2626_v54 = vmax.f32 %v2610_v45, 0.0  ;;  %v2627_v46 = vmax.f32 %v2611_v59, 0.0  ;;  %v2628_v9 = vmax.f32 %v2612_v24, 0.0  ;;  %v2629_v49 = vmax.f32 %v2613_v52, 0.0 }
 0x378   :  { %v2651_v0 = vsel %vm7846_vm8, %v2622_v57, -inf  ;;  %v2652_v56 = vsel %vm7847_vm5, %v2623_v47, -inf  ;;  %v2653_v39 = vsel %vm7848_vm4, %v2624_v23, -inf  ;;  %v2655_v13 = vsel %vm7849_vm10, %v2625_v32, -inf  ;;  %vm7861_vm5 = vmmov %vm7823_vm0  ;;  %v2811_v32 = vld [vmem:[%s6505_s8] ss:$0 sm:$0xff] }
 0x379   :  { %v2654_v11 = vmax.f32 %v2651_v0, %v2653_v39  ;;  %v2656_v62 = vmax.f32 %v2652_v56, %v2655_v13  ;;  %v2657_v42 = vsel %vm7850_vm1, %v2626_v54, -inf  ;;  %v2659_v37 = vsel %vm7851_vm2, %v2627_v46, -inf }
 0x37a   :  { %v2661_v1 = vsel %vm7852_vm15, %v2628_v9, -inf  ;;  %v2663_v33 = vsel %vm7853_vm3, %v2629_v49, -inf  ;;  %v2598_v63 = vadd.f32 %v2596_v6, %v2573_v7  ;;  %v2599_v5 = vadd.f32 %v2596_v6, %v2574_v38 }
 0x37b   :  { %v2658_v48 = vmax.f32 %v2654_v11, %v2657_v42  ;;  %v2660_v22 = vmax.f32 %v2656_v62, %v2659_v37  ;;  %v2600_v4 = vadd.f32 %v2596_v6, %v2575_v40  ;;  %v2601_v14 = vadd.f32 %v2596_v6, %v2576_v58 }
 0x37c   :  { %v2602_v18 = vadd.f32 %v2596_v6, %v2577_v60  ;;  %v2603_v30 = vadd.f32 %v2596_v6, %v2578_v17  ;;  %v2604_v43 = vadd.f32 %v2596_v6, %v2579_v53  ;;  %v2605_v31 = vadd.f32 %v2596_v6, %v2580_v34 }
 0x37d   :  { %v2662_v25 = vmax.f32 %v2658_v48, %v2661_v1  ;;  %v2664_v41 = vmax.f32 %v2660_v22, %v2663_v33  ;;  %v2614_v51 = vmax.f32 %v2598_v63, 0.0  ;;  %v2615_v21 = vmax.f32 %v2599_v5, 0.0 }
 0x37e   :  { %v2616_v3 = vmax.f32 %v2600_v4, 0.0  ;;  %v2617_v28 = vmax.f32 %v2601_v14, 0.0  ;;  %v2618_v35 = vmax.f32 %v2602_v18, 0.0  ;;  %v2619_v20 = vmax.f32 %v2603_v30, 0.0 }
 0x37f   :  { %v2665_v44 = vmax.f32 %v2662_v25, %v2664_v41  ;;  %v2620_v15 = vmax.f32 %v2604_v43, 0.0  ;;  %v2630_v36 = vsel %vm7854_vm14, %v2614_v51, -inf  ;;  %v2621_v8 = vmax.f32 %v2605_v31, 0.0 }
 0x380   :  { %v2631_v29 = vsel %vm7823_vm0, %v2615_v21, -inf  ;;  %v2632_v2 = vsel %vm7855_vm13, %v2616_v3, -inf  ;;  %v2634_v61 = vsel %vm7856_vm11, %v2617_v28, -inf  ;;  %v2636_v55 = vsel %vm7857_vm12, %v2618_v35, -inf }
 0x381   :  { %v2666_v12 = vrot.slane %v2665_v44, 4  ;;  %v2633_v16 = vmax.f32 %v2630_v36, %v2632_v2  ;;  %v2635_v19 = vmax.f32 %v2631_v29, %v2634_v61  ;;  %v2638_v17 = vsel %vm7858_vm7, %v2619_v20, -inf }
 0x382   :  { %v2640_v34 = vsel %vm7859_vm9, %v2620_v15, -inf  ;;  %v2642_v38 = vsel %vm7860_vm6, %v2621_v8, -inf  ;;  %vm2689_vm8 = vcmask 1041409   ;;  %vm2763_vm4 = vcmask 74752  }
 0x383   :  { %v2667_v53 = vmax.f32 %v2665_v44, %v2666_v12  ;;  %v2637_v6 = vmax.f32 %v2633_v16, %v2636_v55  ;;  %v2639_v7 = vmax.f32 %v2635_v19, %v2638_v17 }
 0x385   :  { %v2641_v40 = vmax.f32 %v2637_v6, %v2640_v34  ;;  %v2643_v58 = vmax.f32 %v2639_v7, %v2642_v38  ;;  %v2668_v60 = vrot.slane %v2667_v53, 2 }
 0x387   :  { %v2644_v50 = vmax.f32 %v2641_v40, %v2643_v58  ;;  %v2669_v27 = vmax.f32 %v2667_v53, %v2668_v60 }
 0x389   :  { %v2645_v10 = vrot.slane %v2644_v50, 4  ;;  %v2670_v59 = vrot.slane %v2669_v27, 1 }
 0x38b   :  { %v2646_v26 = vmax.f32 %v2644_v50, %v2645_v10  ;;  %v2671_v57 = vmax.f32 %v2669_v27, %v2670_v59 }
 0x38d   :  { %v2647_v45 = vrot.slane %v2646_v26, 2 }
 0x38f   :  { %v2648_v24 = vmax.f32 %v2646_v26, %v2647_v45 }
 0x391   :  { %v2649_v52 = vrot.slane %v2648_v24, 1 }
 0x393   :  { %v2650_v47 = vmax.f32 %v2648_v24, %v2649_v52 }
 0x395   :  { %v2690_v23 = vsel %vm2689_vm8, %v2671_v57, %v2650_v47 }
 0x396   :  { %3023 = vmatmul.mubr.msk.f32.vlgmr.msra.gmra.mrb[36].mxu0 %vm7861_vm5, %v2690_v23 }
 0x469   :  { %v2759_v54 = vpop.f32.mrb[36].mxu0 }
 0x46a   :  { %v2760_v46 = vadd.f32 %v2811_v32, %v2759_v54  ;;  %v3024_v9 = vpop.f32.mrb[37].mxu0 }
 0x46c   :  { %2764 = vst.msk [vmem:[#allocation2] sm:$0x3] %vm2763_vm4, %v2760_v46 }
 0x46d   :  { %3363 = shalt.err (!%p3360_p4)
}
 0x46e   :  { %s3364_s17 = scalar_lea.hbm %s6506_s9, 32 }
 0x46f   :  { %p3365_p5 = scmp.ne.s32.totalorder %s6506_s9, %s3364_s17  ;;  %p3368_p6 = scmp.lt.u32.totalorder %s3364_s17, %s6506_s9 }
 0x471   :  { %p3370_p7 = pnand %p3368_p6, %p3365_p5 }
 0x473   :  { %3373 = shalt.err (!%p3370_p7)
}
 0x474   :  { %2774 = dma.vmem_to_hbm [thread:$0]  %s2772_s28, 32, %s6506_s9, [#allocation3]  }
 0x475   :  { %3374 = dma.done.wait [#allocation3], 32  }
 0x476   :  { %3375 = vsyncadd [#allocation3], 4294967264 }
 0x477   :  { %2778 = vsyncpa [#allocation3], 1 }

</bundles_post_ra>
